<compile_context>
chip_gen: v7x
topology: tpu7x:2x2x1
jax: 0.10.0
libtpu: 0.0.40
codegen_flags: <defaults>
</compile_context>

<pallas_src>
import functools
import math

import jax
import jax.numpy as jnp
import numpy as np
from jax.experimental import pallas as pl
from jax.experimental.pallas import tpu as pltpu


def _shift(kernels):
    mink, maxk = min(kernels), max(kernels)
    nk = math.ceil(maxk / mink)
    padding = mink - 1
    mid = maxk // 2
    real_pad = [mid - i * mink - padding for i in range(nk)]
    return padding, real_pad


def _padded_geometry(pad_h, pad_v, extra_pad, H_in, W_in, H_out, W_out):
    shifts = np.concatenate([np.asarray(pad_h).ravel(), np.asarray(pad_v).ravel()])
    min_s, max_s = int(shifts.min()), int(shifts.max())
    pad_lo = max(0, -(extra_pad + min_s))
    pad_hi = max(0, extra_pad + max_s + max(H_out - H_in, W_out - W_in))
    H_pad, W_pad = H_in + pad_lo + pad_hi, W_in + pad_lo + pad_hi
    fix = pad_lo + extra_pad
    return pad_lo, pad_hi, H_pad, W_pad, fix


def _build_offsets_and_weights(pad_h, pad_v, idx_identit, fix, c_out, c_in, nk,
                               group_in, w1, w2, w3):
    """Trace-time plan: a small list of distinct window offsets (r0, c0) in
    padded-scratch coordinates and, per offset, a folded weight matrix A_s of
    shape (3*c_out, c_in), so the kernel is just

        out[3*c_out, H*W] = sum_s A_s @ xp[:, r0:r0+H, c0:c0+W].reshape(c_in, H*W)

    Rows of A_s are path-major: [0:c_out) horizontal, [c_out:2c_out) vertical,
    [2c_out:3c_out) identity."""
    pad_h = np.asarray(pad_h).reshape(group_in, c_in)
    pad_v = np.asarray(pad_v).reshape(group_in, c_in)
    idx_identit = np.asarray(idx_identit).reshape(c_out, group_in)
    w1 = jnp.asarray(w1, jnp.float32).reshape(group_in, c_in)
    w2 = jnp.asarray(w2, jnp.float32).reshape(group_in, c_in)
    w3 = jnp.asarray(w3, jnp.float32).reshape(group_in, c_out)

    # Distinct window offsets (<= 2*nk + 1 of them). Center always present.
    offsets = [(fix, fix)]
    for d in sorted({int(v) for v in pad_h.ravel()}):
        if (fix, fix + d) not in offsets:
            offsets.append((fix, fix + d))
    for d in sorted({int(v) for v in pad_v.ravel()}):
        if (fix + d, fix) not in offsets:
            offsets.append((fix + d, fix))

    owner = np.arange(c_in) // nk        # output channel owning input channel c
    zeros = jnp.zeros((c_out, c_in), jnp.float32)

    a_blocks = []
    for (r0, c0) in offsets:
        # path 0: horizontal shift along W (row offset == fix)
        if r0 == fix:
            d = c0 - fix
            m = np.zeros((group_in, c_out, c_in), np.float32)
            for g in range(group_in):
                for c in range(c_in):
                    if int(pad_h[g, c]) == d:
                        m[g, owner[c], c] = 1.0
            p0 = jnp.einsum("gc,goc->oc", w1, jnp.asarray(m))
        else:
            p0 = zeros
        # path 1: vertical shift along H (col offset == fix)
        if c0 == fix:
            d = r0 - fix
            m = np.zeros((group_in, c_out, c_in), np.float32)
            for g in range(group_in):
                for c in range(c_in):
                    if int(pad_v[g, c]) == d:
                        m[g, owner[c], c] = 1.0
            p1 = jnp.einsum("gc,goc->oc", w2, jnp.asarray(m))
        else:
            p1 = zeros
        # path 2: identity (center crop only)
        if (r0, c0) == (fix, fix):
            m = np.zeros((group_in, c_out, c_in), np.float32)
            for g in range(group_in):
                for o in range(c_out):
                    m[g, o, int(idx_identit[o, g])] = 1.0
            p2 = jnp.einsum("go,goc->oc", w3, jnp.asarray(m))
        else:
            p2 = zeros
        a_blocks.append(jnp.concatenate([p0, p1, p2], axis=0))
    a_mats = jnp.stack(a_blocks, axis=0)       # (n_off, 3*c_out, c_in)
    return tuple(offsets), a_mats


def addshift_kernel(x_ref, a_ref, out_ref, xp_ref, *, offsets, pad_lo, pad_hi,
                    H_in, W_in, H_out, W_out, H_pad, W_pad, c_in):
    """x_ref  : (1, c_in, H_in, W_in) VMEM block for one batch element.
    a_ref   : (n_off, 3*c_out, c_in) folded weight matrices (wrapper-built).
    out_ref : (1, 3*c_out, H_out*W_out), path-major channels, lane-dense.
    xp_ref  : (c_in, H_pad, W_pad) VMEM scratch used as a zero-padded copy of x
              so every shifted window is a plain static in-bounds slice."""
    # --- zero-padded copy of this batch element -------------------------------
    # Halo-only zeroing (interior is fully overwritten by the slab copy below).
    # Kept per step: under dimension_semantics=("parallel",) a TensorCore may
    # never execute grid step 0, so a program_id guard would be wrong.
    if pad_lo > 0:
        xp_ref[:, :pad_lo, :] = jnp.zeros((c_in, pad_lo, W_pad), jnp.float32)
        xp_ref[:, pad_lo:pad_lo + H_in, :pad_lo] = jnp.zeros(
            (c_in, H_in, pad_lo), jnp.float32)
    if pad_hi > 0:
        xp_ref[:, pad_lo + H_in:, :] = jnp.zeros((c_in, pad_hi, W_pad), jnp.float32)
        xp_ref[:, pad_lo:pad_lo + H_in, pad_lo + W_in:] = jnp.zeros(
            (c_in, H_in, pad_hi), jnp.float32)
    # Single slab interior copy (one large vectorizable store).
    xp_ref[:, pad_lo:pad_lo + H_in, pad_lo:pad_lo + W_in] = x_ref[0]

    # --- per-shift-offset matmuls on the MXU -----------------------------------
    hw = H_out * W_out
    acc = None
    for s, (r0, c0) in enumerate(offsets):          # <= 2*nk + 1 static slices
        xs = xp_ref[:, r0:r0 + H_out, c0:c0 + W_out].reshape(c_in, hw)
        term = jnp.dot(a_ref[s], xs, preferred_element_type=jnp.float32)
        acc = term if acc is None else acc + term   # first-term init (no zeros)
    out_ref[0] = acc                                 # one lane-dense store


def add_shift_mp_linear(x, pad_h, pad_v, idx_identit, w1, w2, w3,
                        extra_pad, c_out, nk, group_in, H_out, W_out):
    """x: (B, c_out*nk, H_in, W_in) f32.
    pad_h / pad_v: host numpy (group_in, c_out*nk) int shift tables (buffers).
    idx_identit : host numpy (c_out, group_in) absolute channel indices.
    w1, w2: (group_in, c_in) f32;  w3: (group_in, c_out) f32  (runtime params)."""
    B, C_in, H_in, W_in = x.shape
    assert C_in == c_out * nk

    pad_lo, pad_hi, H_pad, W_pad, fix = _padded_geometry(
        pad_h, pad_v, extra_pad, H_in, W_in, H_out, W_out)
    offsets, a_mats = _build_offsets_and_weights(
        pad_h, pad_v, idx_identit, fix, c_out, C_in, nk, group_in, w1, w2, w3)
    n_off = len(offsets)
    hw = H_out * W_out

    kern = functools.partial(
        addshift_kernel, offsets=offsets, pad_lo=pad_lo, pad_hi=pad_hi,
        H_in=H_in, W_in=W_in, H_out=H_out, W_out=W_out,
        H_pad=H_pad, W_pad=W_pad, c_in=C_in)

    grid_spec = pltpu.PrefetchScalarGridSpec(
        num_scalar_prefetch=0,
        grid=(B,),                                            # one step per batch
        in_specs=[
            pl.BlockSpec((1, C_in, H_in, W_in), lambda b: (b, 0, 0, 0)),
            pl.BlockSpec((n_off, 3 * c_out, C_in), lambda b: (0, 0, 0)),
        ],
        out_specs=pl.BlockSpec((1, 3 * c_out, hw), lambda b: (b, 0, 0)),
        scratch_shapes=[pltpu.VMEM((C_in, H_pad, W_pad), jnp.float32)],
    )

    out = pl.pallas_call(
        kern,
        out_shape=jax.ShapeDtypeStruct((B, 3 * c_out, hw), jnp.float32),
        grid_spec=grid_spec,
        compiler_params=pltpu.CompilerParams(
            dimension_semantics=("parallel",),
            vmem_limit_bytes=64 * 1024 * 1024),
    )(jnp.asarray(x, jnp.float32), a_mats)

    # Path-major layout -> each chunk is a contiguous slab (no strided gather).
    out = out.reshape(B, 3, c_out, H_out, W_out)
    return out[:, 0], out[:, 1], out[:, 2]


def reference(x, pad_h, pad_v, idx_identit, w1, w2, w3,
              extra_pad, c_out, nk, group_in, H_out, W_out):
    x = np.asarray(x)
    B, C_in, H_in, W_in = x.shape
    shifts = np.concatenate([np.asarray(pad_h).ravel(), np.asarray(pad_v).ravel()])
    pad_lo = max(0, -(extra_pad + int(shifts.min())))
    pad_hi = max(0, extra_pad + int(shifts.max()) + max(H_out - H_in, W_out - W_in))
    xp = np.pad(x, ((0, 0), (0, 0), (pad_lo, pad_hi), (pad_lo, pad_hi)))
    fix = pad_lo + extra_pad
    w1 = np.asarray(w1, np.float32).reshape(group_in, C_in)
    w2 = np.asarray(w2, np.float32).reshape(group_in, C_in)
    w3 = np.asarray(w3, np.float32).reshape(group_in, c_out)
    ox = np.zeros((B, c_out, H_out, W_out), np.float32)
    oy = np.zeros_like(ox)
    oz = np.zeros_like(ox)
    for b in range(B):
        for o in range(c_out):
            for g in range(group_in):
                for k in range(nk):
                    c = o * nk + k
                    ws = fix + int(pad_h[g, c])
                    hs = fix + int(pad_v[g, c])
                    ox[b, o] += w1[g, c] * xp[b, c, fix:fix + H_out, ws:ws + W_out]
                    oy[b, o] += w2[g, c] * xp[b, c, hs:hs + H_out, fix:fix + W_out]
                cid = int(idx_identit[o, g])
                oz[b, o] += w3[g, o] * xp[b, cid, fix:fix + H_out, fix:fix + W_out]
    return ox, oy, oz


if __name__ == "__main__":
    big_kernel, small_kernel = 7, 3
    c_out, group_in = 4, 2
    B, H_out, W_out = 2, 16, 16

    nk = math.ceil(big_kernel / small_kernel)
    c_in = c_out * nk
    padding, real_pad = _shift((small_kernel, big_kernel))
    extra_pad = padding - small_kernel // 2
    H_in, W_in = H_out + 2 * extra_pad, W_out + 2 * extra_pad

    # Deterministic index generation mirroring shuffle_idx_2_gen_pads: within
    # each out-channel block the nk offsets real_pad[*] are randomly permuted,
    # independently per group; identity picks one absolute channel per (o, g).
    rng = np.random.RandomState(0)
    rp = np.array(real_pad, np.int64)
    pad_h = np.stack([np.concatenate([rp[rng.permutation(nk)] for _ in range(c_out)])
                      for _ in range(group_in)])              # (group_in, c_in)
    pad_v = np.stack([np.concatenate([rp[rng.permutation(nk)] for _ in range(c_out)])
                      for _ in range(group_in)])
    idx_identit = (rng.randint(0, nk, size=(c_out, group_in))
                   + np.arange(c_out)[:, None] * nk).astype(np.int64)

    key = jax.random.PRNGKey(0)
    k1, k2, k3, k4 = jax.random.split(key, 4)
    x = jax.random.normal(k1, (B, c_in, H_in, W_in), jnp.float32)
    w1 = jax.random.uniform(k2, (group_in, c_in), jnp.float32)
    w2 = jax.random.uniform(k3, (group_in, c_in), jnp.float32)
    w3 = jax.random.uniform(k4, (group_in, c_out), jnp.float32)

    outs = add_shift_mp_linear(x, pad_h, pad_v, idx_identit, w1, w2, w3,
                               extra_pad, c_out, nk, group_in, H_out, W_out)
    outs = jax.block_until_ready(outs)

    refs = reference(np.asarray(x), pad_h, pad_v, idx_identit,
                     np.asarray(w1), np.asarray(w2), np.asarray(w3),
                     extra_pad, c_out, nk, group_in, H_out, W_out)
    for got, want in zip(outs, refs):
        np.testing.assert_allclose(np.asarray(got), want, rtol=1e-5, atol=1e-5)
    print("KERNEL_OK")
</pallas_src>

<mosaic_0001>
module attributes {stable_mosaic.version = 11 : i64} {
  func.func @addshift_kernel(%arg0: i32, %arg1: memref<1x12x18x18xf32, #tpu.memory_space<vmem>>, %arg2: memref<7x12x12xf32, #tpu.memory_space<vmem>>, %arg3: memref<1x12x256xf32, #tpu.memory_space<vmem>>, %arg4: memref<12x22x22xf32, #tpu.memory_space<vmem>>) attributes {dimension_semantics = [#tpu.dimension_semantics<parallel>], iteration_bounds = array<i64: 2>, scalar_prefetch = 0 : i64, scratch_operands = 1 : i64, tpu.core_type = #tpu.core_type<tc>, window_params = [{transform_indices = @transform_0, window_bounds = array<i64: 1, 12, 18, 18>}, {pipeline_mode = #tpu.pipeline_mode<synchronous>, transform_indices = @transform_1, window_bounds = array<i64: 7, 12, 12>}, {transform_indices = @transform_2, window_bounds = array<i64: 1, 12, 256>}]} {
    %cst = arith.constant 0.000000e+00 : f32
    %0 = vector.broadcast %cst : f32 to vector<12x4x22xf32>
    %c0 = arith.constant 0 : index
    %c0_0 = arith.constant 0 : index
    %c0_1 = arith.constant 0 : index
    %1 = vector.load %arg4[%c0, %c0_0, %c0_1] : memref<12x22x22xf32, #tpu.memory_space<vmem>>, vector<12x4x22xf32>
    tpu.vector_store %arg4[%c0, %c0_0, %c0_1], %0 {strides = array<i32>} : memref<12x22x22xf32, #tpu.memory_space<vmem>>, vector<12x4x22xf32>,
    %cst_2 = arith.constant 0.000000e+00 : f32
    %2 = vector.broadcast %cst_2 : f32 to vector<12x18x4xf32>
    %c0_3 = arith.constant 0 : index
    %c4 = arith.constant 4 : index
    %c0_4 = arith.constant 0 : index
    %3 = vector.load %arg4[%c0_3, %c4, %c0_4] : memref<12x22x22xf32, #tpu.memory_space<vmem>>, vector<12x18x4xf32>
    tpu.vector_store %arg4[%c0_3, %c4, %c0_4], %2 {strides = array<i32>} : memref<12x22x22xf32, #tpu.memory_space<vmem>>, vector<12x18x4xf32>,
    %c0_5 = arith.constant 0 : index
    %c0_6 = arith.constant 0 : index
    %c0_7 = arith.constant 0 : index
    %c0_8 = arith.constant 0 : index
    %4 = vector.load %arg1[%c0_5, %c0_6, %c0_7, %c0_8] : memref<1x12x18x18xf32, #tpu.memory_space<vmem>>, vector<1x12x18x18xf32>
    %5 = vector.shape_cast %4 : vector<1x12x18x18xf32> to vector<12x18x18xf32>
    %c0_9 = arith.constant 0 : index
    %c4_10 = arith.constant 4 : index
    %c4_11 = arith.constant 4 : index
    %6 = vector.load %arg4[%c0_9, %c4_10, %c4_11] : memref<12x22x22xf32, #tpu.memory_space<vmem>>, vector<12x18x18xf32>
    tpu.vector_store %arg4[%c0_9, %c4_10, %c4_11], %5 {strides = array<i32>} : memref<12x22x22xf32, #tpu.memory_space<vmem>>, vector<12x18x18xf32>,
    %c0_12 = arith.constant 0 : index
    %c5 = arith.constant 5 : index
    %c5_13 = arith.constant 5 : index
    %7 = vector.load %arg4[%c0_12, %c5, %c5_13] : memref<12x22x22xf32, #tpu.memory_space<vmem>>, vector<12x16x16xf32>
    %8 = vector.shape_cast %7 : vector<12x16x16xf32> to vector<12x256xf32>
    %c0_14 = arith.constant 0 : index
    %c0_15 = arith.constant 0 : index
    %c0_16 = arith.constant 0 : index
    %9 = vector.load %arg2[%c0_14, %c0_15, %c0_16] : memref<7x12x12xf32, #tpu.memory_space<vmem>>, vector<1x12x12xf32>
    %10 = vector.shape_cast %9 : vector<1x12x12xf32> to vector<12x12xf32>
    %cst_17 = arith.constant dense<0.000000e+00> : vector<12x256xf32>
    %11 = tpu.matmul %10, %8, %cst_17 {dimension_numbers = #tpu.dot_dimension_numbers<[1], [0], [0], [1], [0, 0, 1, 1], [], []>} : vector<12x12xf32>, vector<12x256xf32>, vector<12x256xf32> -> vector<12x256xf32>
    %c0_18 = arith.constant 0 : index
    %c5_19 = arith.constant 5 : index
    %c0_20 = arith.constant 0 : index
    %12 = vector.load %arg4[%c0_18, %c5_19, %c0_20] : memref<12x22x22xf32, #tpu.memory_space<vmem>>, vector<12x16x16xf32>
    %13 = vector.shape_cast %12 : vector<12x16x16xf32> to vector<12x256xf32>
    %c1 = arith.constant 1 : index
    %c0_21 = arith.constant 0 : index
    %c0_22 = arith.constant 0 : index
    %14 = vector.load %arg2[%c1, %c0_21, %c0_22] : memref<7x12x12xf32, #tpu.memory_space<vmem>>, vector<1x12x12xf32>
    %15 = vector.shape_cast %14 : vector<1x12x12xf32> to vector<12x12xf32>
    %cst_23 = arith.constant dense<0.000000e+00> : vector<12x256xf32>
    %16 = tpu.matmul %15, %13, %cst_23 {dimension_numbers = #tpu.dot_dimension_numbers<[1], [0], [0], [1], [0, 0, 1, 1], [], []>} : vector<12x12xf32>, vector<12x256xf32>, vector<12x256xf32> -> vector<12x256xf32>
    %17 = arith.addf %11, %16 : vector<12x256xf32>
    %c0_24 = arith.constant 0 : index
    %c5_25 = arith.constant 5 : index
    %c3 = arith.constant 3 : index
    %18 = vector.load %arg4[%c0_24, %c5_25, %c3] : memref<12x22x22xf32, #tpu.memory_space<vmem>>, vector<12x16x16xf32>
    %19 = vector.shape_cast %18 : vector<12x16x16xf32> to vector<12x256xf32>
    %c2 = arith.constant 2 : index
    %c0_26 = arith.constant 0 : index
    %c0_27 = arith.constant 0 : index
    %20 = vector.load %arg2[%c2, %c0_26, %c0_27] : memref<7x12x12xf32, #tpu.memory_space<vmem>>, vector<1x12x12xf32>
    %21 = vector.shape_cast %20 : vector<1x12x12xf32> to vector<12x12xf32>
    %cst_28 = arith.constant dense<0.000000e+00> : vector<12x256xf32>
    %22 = tpu.matmul %21, %19, %cst_28 {dimension_numbers = #tpu.dot_dimension_numbers<[1], [0], [0], [1], [0, 0, 1, 1], [], []>} : vector<12x12xf32>, vector<12x256xf32>, vector<12x256xf32> -> vector<12x256xf32>
    %23 = arith.addf %17, %22 : vector<12x256xf32>
    %c0_29 = arith.constant 0 : index
    %c5_30 = arith.constant 5 : index
    %c6 = arith.constant 6 : index
    %24 = vector.load %arg4[%c0_29, %c5_30, %c6] : memref<12x22x22xf32, #tpu.memory_space<vmem>>, vector<12x16x16xf32>
    %25 = vector.shape_cast %24 : vector<12x16x16xf32> to vector<12x256xf32>
    %c3_31 = arith.constant 3 : index
    %c0_32 = arith.constant 0 : index
    %c0_33 = arith.constant 0 : index
    %26 = vector.load %arg2[%c3_31, %c0_32, %c0_33] : memref<7x12x12xf32, #tpu.memory_space<vmem>>, vector<1x12x12xf32>
    %27 = vector.shape_cast %26 : vector<1x12x12xf32> to vector<12x12xf32>
    %cst_34 = arith.constant dense<0.000000e+00> : vector<12x256xf32>
    %28 = tpu.matmul %27, %25, %cst_34 {dimension_numbers = #tpu.dot_dimension_numbers<[1], [0], [0], [1], [0, 0, 1, 1], [], []>} : vector<12x12xf32>, vector<12x256xf32>, vector<12x256xf32> -> vector<12x256xf32>
    %29 = arith.addf %23, %28 : vector<12x256xf32>
    %c0_35 = arith.constant 0 : index
    %c0_36 = arith.constant 0 : index
    %c5_37 = arith.constant 5 : index
    %30 = vector.load %arg4[%c0_35, %c0_36, %c5_37] : memref<12x22x22xf32, #tpu.memory_space<vmem>>, vector<12x16x16xf32>
    %31 = vector.shape_cast %30 : vector<12x16x16xf32> to vector<12x256xf32>
    %c4_38 = arith.constant 4 : index
    %c0_39 = arith.constant 0 : index
    %c0_40 = arith.constant 0 : index
    %32 = vector.load %arg2[%c4_38, %c0_39, %c0_40] : memref<7x12x12xf32, #tpu.memory_space<vmem>>, vector<1x12x12xf32>
    %33 = vector.shape_cast %32 : vector<1x12x12xf32> to vector<12x12xf32>
    %cst_41 = arith.constant dense<0.000000e+00> : vector<12x256xf32>
    %34 = tpu.matmul %33, %31, %cst_41 {dimension_numbers = #tpu.dot_dimension_numbers<[1], [0], [0], [1], [0, 0, 1, 1], [], []>} : vector<12x12xf32>, vector<12x256xf32>, vector<12x256xf32> -> vector<12x256xf32>
    %35 = arith.addf %29, %34 : vector<12x256xf32>
    %c0_42 = arith.constant 0 : index
    %c3_43 = arith.constant 3 : index
    %c5_44 = arith.constant 5 : index
    %36 = vector.load %arg4[%c0_42, %c3_43, %c5_44] : memref<12x22x22xf32, #tpu.memory_space<vmem>>, vector<12x16x16xf32>
    %37 = vector.shape_cast %36 : vector<12x16x16xf32> to vector<12x256xf32>
    %c5_45 = arith.constant 5 : index
    %c0_46 = arith.constant 0 : index
    %c0_47 = arith.constant 0 : index
    %38 = vector.load %arg2[%c5_45, %c0_46, %c0_47] : memref<7x12x12xf32, #tpu.memory_space<vmem>>, vector<1x12x12xf32>
    %39 = vector.shape_cast %38 : vector<1x12x12xf32> to vector<12x12xf32>
    %cst_48 = arith.constant dense<0.000000e+00> : vector<12x256xf32>
    %40 = tpu.matmul %39, %37, %cst_48 {dimension_numbers = #tpu.dot_dimension_numbers<[1], [0], [0], [1], [0, 0, 1, 1], [], []>} : vector<12x12xf32>, vector<12x256xf32>, vector<12x256xf32> -> vector<12x256xf32>
    %41 = arith.addf %35, %40 : vector<12x256xf32>
    %c0_49 = arith.constant 0 : index
    %c6_50 = arith.constant 6 : index
    %c5_51 = arith.constant 5 : index
    %42 = vector.load %arg4[%c0_49, %c6_50, %c5_51] : memref<12x22x22xf32, #tpu.memory_space<vmem>>, vector<12x16x16xf32>
    %43 = vector.shape_cast %42 : vector<12x16x16xf32> to vector<12x256xf32>
    %c6_52 = arith.constant 6 : index
    %c0_53 = arith.constant 0 : index
    %c0_54 = arith.constant 0 : index
    %44 = vector.load %arg2[%c6_52, %c0_53, %c0_54] : memref<7x12x12xf32, #tpu.memory_space<vmem>>, vector<1x12x12xf32>
    %45 = vector.shape_cast %44 : vector<1x12x12xf32> to vector<12x12xf32>
    %cst_55 = arith.constant dense<0.000000e+00> : vector<12x256xf32>
    %46 = tpu.matmul %45, %43, %cst_55 {dimension_numbers = #tpu.dot_dimension_numbers<[1], [0], [0], [1], [0, 0, 1, 1], [], []>} : vector<12x12xf32>, vector<12x256xf32>, vector<12x256xf32> -> vector<12x256xf32>
    %47 = arith.addf %41, %46 : vector<12x256xf32>
    %c0_56 = arith.constant 0 : index
    %c0_57 = arith.constant 0 : index
    %c0_58 = arith.constant 0 : index
    %48 = vector.load %arg3[%c0_56, %c0_57, %c0_58] : memref<1x12x256xf32, #tpu.memory_space<vmem>>, vector<1x12x256xf32>
    %49 = vector.shape_cast %48 : vector<1x12x256xf32> to vector<12x256xf32>
    %50 = vector.shape_cast %47 : vector<12x256xf32> to vector<1x12x256xf32>
    tpu.vector_store %arg3[%c0_56, %c0_57, %c0_58], %50 {strides = array<i32>} : memref<1x12x256xf32, #tpu.memory_space<vmem>>, vector<1x12x256xf32>,
    return
  }
  func.func @transform_0(%arg0: i32) -> (i32, i32, i32, i32) {
    %c0_i32 = arith.constant 0 : i32
    %c0_i32_0 = arith.constant 0 : i32
    %c0_i32_1 = arith.constant 0 : i32
    %c0_i32_2 = arith.constant 0 : i32
    return %arg0, %c0_i32, %c0_i32_0, %c0_i32_1 : i32, i32, i32, i32
  }
  func.func @transform_1(%arg0: i32) -> (i32, i32, i32) {
    %c0_i32 = arith.constant 0 : i32
    %c0_i32_0 = arith.constant 0 : i32
    %c0_i32_1 = arith.constant 0 : i32
    %c0_i32_2 = arith.constant 0 : i32
    return %c0_i32, %c0_i32_0, %c0_i32_1 : i32, i32, i32
  }
  func.func @transform_2(%arg0: i32) -> (i32, i32, i32) {
    %c0_i32 = arith.constant 0 : i32
    %c0_i32_0 = arith.constant 0 : i32
    %c0_i32_1 = arith.constant 0 : i32
    return %arg0, %c0_i32, %c0_i32_0 : i32, i32, i32
  }
}

</mosaic_0001>

<bundles_post_ra>
// kernel: tpu_custom_call.1
= control target key start
LH: loop header
LB: loop body
LE: loop exit
PB: predicated region body
PF: predicated region fallthrough
CT: control target
= control target key end

     0   :  { %7 = vsyncpa [#allocation4], 0  ;;  %s9119_s0 = inlined_call_operand.hbm [shape: f32[2,12,18,18], index: 0, kind: input, shape index: {}]   ;;  %s9120_s1 = inlined_call_operand.hbm [shape: f32[7,12,12], index: 1, kind: input, shape index: {}]   ;;  %s9121_s2 = inlined_call_operand.hbm [shape: f32[2,12,256], index: 2, kind: output, shape index: {}]  }
   0x1   :  { %9 = vsyncpa [#allocation4 + $0x1], 0 }
   0x2   :  { %10 = vsyncpa [#allocation7], 0 }
   0x3   :  { %11 = vsyncpa [#allocation5], 0 }
   0x4   :  { %13 = vsyncpa [#allocation5 + $0x1], 0  ;;  %s6619_s9 = smov 0   ;;  %s6621_s10 = smov 0  }
   0x5   :  { %s6623_s11 = smov 0   ;;  %s6625_s12 = smov 0  }
   0x6 LB: > { %s6640_s13 = sadd.s32 4294967295, %s6581_s12   ;;  %s5775_s14 = sadd.s32 4294967294, %s6581_s12   ;;  %s6581_s12 = sphi %s6625_s12, %s9154_s12   ;;  %s6577_s11 = sphi %s6623_s11, %s9153_s11   ;;  %s6573_s10 = sphi %s6621_s10, %s9152_s10   ;;  %s6569_s9 = sphi %s6619_s9, %s9151_s9  }
   0x7   : > { %p39_p0 = scmp.ne.s32.totalorder %s6573_s10, %s6569_s9  ;;  %p9122_p1 = scmp.eq.s32.totalorder %s6640_s13, 0 }
   0x8   : > { %p90_p3 = scmp.eq.s32.totalorder %s5775_s14, 1  ;;  %p5776_p5 = scmp.ge.s32.totalorder %s6581_s12, 1 }
   0x9   : > { %p6649_p4 = por %p9122_p1, %p39_p0  ;;  %p97_p7 = scmp.lt.s32.totalorder %s6581_s12, 3 }
   0xa   : > { %p6654_p6 = por %p90_p3, %p39_p0  ;;  %s6583_s18 = smov [#allocation6]  }
   0xb   : > { %s9126_s15 = scalar_select %p6649_p4, 1, 0 }
   0xc   : > { %s9127_s16 = scalar_select %p6654_p6, 1, 0 }
   0xd   : > { %p6659_p8 = pnand %p5776_p5, %p97_p7  ;;  %s109_s19 = sshll.u32 %s6583_s18, 4  ;;  %s6663_s19 = int_to_ptr.vmem [resolvable:$true] %s109_s19 }
   0xe   : > { %s6675_s21 = sadd.s32 1, %s6581_s12   ;;  %s26_s22 = sadd.s32 1, %s6577_s11 }
   0xf   : > { %s9128_s17 = scalar_select %p6659_p8, 1, 0 }
  0x10   : > { %p5896_p9 = pneg %p6659_p8  ;;  %s23_s23 = ssub.s32 %s6581_s12, %s6675_s21 }
  0x11   : > { %s6453_s26 = scalar_lea.hbm %s9120_s1, 1792 }
  0x12   : > { %p6670_p11 = pnand %p5896_p9, %p9122_p1  ;;  %p6454_p12 = scmp.ne.s32.totalorder %s9120_s1, %s6453_s26 }
  0x13   : > { %p6460_p5 = scmp.lt.u32.totalorder %s6453_s26, %s9120_s1 }
  0x14   : > { %p6455_p13 = pneg %p6670_p11 }
  0x16   : > { %p6456_p0 = pnand %p6455_p13, %p6454_p12 }
  0x18   : > { %p6457_p3 = pneg %p6456_p0 }
  0x1a   : > { %p6462_p7 = pnand %p6460_p5, %p6457_p3 }
  0x1c   : > { %6465 = shalt.err (!%p6462_p7)
}
  0x1d   : > { %s6466_s3 = scalar_lea.vmem %s6663_s19, 1792  ;;  %p6474_p2 = scmp.lt.s32.totalorder %s6663_s19, %s6663_s19 }
  0x1e   : > { %p6467_p9 = scmp.ne.s32.totalorder %s6663_s19, %s6466_s3  ;;  %p6475_p6 = scmp.lt.s32.totalorder %s6466_s3, %s6466_s3 }
  0x20   : > { %p6469_p10 = pnand %p6467_p9, %p6455_p13  ;;  %p6476_p4 = por %p6475_p6, %p6474_p2 }
  0x22   : > { %p6470_p1 = pneg %p6469_p10 }
  0x24   : > { %p6477_p8 = pnand %p6476_p4, %p6470_p1 }
  0x26   : > { %6480 = shalt.err (!%p6477_p8)
}
  0x27   : > { %s6584_s4 = smov 128   ;;  %s6585_s5 = smov 8  }
  0x28   : > { %5899 = dma.hbm_to_vmem [thread:$0]  (!%p6670_p11), %s9120_s1, 1792, %s6663_s19, [#allocation7], %s6584_s4, %s6584_s4, %s6585_s5  }
  0x29   : > { %p24_p1 = scmp.eq.s32.totalorder %s23_s23, 0  ;;  %p33_p2 = scmp.ne.s32.totalorder %s6577_s11, %s6573_s10 }
  0x2a   : > { %p34_p4 = scmp.eq.s32.totalorder %s6581_s12, 0  ;;  %p5909_p6 = scmp.lt.s32.totalorder %s6581_s12, 2 }
  0x2b   : > { %s6709_s8 = scalar_select %p24_p1, %s6577_s11, %s26_s22  }
  0x2c   : > { %p35_p8 = por %p34_p4, %p33_p2  ;;  %p9130_p10 = scmp.eq.s32.totalorder %s6640_s13, 1 }
  0x2d   : > { %s123_s18 = sand.u32 1, %s6577_s11   ;;  %s5886_s20 = smul.u32 4608, %s6581_s12 }
  0x2e   : > { %p6713_p12 = por %p9130_p10, %p33_p2  ;;  %s5885_s24 = smul.u32 288, %s123_s18 }
  0x2f   : > { %p6719_p13 = pnand %p5909_p6, %p35_p8  ;;  %s6726_s22 = scalar_lea.hbm %s9119_s0, %s5886_s20 }
  0x30   : > { %s127_s26 = scalar_lea.vmem [#allocation3], %s5885_s24  ;;  %s6730_s28 = scalar_lea.sflag [#allocation4], %s123_s18 }
  0x31   : > { %s134_s27 = sshll.u32 %s127_s26, 4  ;;  %s6481_s29 = scalar_lea.hbm %s6726_s22, 4608  ;;  %s6728_s27 = int_to_ptr.vmem [resolvable:$true] %s134_s27 }
  0x32   : > { %p6482_p11 = scmp.ne.s32.totalorder %s6726_s22, %s6481_s29  ;;  %p6483_p0 = pneg %p6719_p13 }
  0x33   : > { %s6486_s6 = scalar_lea.hbm %s9119_s0, 9216  ;;  %p6487_p7 = scmp.lt.u32.totalorder %s6726_s22, %s9119_s0 }
  0x34   : > { %p6484_p3 = pnand %p6483_p0, %p6482_p11  ;;  %p6488_p9 = scmp.lt.u32.totalorder %s6486_s6, %s6481_s29 }
  0x35   : > { %p6490_p2 = scmp.lt.u32.totalorder %s6481_s29, %s6726_s22 }
  0x36   : > { %p6485_p5 = pneg %p6484_p3  ;;  %p6489_p1 = por %p6488_p9, %p6487_p7 }
  0x38   : > { %p6491_p4 = por %p6490_p2, %p6489_p1 }
  0x3a   : > { %p6492_p6 = pnand %p6491_p4, %p6485_p5 }
  0x3c   : > { %6495 = shalt.err (!%p6492_p6)
}
  0x3d   : > { %s6496_s18 = scalar_lea.vmem %s6728_s27, 4608  ;;  %s6586_s24 = smov [#allocation3]  }
  0x3e   : > { %p6497_p8 = scmp.ne.s32.totalorder %s6728_s27, %s6496_s18  ;;  %s6501_s19 = sshll.u32 %s6586_s24, 4  ;;  %s6502_s19 = int_to_ptr.vmem [resolvable:$false] %s6501_s19 }
  0x3f   : > { %s6503_s23 = scalar_lea.vmem %s6502_s19, 9216  ;;  %p6504_p3 = scmp.lt.s32.totalorder %s6728_s27, %s6502_s19 }
  0x40   : > { %p6499_p10 = pnand %p6497_p8, %p6483_p0  ;;  %p6505_p7 = scmp.lt.s32.totalorder %s6503_s23, %s6496_s18 }
  0x42   : > { %p6500_p11 = pneg %p6499_p10  ;;  %p6506_p9 = por %p6505_p7, %p6504_p3 }
  0x44   : > { %p6507_p1 = pnand %p6506_p9, %p6500_p11 }
  0x46   : > { %6510 = shalt.err (!%p6507_p1)
}
  0x47   : > { %5903 = dma.hbm_to_vmem [thread:$0]  (!%p6719_p13), %s6726_s22, 4608, %s6728_s27, %s6730_s28, %s6584_s4, %s6584_s4, %s6585_s5  }
  0x48   : > { %p9133_p0 = scmp.ne.s32.totalorder %s9128_s17, 0 }
  0x4a   : > { %146 = sbr.rel (%p9133_p0) target bundleno = 1210 (0x4ba), region = 28 }
  0x51   : > { %s6764_s26 = sand.u32 1, %s6573_s10   ;;  %p9134_p5 = scmp.ne.s32.totalorder %s9126_s15, 0 }
  0x52   : > { %s5887_s29 = smul.u32 288, %s6764_s26  ;;  %s149_s30 = scalar_lea.sflag [#allocation4], %s6764_s26 }
  0x54   : > { %s6768_s3 = scalar_lea.vmem [#allocation3], %s5887_s29 }
  0x55   : > { %6556 = dma.done.wait (%p9134_p5), %s149_s30, 4608  }
  0x56   : > { %6558 = vsyncadd (%p9134_p5), %s149_s30, 4294962688  ;;  %p9135_p13 = scmp.eq.s32.totalorder %s6640_s13, 0 }
  0x58   : > { %6560 = dma.done.wait (%p9135_p13), [#allocation7], 1792   ;;  %p9136_p2 = pmov %p9135_p13 }
  0x59   : > { %vm193_vm0 = vcmask 25600   ;;  %v6587_v0 = vmov 0.0   ;;  %vm190_vm1 = vcmask 31744   ;;  %vm177_vm2 = vcmask 175104   ;;  %v230_v1 = vld [vmem:[%s6768_s3 + $0x10] sm:$0x3] }
  0x5a   : > { %6562 = vsyncadd (%p9136_p2), [#allocation7], 4294965504  ;;  %194 = vst.msk [vmem:[#allocation2 + $0x14] sm:$0x3] %vm193_vm0, %v6587_v0  ;;  %1752 = vmatprep.mubr.f32.mxu1 %v6587_v0  ;;  %3365 = vmatprep.mubr.f32.mxu0 %v6587_v0  ;;  %v228_v2 = vld [vmem:[%s6768_s3] sm:$0xff]  ;;  %s6588_s15 = smov 4  }
  0x5b   : > { %197 = vst.msk [vmem:[#allocation2 + $0x2c] sm:$0x3] %vm193_vm0, %v6587_v0  ;;  %200 = vst.msk [vmem:[#allocation2 + $0x44] sm:$0x3] %vm193_vm0, %v6587_v0  ;;  %304 = vrot.lane.b32.xlu1 %v230_v1, %s6588_s15  ;;  %300 = vrot.lane.b32.xlu0 %v228_v2, %s6588_s15  ;;  %v231_v3 = vld [vmem:[%s6768_s3 + $0x18] sm:$0xff]  ;;  %v229_v4 = vld [vmem:[%s6768_s3 + $0x8] sm:$0xff] }
  0x5c   : > { %203 = vst.msk [vmem:[#allocation2 + $0x5c] sm:$0x3] %vm193_vm0, %v6587_v0  ;;  %206 = vst.msk [vmem:[#allocation2 + $0x74] sm:$0x3] %vm193_vm0, %v6587_v0  ;;  %v233_v5 = vld [vmem:[%s6768_s3 + $0x28] sm:$0x3] }
  0x5d   : > { %209 = vst.msk [vmem:[#allocation2 + $0x8c] sm:$0x3] %vm193_vm0, %v6587_v0  ;;  %212 = vst.msk [vmem:[#allocation2 + $0xa4] sm:$0x3] %vm193_vm0, %v6587_v0  ;;  %v232_v6 = vld [vmem:[%s6768_s3 + $0x20] sm:$0xff]  ;;  %v235_v7 = vld [vmem:[%s6768_s3 + $0x38] sm:$0xff] }
  0x5e   : > { %215 = vst.msk [vmem:[#allocation2 + $0xbc] sm:$0x3] %vm193_vm0, %v6587_v0  ;;  %218 = vst.msk [vmem:[#allocation2 + $0xd4] sm:$0x3] %vm193_vm0, %v6587_v0  ;;  %v234_v8 = vld [vmem:[%s6768_s3 + $0x30] sm:$0xff]  ;;  %v237_v9 = vld [vmem:[%s6768_s3 + $0x48] sm:$0xff] }
  0x5f   : > { %221 = vst.msk [vmem:[#allocation2 + $0xec] sm:$0x3] %vm193_vm0, %v6587_v0  ;;  %224 = vst.msk [vmem:[#allocation2 + $0x104] sm:$0x3] %vm193_vm0, %v6587_v0  ;;  %306 = vrot.lane.b32.xlu1 %v231_v3, %s6588_s15  ;;  %302 = vrot.lane.b32.xlu0 %v229_v4, %s6588_s15  ;;  %v236_v10 = vld [vmem:[%s6768_s3 + $0x40] sm:$0x3] }
  0x60   : > { %227 = vst.msk [vmem:[#allocation2 + $0x11c] sm:$0x3] %vm193_vm0, %v6587_v0  ;;  %v239_v11 = vld [vmem:[%s6768_s3 + $0x58] sm:$0x3]  ;;  %v238_v12 = vld [vmem:[%s6768_s3 + $0x50] sm:$0xff]  ;;  %v241_v13 = vld [vmem:[%s6768_s3 + $0x68] sm:$0xff] }
  0x61   : > { %191 = vst.msk [vmem:[#allocation2 + $0x4] sm:$0xff] %vm190_vm1, %v6587_v0  ;;  %192 = vst.msk [vmem:[#allocation2 + $0xc] sm:$0xff] %vm190_vm1, %v6587_v0  ;;  %v240_v14 = vld [vmem:[%s6768_s3 + $0x60] sm:$0xff]  ;;  %v243_v15 = vld [vmem:[%s6768_s3 + $0x78] sm:$0xff]  ;;  %vm411_vm3 = vcmask 173088   ;;  %vm408_vm4 = vcmask 179232  }
  0x62   : > { %195 = vst.msk [vmem:[#allocation2 + $0x1c] sm:$0xff] %vm190_vm1, %v6587_v0  ;;  %196 = vst.msk [vmem:[#allocation2 + $0x24] sm:$0xff] %vm190_vm1, %v6587_v0  ;;  %v242_v16 = vld [vmem:[%s6768_s3 + $0x70] sm:$0x3]  ;;  %v245_v17 = vld [vmem:[%s6768_s3 + $0x88] sm:$0x3] }
  0x63   : > { %198 = vst.msk [vmem:[#allocation2 + $0x34] sm:$0xff] %vm190_vm1, %v6587_v0  ;;  %199 = vst.msk [vmem:[#allocation2 + $0x3c] sm:$0xff] %vm190_vm1, %v6587_v0  ;;  %310 = vrot.lane.b32.xlu1 %v233_v5, %s6588_s15  ;;  %308 = vrot.lane.b32.xlu0 %v232_v6, %s6588_s15  ;;  %v244_v18 = vld [vmem:[%s6768_s3 + $0x80] sm:$0xff]  ;;  %v247_v19 = vld [vmem:[%s6768_s3 + $0x98] sm:$0xff]  ;;  %s6589_s17 = smov 123   ;;  %s6592_s4 = smov 32  }
  0x64   : > { %201 = vst.msk [vmem:[#allocation2 + $0x4c] sm:$0xff] %vm190_vm1, %v6587_v0  ;;  %202 = vst.msk [vmem:[#allocation2 + $0x54] sm:$0xff] %vm190_vm1, %v6587_v0  ;;  %v246_v20 = vld [vmem:[%s6768_s3 + $0x90] sm:$0xff]  ;;  %v249_v21 = vld [vmem:[%s6768_s3 + $0xa8] sm:$0xff]  ;;  %s6593_s5 = smov 16   ;;  %s6594_s25 = smov 64  }
  0x65   : > { %204 = vst.msk [vmem:[#allocation2 + $0x64] sm:$0xff] %vm190_vm1, %v6587_v0  ;;  %205 = vst.msk [vmem:[#allocation2 + $0x6c] sm:$0xff] %vm190_vm1, %v6587_v0  ;;  %v248_v22 = vld [vmem:[%s6768_s3 + $0xa0] sm:$0x3]  ;;  %v251_v23 = vld [vmem:[%s6768_s3 + $0xb8] sm:$0x3] }
  0x66   : > { %207 = vst.msk [vmem:[#allocation2 + $0x7c] sm:$0xff] %vm190_vm1, %v6587_v0  ;;  %208 = vst.msk [vmem:[#allocation2 + $0x84] sm:$0xff] %vm190_vm1, %v6587_v0  ;;  %v250_v24 = vld [vmem:[%s6768_s3 + $0xb0] sm:$0xff]  ;;  %v253_v25 = vld [vmem:[%s6768_s3 + $0xc8] sm:$0xff]  ;;  %s6595_s22 = smov 48   ;;  %s6596_s27 = smov 96  }
  0x67   : > { %210 = vst.msk [vmem:[#allocation2 + $0x94] sm:$0xff] %vm190_vm1, %v6587_v0  ;;  %211 = vst.msk [vmem:[#allocation2 + $0x9c] sm:$0xff] %vm190_vm1, %v6587_v0  ;;  %314 = vrot.lane.b32.xlu1 %v235_v7, %s6588_s15  ;;  %312 = vrot.lane.b32.xlu0 %v234_v8, %s6588_s15  ;;  %v252_v26 = vld [vmem:[%s6768_s3 + $0xc0] sm:$0xff]  ;;  %v255_v27 = vld [vmem:[%s6768_s3 + $0xd8] sm:$0xff]  ;;  %v6590_v8 = vmov 1983009808  }
  0x68   : > { %213 = vst.msk [vmem:[#allocation2 + $0xac] sm:$0xff] %vm190_vm1, %v6587_v0  ;;  %214 = vst.msk [vmem:[#allocation2 + $0xb4] sm:$0xff] %vm190_vm1, %v6587_v0  ;;  %v254_v28 = vld [vmem:[%s6768_s3 + $0xd0] sm:$0x3]  ;;  %v257_v29 = vld [vmem:[%s6768_s3 + $0xe8] sm:$0x3] }
  0x69   : > { %216 = vst.msk [vmem:[#allocation2 + $0xc4] sm:$0xff] %vm190_vm1, %v6587_v0  ;;  %217 = vst.msk [vmem:[#allocation2 + $0xcc] sm:$0xff] %vm190_vm1, %v6587_v0  ;;  %v256_v30 = vld [vmem:[%s6768_s3 + $0xe0] sm:$0xff]  ;;  %v259_v31 = vld [vmem:[%s6768_s3 + $0xf8] sm:$0xff]  ;;  %s6597_s28 = smov 80   ;;  %s6598_s6 = smov 112  }
  0x6a   : > { %219 = vst.msk [vmem:[#allocation2 + $0xdc] sm:$0xff] %vm190_vm1, %v6587_v0  ;;  %220 = vst.msk [vmem:[#allocation2 + $0xe4] sm:$0xff] %vm190_vm1, %v6587_v0  ;;  %v258_v32 = vld [vmem:[%s6768_s3 + $0xf0] sm:$0xff]  ;;  %v261_v33 = vld [vmem:[%s6768_s3 + $0x108] sm:$0xff]  ;;  %s6599_s7 = smov 125   ;;  %s6600_s20 = smov 122  }
  0x6b   : > { %222 = vst.msk [vmem:[#allocation2 + $0xf4] sm:$0xff] %vm190_vm1, %v6587_v0  ;;  %223 = vst.msk [vmem:[#allocation2 + $0xfc] sm:$0xff] %vm190_vm1, %v6587_v0  ;;  %318 = vrot.lane.b32.xlu1 %v237_v9, %s6588_s15  ;;  %316 = vrot.lane.b32.xlu0 %v236_v10, %s6588_s15  ;;  %v260_v34 = vld [vmem:[%s6768_s3 + $0x100] sm:$0x3]  ;;  %v263_v35 = vld [vmem:[%s6768_s3 + $0x118] sm:$0x3]  ;;  %v569_v9 = vunpack.c.l.s4 %v6590_v8  ;;  %v571_v10 = vlaneseq }
  0x6c   : > { %225 = vst.msk [vmem:[#allocation2 + $0x10c] sm:$0xff] %vm190_vm1, %v6587_v0  ;;  %226 = vst.msk [vmem:[#allocation2 + $0x114] sm:$0xff] %vm190_vm1, %v6587_v0  ;;  %v262_v36 = vld [vmem:[%s6768_s3 + $0x110] sm:$0xff]  ;;  %vm1086_vm5 = vcmask 130048   ;;  %vm1089_vm6 = vcmask 261120   ;;  %vm1092_vm7 = vcmask 392192  }
  0x6d   : > { %179 = vst.msk [vmem:[#allocation2 + $0x18] sm:$0xf] %vm177_vm2, %v6587_v0  ;;  %178 = vst.msk [vmem:[#allocation2] sm:$0xf] %vm177_vm2, %v6587_v0  ;;  %vm1095_vm8 = vcmask 523264   ;;  %vm1098_vm9 = vcmask 654336  }
  0x6e   : > { %180 = vst.msk [vmem:[#allocation2 + $0x30] sm:$0xf] %vm177_vm2, %v6587_v0  ;;  %181 = vst.msk [vmem:[#allocation2 + $0x48] sm:$0xf] %vm177_vm2, %v6587_v0  ;;  %vm1101_vm10 = vcmask 785408   ;;  %vm1104_vm11 = vcmask 916480  }
  0x6f   : > { %182 = vst.msk [vmem:[#allocation2 + $0x60] sm:$0xf] %vm177_vm2, %v6587_v0  ;;  %183 = vst.msk [vmem:[#allocation2 + $0x78] sm:$0xf] %vm177_vm2, %v6587_v0  ;;  %322 = vrot.lane.b32.xlu1 %v239_v11, %s6588_s15  ;;  %320 = vrot.lane.b32.xlu0 %v238_v12, %s6588_s15  ;;  %vm1681_vm12 = vcmask 1043456   ;;  %vm6601_vm13 = vmmov 1  }
  0x70   : > { %184 = vst.msk [vmem:[#allocation2 + $0x90] sm:$0xf] %vm177_vm2, %v6587_v0  ;;  %185 = vst.msk [vmem:[#allocation2 + $0xa8] sm:$0xf] %vm177_vm2, %v6587_v0  ;;  %vm1674_vm15 = vcmask 97280   ;;  %s5782_s18 = sshll.u32 %s6764_s26, 5 }
  0x71   : > { %186 = vst.msk [vmem:[#allocation2 + $0xc0] sm:$0xf] %vm177_vm2, %v6587_v0  ;;  %187 = vst.msk [vmem:[#allocation2 + $0xd8] sm:$0xf] %vm177_vm2, %v6587_v0  ;;  %s176_s24 = scalar_lea.vmem [#allocation8], %s5782_s18  ;;  %s5816_s23 = sshll.u32 %s6640_s13, 9 }
  0x72   : > { %188 = vst.msk [vmem:[#allocation2 + $0xf0] sm:$0xf] %vm177_vm2, %v6587_v0  ;;  %189 = vst.msk [vmem:[#allocation2 + $0x108] sm:$0xf] %vm177_vm2, %v6587_v0  ;;  %s5692_s19 = sshll.u32 %s176_s24, 4  ;;  %s9074_s3 = scalar_lea.hbm %s9121_s2, %s5816_s23  ;;  %s9069_s19 = int_to_ptr.vmem [resolvable:$true] %s5692_s19 }
  0x73   : > { %326 = vrot.lane.b32.xlu1 %v241_v13, %s6588_s15  ;;  %324 = vrot.lane.b32.xlu0 %v240_v14, %s6588_s15  ;;  %v570_v14 = vunpack.c.0.s8 %v569_v9  ;;  %vm7541_vm14 = vmpackc.low %vm1681_vm12, %vm6601_vm13  ;;  %s6602_s13 = smov [#allocation8]  }
  0x77   : > { %330 = vrot.lane.b32.xlu1 %v243_v15, %s6588_s15  ;;  %328 = vrot.lane.b32.xlu0 %v242_v16, %s6588_s15  ;;  %v572_v15 = vshrl.u32 %v571_v10, 7  ;;  %v6591_v16 = vmov 1934713408  }
  0x7b   : > { %334 = vrot.lane.b32.xlu1 %v245_v17, %s6588_s15  ;;  %332 = vrot.lane.b32.xlu0 %v244_v18, %s6588_s15  ;;  %v633_v17 = vunpack.c.l.s4 %v6591_v16 }
  0x7f   : > { %338 = vrot.lane.b32.xlu1 %v247_v19, %s6588_s15  ;;  %336 = vrot.lane.b32.xlu0 %v246_v20, %s6588_s15 }
  0x83   : > { %342 = vrot.lane.b32.xlu1 %v249_v21, %s6588_s15  ;;  %340 = vrot.lane.b32.xlu0 %v248_v22, %s6588_s15 }
  0x87   : > { %346 = vrot.lane.b32.xlu1 %v251_v23, %s6588_s15  ;;  %344 = vrot.lane.b32.xlu0 %v250_v24, %s6588_s15  ;;  %v7018_v23 = vsub.s32 %v570_v14, %v572_v15 }
  0x8b   : > { %350 = vrot.lane.b32.xlu1 %v253_v25, %s6588_s15  ;;  %348 = vrot.lane.b32.xlu0 %v252_v26, %s6588_s15  ;;  %v634_v26 = vunpack.c.0.s8 %v633_v17 }
  0x8f   : > { %354 = vrot.lane.b32.xlu1 %v255_v27, %s6588_s15  ;;  %352 = vrot.lane.b32.xlu0 %v254_v28, %s6588_s15 }
  0x93   : > { %358 = vrot.lane.b32.xlu1 %v257_v29, %s6588_s15  ;;  %356 = vrot.lane.b32.xlu0 %v256_v30, %s6588_s15 }
  0x97   : > { %362 = vrot.lane.b32.xlu1 %v259_v31, %s6588_s15  ;;  %360 = vrot.lane.b32.xlu0 %v258_v32, %s6588_s15 }
  0x9b   : > { %366 = vrot.lane.b32.xlu1 %v261_v33, %s6588_s15  ;;  %364 = vrot.lane.b32.xlu0 %v260_v34, %s6588_s15 }
  0x9f   : > { %370 = vrot.lane.b32.xlu1 %v263_v35, %s6588_s15  ;;  %368 = vrot.lane.b32.xlu0 %v262_v36, %s6588_s15  ;;  %s5679_s15 = scalar_lea.sflag [#allocation5], %s6764_s26 }
  0xcd   : > { %v305_v37 = vpop.permute.xlu1 %304  ;;  %v301_v38 = vpop.permute.xlu0 %300 }
  0xce   : > { %412 = vst.msk [vmem:[#allocation2 + $0x14] sm:$0x3] %vm411_vm3, %v305_v37 }
  0xcf   : > { %409 = vst.msk [vmem:[#allocation2 + $0x4] sm:$0xff] %vm408_vm4, %v301_v38 }
  0xd1   : > { %v307_v39 = vpop.permute.xlu1 %306  ;;  %v303_v40 = vpop.permute.xlu0 %302 }
  0xd2   : > { %413 = vst.msk [vmem:[#allocation2 + $0x1c] sm:$0xff] %vm408_vm4, %v307_v39  ;;  %410 = vst.msk [vmem:[#allocation2 + $0xc] sm:$0xff] %vm408_vm4, %v303_v40  ;;  %v7058_v39 = vsub.s32 %v634_v26, %v572_v15 }
  0xd5   : > { %v311_v41 = vpop.permute.xlu1 %310  ;;  %v309_v42 = vpop.permute.xlu0 %308 }
  0xd6   : > { %415 = vst.msk [vmem:[#allocation2 + $0x2c] sm:$0x3] %vm411_vm3, %v311_v41 }
  0xd7   : > { %414 = vst.msk [vmem:[#allocation2 + $0x24] sm:$0xff] %vm408_vm4, %v309_v42 }
  0xd9   : > { %v315_v43 = vpop.permute.xlu1 %314  ;;  %v313_v44 = vpop.permute.xlu0 %312  ;;  %v6942_v45 = vld [vmem:[#allocation2 + $0xd] sm:$0xff]  ;;  %v6944_v46 = vld [vmem:[#allocation2 + $0x5] sm:$0xff] }
  0xda   : > { %417 = vst.msk [vmem:[#allocation2 + $0x3c] sm:$0xff] %vm408_vm4, %v315_v43  ;;  %416 = vst.msk [vmem:[#allocation2 + $0x34] sm:$0xff] %vm408_vm4, %v313_v44  ;;  %496 = vrot.lane.b32.xlu1 %v6942_v45, %s6589_s17  ;;  %494 = vrot.lane.b32.xlu0 %v6944_v46, %s6589_s17 }
  0xdd   : > { %v319_v47 = vpop.permute.xlu1 %318  ;;  %v317_v48 = vpop.permute.xlu0 %316 }
  0xde   : > { %v6952_v49 = vld [vmem:[#allocation2 + $0x25] sm:$0xff]  ;;  %v6954_v50 = vld [vmem:[#allocation2 + $0x1d] sm:$0xff]  ;;  %419 = vst.msk [vmem:[#allocation2 + $0x4c] sm:$0xff] %vm408_vm4, %v319_v47 }
  0xdf   : > { %418 = vst.msk [vmem:[#allocation2 + $0x44] sm:$0x3] %vm411_vm3, %v317_v48  ;;  %500 = vrot.lane.b32.xlu1 %v6952_v49, %s6589_s17  ;;  %498 = vrot.lane.b32.xlu0 %v6954_v50, %s6589_s17 }
  0xe1   : > { %v323_v51 = vpop.permute.xlu1 %322  ;;  %v321_v52 = vpop.permute.xlu0 %320  ;;  %v6962_v53 = vld [vmem:[#allocation2 + $0x35] sm:$0xff] }
  0xe2   : > { %421 = vst.msk [vmem:[#allocation2 + $0x5c] sm:$0x3] %vm411_vm3, %v323_v51  ;;  %v1123_v25 = vcombine.low %v6944_v46, %v6962_v53 }
  0xe3   : > { %420 = vst.msk [vmem:[#allocation2 + $0x54] sm:$0xff] %vm408_vm4, %v321_v52  ;;  %502 = vrot.lane.b32.xlu0 %v6962_v53, %s6589_s17 }
  0xe4   : > { %v7054_v38 = vrot.slane %v1123_v25, %v7018_v23 }
  0xe5   : > { %v327_v54 = vpop.permute.xlu1 %326  ;;  %v325_v55 = vpop.permute.xlu0 %324 }
  0xe6   : > { %v6968_v56 = vld [vmem:[#allocation2 + $0x3d] sm:$0xff]  ;;  %423 = vst.msk [vmem:[#allocation2 + $0x6c] sm:$0xff] %vm408_vm4, %v327_v54  ;;  %422 = vst.msk [vmem:[#allocation2 + $0x64] sm:$0xff] %vm408_vm4, %v325_v55 }
  0xe7   : > { %504 = vrot.lane.b32.xlu1 %v6968_v56, %s6589_s17  ;;  %v1327_v24 = vcombine.low %v6942_v45, %v6968_v56 }
  0xe9   : > { %v331_v57 = vpop.permute.xlu1 %330  ;;  %v329_v58 = vpop.permute.xlu0 %328  ;;  %v7043_v35 = vrot.slane %v1327_v24, %v7018_v23 }
  0xea   : > { %v6974_v59 = vld [vmem:[#allocation2 + $0x55] sm:$0xff]  ;;  %v6976_v60 = vld [vmem:[#allocation2 + $0x4d] sm:$0xff]  ;;  %425 = vst.msk [vmem:[#allocation2 + $0x7c] sm:$0xff] %vm408_vm4, %v331_v57 }
  0xeb   : > { %424 = vst.msk [vmem:[#allocation2 + $0x74] sm:$0x3] %vm411_vm3, %v329_v58  ;;  %508 = vrot.lane.b32.xlu1 %v6974_v59, %s6589_s17  ;;  %506 = vrot.lane.b32.xlu0 %v6976_v60, %s6589_s17  ;;  %v1343_v18 = vcombine.low %v6952_v49, %v6974_v59  ;;  %v1139_v19 = vcombine.low %v6954_v50, %v6976_v60 }
  0xed   : > { %v335_v61 = vpop.permute.xlu1 %334  ;;  %v333_v62 = vpop.permute.xlu0 %332  ;;  %v6984_v63 = vld [vmem:[#allocation2 + $0x65] sm:$0xff]  ;;  %v7029_v27 = vrot.slane %v1343_v18, %v7018_v23  ;;  %v7034_v29 = vrot.slane %v1139_v19, %v7018_v23  ;;  %v1140_v19 = vcombine.high %v6954_v50, %v6976_v60 }
  0xee   : > { %427 = vst.msk [vmem:[#allocation2 + $0x8c] sm:$0x3] %vm411_vm3, %v335_v61 }
  0xef   : > { %426 = vst.msk [vmem:[#allocation2 + $0x84] sm:$0xff] %vm408_vm4, %v333_v62  ;;  %510 = vrot.lane.b32.xlu0 %v6984_v63, %s6589_s17  ;;  %v1391_v40 = vcombine.low %v7043_v35, %v7029_v27  ;;  %v1187_v44 = vcombine.low %v7054_v38, %v7034_v29 }
  0xf1   : > { %v339_v1 = vpop.permute.xlu1 %338  ;;  %v337_v2 = vpop.permute.xlu0 %336  ;;  %v7087_v57 = vrot.slane %v1391_v40, %v7058_v39 }
  0xf2   : > { %v6990_v3 = vld [vmem:[#allocation2 + $0x6d] sm:$0xff]  ;;  %429 = vst.msk [vmem:[#allocation2 + $0x9c] sm:$0xff] %vm408_vm4, %v339_v1  ;;  %428 = vst.msk [vmem:[#allocation2 + $0x94] sm:$0xff] %vm408_vm4, %v337_v2  ;;  %v7095_v2 = vrot.slane %v1187_v44, %v7058_v39 }
  0xf3   : > { %512 = vrot.lane.b32.xlu1 %v6990_v3, %s6589_s17 }
  0xf5   : > { %v343_v4 = vpop.permute.xlu1 %342  ;;  %v341_v5 = vpop.permute.xlu0 %340 }
  0xf6   : > { %v6996_v6 = vld [vmem:[#allocation2 + $0x85] sm:$0xff]  ;;  %v6998_v7 = vld [vmem:[#allocation2 + $0x7d] sm:$0xff]  ;;  %431 = vst.msk [vmem:[#allocation2 + $0xac] sm:$0xff] %vm408_vm4, %v343_v4 }
  0xf7   : > { %430 = vst.msk [vmem:[#allocation2 + $0xa4] sm:$0x3] %vm411_vm3, %v341_v5  ;;  %516 = vrot.lane.b32.xlu1 %v6996_v6, %s6589_s17  ;;  %514 = vrot.lane.b32.xlu0 %v6998_v7, %s6589_s17 }
  0xf9   : > { %v347_v11 = vpop.permute.xlu1 %346  ;;  %v345_v12 = vpop.permute.xlu0 %344  ;;  %v7006_v13 = vld [vmem:[#allocation2 + $0x95] sm:$0xff] }
  0xfa   : > { %433 = vst.msk [vmem:[#allocation2 + $0xbc] sm:$0x3] %vm411_vm3, %v347_v11  ;;  %v1155_v30 = vcombine.low %v6984_v63, %v7006_v13 }
  0xfb   : > { %432 = vst.msk [vmem:[#allocation2 + $0xb4] sm:$0xff] %vm408_vm4, %v345_v12  ;;  %518 = vrot.lane.b32.xlu0 %v7006_v13, %s6589_s17 }
  0xfc   : > { %v7074_v47 = vrot.slane %v1155_v30, %v7018_v23 }
  0xfd   : > { %v351_v20 = vpop.permute.xlu1 %350  ;;  %v349_v21 = vpop.permute.xlu0 %348 }
  0xfe   : > { %v7016_v22 = vld [vmem:[#allocation2 + $0x9d] sm:$0xff]  ;;  %435 = vst.msk [vmem:[#allocation2 + $0xcc] sm:$0xff] %vm408_vm4, %v351_v20  ;;  %434 = vst.msk [vmem:[#allocation2 + $0xc4] sm:$0xff] %vm408_vm4, %v349_v21  ;;  %v1156_v20 = vcombine.high %v6984_v63, %v7006_v13  ;;  %v1124_v21 = vcombine.high %v6944_v46, %v6962_v53 }
  0xff   : > { %520 = vrot.lane.b32.xlu1 %v7016_v22, %s6589_s17  ;;  %v1359_v28 = vcombine.low %v6990_v3, %v7016_v22 }
 0x100   : > { %v1170_v44 = vrot.slane %v1156_v20, %v7018_v23 }
 0x101   : > { %v355_v31 = vpop.permute.xlu1 %354  ;;  %v353_v32 = vpop.permute.xlu0 %352  ;;  %v7063_v41 = vrot.slane %v1359_v28, %v7018_v23 }
 0x102   : > { %v7038_v33 = vld [vmem:[#allocation2 + $0xb5] sm:$0xff]  ;;  %v7040_v34 = vld [vmem:[#allocation2 + $0xad] sm:$0xff]  ;;  %437 = vst.msk [vmem:[#allocation2 + $0xdc] sm:$0xff] %vm408_vm4, %v355_v31 }
 0x103   : > { %436 = vst.msk [vmem:[#allocation2 + $0xd4] sm:$0x3] %vm411_vm3, %v353_v32  ;;  %v1375_v36 = vcombine.low %v6996_v6, %v7038_v33  ;;  %524 = vrot.lane.b32.xlu1 %v7038_v33, %s6589_s17  ;;  %v1171_v37 = vcombine.low %v6998_v7, %v7040_v34  ;;  %522 = vrot.lane.b32.xlu0 %v7040_v34, %s6589_s17 }
 0x104   : > { %v1172_v17 = vcombine.high %v6998_v7, %v7040_v34  ;;  %v1154_v32 = vrot.slane %v1140_v19, %v7018_v23 }
 0x105   : > { %v7066_v42 = vrot.slane %v1375_v36, %v7018_v23  ;;  %v7069_v43 = vrot.slane %v1171_v37, %v7018_v23  ;;  %v359_v48 = vpop.permute.xlu1 %358  ;;  %v357_v51 = vpop.permute.xlu0 %356  ;;  %v7076_v52 = vld [vmem:[#allocation2 + $0xc5] sm:$0xff] }
 0x106   : > { %439 = vst.msk [vmem:[#allocation2 + $0xec] sm:$0x3] %vm411_vm3, %v359_v48  ;;  %v1186_v24 = vrot.slane %v1172_v17, %v7018_v23 }
 0x107   : > { %v1423_v54 = vcombine.low %v7063_v41, %v7066_v42  ;;  %438 = vst.msk [vmem:[#allocation2 + $0xe4] sm:$0xff] %vm408_vm4, %v357_v51  ;;  %v1219_v55 = vcombine.low %v7074_v47, %v7069_v43  ;;  %526 = vrot.lane.b32.xlu0 %v7076_v52, %s6589_s17  ;;  %v1220_v25 = vcombine.high %v7074_v47, %v7069_v43 }
 0x108   : > { %v1188_v43 = vcombine.high %v7054_v38, %v7034_v29  ;;  %v1138_v47 = vrot.slane %v1124_v21, %v7018_v23  ;;  %v1236_v20 = vcombine.high %v1170_v44, %v1186_v24 }
 0x109   : > { %v7090_v58 = vrot.slane %v1423_v54, %v7058_v39  ;;  %v363_v61 = vpop.permute.xlu1 %362  ;;  %v361_v62 = vpop.permute.xlu0 %360  ;;  %v7098_v4 = vrot.slane %v1219_v55, %v7058_v39  ;;  %v1235_v55 = vcombine.low %v1170_v44, %v1186_v24  ;;  %v1234_v29 = vrot.slane %v1220_v25, %v7058_v39 }
 0x10a   : > { %v7092_v1 = vld [vmem:[#allocation2 + $0xcd] sm:$0xff]  ;;  %441 = vst.msk [vmem:[#allocation2 + $0xfc] sm:$0xff] %vm408_vm4, %v363_v61  ;;  %440 = vst.msk [vmem:[#allocation2 + $0xf4] sm:$0xff] %vm408_vm4, %v361_v62  ;;  %v1203_v38 = vcombine.low %v1138_v47, %v1154_v32  ;;  %v1204_v19 = vcombine.high %v1138_v47, %v1154_v32 }
 0x10b   : > { %9137 = vst [vmem:[#allocation12_spill] sm:$0xff] %v7098_v4  ;;  %528 = vrot.lane.b32.xlu1 %v7092_v1, %s6589_s17  ;;  %v1243_v25 = vrot.slane %v1235_v55, %v7058_v39  ;;  %v1376_v55 = vcombine.high %v6996_v6, %v7038_v33 }
 0x10c   : > { %v1211_v32 = vrot.slane %v1203_v38, %v7058_v39  ;;  %v1218_v5 = vrot.slane %v1204_v19, %v7058_v39 }
 0x10d   : > { %v367_v9 = vpop.permute.xlu1 %366  ;;  %v365_v10 = vpop.permute.xlu0 %364 }
 0x10e   : > { %v7108_v11 = vld [vmem:[#allocation2 + $0xe5] sm:$0xff]  ;;  %v7110_v12 = vld [vmem:[#allocation2 + $0xdd] sm:$0xff]  ;;  %443 = vst.msk [vmem:[#allocation2 + $0x10c] sm:$0xff] %vm408_vm4, %v367_v9 }
 0x10f   : > { %442 = vst.msk [vmem:[#allocation2 + $0x104] sm:$0x3] %vm411_vm3, %v365_v10  ;;  %532 = vrot.lane.b32.xlu1 %v7108_v11, %s6589_s17  ;;  %530 = vrot.lane.b32.xlu0 %v7110_v12, %s6589_s17 }
 0x111   : > { %v371_v14 = vpop.permute.xlu1 %370  ;;  %v369_v15 = vpop.permute.xlu0 %368  ;;  %v7118_v16 = vld [vmem:[#allocation2 + $0xf5] sm:$0xff] }
 0x112   : > { %445 = vst.msk [vmem:[#allocation2 + $0x11c] sm:$0x3] %vm411_vm3, %v371_v14  ;;  %v1259_v26 = vcombine.low %v7076_v52, %v7118_v16  ;;  %v1260_v28 = vcombine.high %v7076_v52, %v7118_v16  ;;  %v1202_v14 = vrot.slane %v1188_v43, %v7058_v39  ;;  %v1252_v43 = vcombine.high %v7095_v2, %v7098_v4 }
 0x113   : > { %444 = vst.msk [vmem:[#allocation2 + $0x114] sm:$0xff] %vm408_vm4, %v369_v15  ;;  %534 = vrot.lane.b32.xlu0 %v7118_v16, %s6589_s17 }
 0x114   : > { %v1267_v61 = vrot.slane %v1259_v26, %v7018_v23  ;;  %v1274_v62 = vrot.slane %v1260_v28, %v7018_v23 }
 0x116   : > { %v7126_v18 = vld [vmem:[#allocation2 + $0xfd] sm:$0xff] }
 0x117   : > { %536 = vrot.lane.b32.xlu1 %v7126_v18, %s6589_s17  ;;  %v1463_v48 = vcombine.low %v7092_v1, %v7126_v18 }
 0x119   : > { %v1471_v21 = vrot.slane %v1463_v48, %v7018_v23 }
 0x11a   : > { %v7143_v30 = vld [vmem:[#allocation2 + $0x115] sm:$0xff]  ;;  %v7145_v31 = vld [vmem:[#allocation2 + $0x10d] sm:$0xff] }
 0x11b   : > { %v1479_v36 = vcombine.low %v7108_v11, %v7143_v30  ;;  %540 = vrot.lane.b32.xlu1 %v7143_v30, %s6589_s17  ;;  %v1275_v37 = vcombine.low %v7110_v12, %v7145_v31  ;;  %v1276_v40 = vcombine.high %v7110_v12, %v7145_v31  ;;  %538 = vrot.lane.b32.xlu0 %v7145_v31, %s6589_s17 }
 0x11c   : > { %v1480_v28 = vcombine.high %v7108_v11, %v7143_v30 }
 0x11d   : > { %v1283_v51 = vrot.slane %v1275_v37, %v7018_v23  ;;  %v1290_v54 = vrot.slane %v1276_v40, %v7018_v23  ;;  %v1487_v9 = vrot.slane %v1479_v36, %v7018_v23  ;;  %v1253_v37 = vcombine.low %v1202_v14, %v1234_v29 }
 0x11f   : > { %v1291_v10 = vcombine.low %v1267_v61, %v1283_v51  ;;  %v1292_v15 = vcombine.high %v1267_v61, %v1283_v51  ;;  %v1307_v17 = vcombine.low %v1274_v62, %v1290_v54  ;;  %v1495_v36 = vcombine.low %v1471_v21, %v1487_v9 }
 0x120   : > { %v1308_v48 = vcombine.high %v1274_v62, %v1290_v54  ;;  %v1344_v51 = vcombine.high %v6952_v49, %v6974_v59  ;;  %v1250_v61 = vrot.slane %v1236_v20, %v7058_v39  ;;  %v1360_v54 = vcombine.high %v6990_v3, %v7016_v22 }
 0x121   : > { %v1306_v40 = vrot.slane %v1292_v15, %v7058_v39  ;;  %v7174_v26 = vrot.slane %v1291_v10, %v7058_v39  ;;  %v1315_v47 = vrot.slane %v1307_v17, %v7058_v39  ;;  %v1464_v10 = vcombine.high %v7092_v1, %v7126_v18 }
 0x122   : > { %v1255_v15 = vcombine.low %v1211_v32, %v1243_v25  ;;  %v1494_v62 = vrot.slane %v1480_v28, %v7018_v23  ;;  %v1254_v17 = vcombine.high %v1202_v14, %v1234_v29  ;;  %v1496_v8 = vcombine.high %v1471_v21, %v1487_v9 }
 0x123   : > { %v5968_v24 = vpack.i.bf16 %v1306_v40, %v1253_v37  ;;  %v1323_v44 = vcombine.high %v7174_v26, %v6587_v0  ;;  %v1324_v37 = vcombine.high %v1306_v40, %v6587_v0  ;;  %v1322_v4 = vrot.slane %v1308_v48, %v7058_v39 }
 0x124   : > { %v5978_v20 = vpack.i.bf16 %v1315_v47, %v1255_v15  ;;  %v1328_v40 = vcombine.high %v6942_v45, %v6968_v56  ;;  %v1424_v29 = vcombine.high %v7063_v41, %v7066_v42  ;;  %v1478_v14 = vrot.slane %v1464_v10, %v7018_v23 }
 0x125   : > { %5969 = vrot.lane.b32.xlu1 %v5968_v24, %s6592_s4  ;;  %v5963_v38 = vpack.i.bf16 %v1323_v44, %v1252_v43  ;;  %v7201_v43 = vrot.slane %v1495_v36, %v7058_v39  ;;  %v1390_v24 = vrot.slane %v1376_v55, %v7018_v23  ;;  %v5973_v9 = vpack.i.bf16 %v1324_v37, %v1254_v17 }
 0x126   : > { %v1257_v19 = vcombine.low %v1218_v5, %v1250_v61  ;;  %v1325_v21 = vcombine.high %v1315_v47, %v6587_v0  ;;  %v1358_v28 = vrot.slane %v1344_v51, %v7018_v23  ;;  %v1392_v36 = vcombine.high %v7043_v35, %v7029_v27 }
 0x127   : > { %5964 = vrot.lane.b32.xlu0 %v5963_v38, %s6593_s5  ;;  %v1374_v44 = vrot.slane %v1360_v54, %v7018_v23  ;;  %v1256_v48 = vcombine.high %v1211_v32, %v1243_v25  ;;  %v1511_v55 = vcombine.low %v1478_v14, %v1494_v62  ;;  %v1527_v42 = vcombine.high %v7201_v43, %v6587_v0 }
 0x128   : > { %v5988_v41 = vpack.i.bf16 %v1322_v4, %v1257_v19  ;;  %v1510_v10 = vrot.slane %v1496_v8, %v7058_v39  ;;  %v1342_v47 = vrot.slane %v1328_v40, %v7018_v23  ;;  %v1456_v35 = vcombine.high %v7087_v57, %v7090_v58 }
 0x129   : > { %5979 = vrot.lane.b32.xlu1 %v5978_v20, %s6594_s25  ;;  %v1439_v38 = vcombine.low %v1374_v44, %v1390_v24  ;;  %v5983_v27 = vpack.i.bf16 %v1325_v21, %v1256_v48  ;;  %v1326_v25 = vcombine.high %v1322_v4, %v6587_v0  ;;  %v1438_v32 = vrot.slane %v1424_v29, %v7058_v39 }
 0x12a   : > { %v1407_v51 = vcombine.low %v1342_v47, %v1358_v28  ;;  %v1258_v15 = vcombine.high %v1218_v5, %v1250_v61  ;;  %v1406_v37 = vrot.slane %v1392_v36, %v7058_v39  ;;  %v1512_v54 = vcombine.high %v1478_v14, %v1494_v62 }
 0x12b   : > { %5974 = vrot.lane.b32.xlu0 %v5973_v9, %s6595_s22  ;;  %v5998_v8 = vpack.i.bf16 %v1527_v42, %v1456_v35  ;;  %v1528_v17 = vcombine.high %v1510_v10, %v6587_v0  ;;  %v1519_v20 = vrot.slane %v1511_v55, %v7058_v39  ;;  %v1440_v40 = vcombine.high %v1374_v44, %v1390_v24 }
 0x12c   : > { %v5993_v9 = vpack.i.bf16 %v1326_v25, %v1258_v15  ;;  %v1458_v4 = vcombine.high %v1406_v37, %v1438_v32  ;;  %v1447_v29 = vrot.slane %v1439_v38, %v7058_v39  ;;  %v1408_v19 = vcombine.high %v1342_v47, %v1358_v28 }
 0x12d   : > { %5989 = vrot.lane.b32.xlu1 %v5988_v41, %s6596_s27  ;;  %v1415_v5 = vrot.slane %v1407_v51, %v7058_v39  ;;  %v1457_v62 = vcombine.low %v1406_v37, %v1438_v32  ;;  %v1529_v14 = vcombine.high %v1519_v20, %v6587_v0  ;;  %v1526_v21 = vrot.slane %v1512_v54, %v7058_v39 }
 0x12e   : > { %v6008_v61 = vpack.i.bf16 %v1528_v17, %v1458_v4  ;;  %v1454_v44 = vrot.slane %v1440_v40, %v7058_v39  ;;  %v1422_v55 = vrot.slane %v1408_v19, %v7058_v39 }
 0x12f   : > { %5984 = vrot.lane.b32.xlu0 %v5983_v27, %s6597_s28  ;;  %v6003_v24 = vpack.i.bf16 %v1510_v10, %v1457_v62  ;;  %v1460_v36 = vcombine.high %v1415_v5, %v1447_v29  ;;  %v1459_v48 = vcombine.low %v1415_v5, %v1447_v29  ;;  %v1530_v41 = vcombine.high %v1526_v21, %v6587_v0 }
 0x130   : > { %v1462_v47 = vcombine.high %v1422_v55, %v1454_v44  ;;  %v1461_v27 = vcombine.low %v1422_v55, %v1454_v44 }
 0x131   : > { %5999 = vrot.lane.b32.xlu1 %v5998_v8, %s6593_s5  ;;  %v6018_v28 = vpack.i.bf16 %v1529_v14, %v1460_v36  ;;  %v6013_v42 = vpack.i.bf16 %v1519_v20, %v1459_v48 }
 0x132   : > { %v6028_v38 = vpack.i.bf16 %v1530_v41, %v1462_v47  ;;  %v6023_v10 = vpack.i.bf16 %v1526_v21, %v1461_v27 }
 0x133   : > { %5994 = vrot.lane.b32.xlu0 %v5993_v9, %s6598_s6 }
 0x135   : > { %6009 = vrot.lane.b32.xlu1 %v6008_v61, %s6595_s22 }
 0x137   : > { %6004 = vrot.lane.b32.xlu0 %v6003_v24, %s6592_s4 }
 0x139   : > { %6019 = vrot.lane.b32.xlu1 %v6018_v28, %s6597_s28 }
 0x13b   : > { %6014 = vrot.lane.b32.xlu0 %v6013_v42, %s6594_s25 }
 0x13d   : > { %6029 = vrot.lane.b32.xlu1 %v6028_v38, %s6598_s6 }
 0x13f   : > { %6024 = vrot.lane.b32.xlu0 %v6023_v10, %s6596_s27 }
 0x141   : > { %1904 = vrot.lane.b32.xlu1 %v6942_v45, %s6599_s7 }
 0x143   : > { %1902 = vrot.lane.b32.xlu0 %v6944_v46, %s6599_s7 }
 0x145   : > { %1908 = vrot.lane.b32.xlu1 %v6952_v49, %s6599_s7 }
 0x147   : > { %1906 = vrot.lane.b32.xlu0 %v6954_v50, %s6599_s7 }
 0x149   : > { %1912 = vrot.lane.b32.xlu1 %v6968_v56, %s6599_s7 }
 0x14b   : > { %1910 = vrot.lane.b32.xlu0 %v6962_v53, %s6599_s7 }
 0x14c   : > { %v7260_v35 = vpop.permute.xlu0 %494  ;;  %v7264_v25 = vpop.permute.xlu1 %496 }
 0x14d   : > { %1916 = vrot.lane.b32.xlu1 %v6974_v59, %s6599_s7 }
 0x14f   : > { %1914 = vrot.lane.b32.xlu0 %v6976_v60, %s6599_s7 }
 0x151   : > { %1920 = vrot.lane.b32.xlu1 %v6990_v3, %s6599_s7  ;;  %v7270_v53 = vpop.permute.xlu0 %498  ;;  %v7274_v56 = vpop.permute.xlu1 %500 }
 0x153   : > { %1918 = vrot.lane.b32.xlu0 %v6984_v63, %s6599_s7 }
 0x155   : > { %1924 = vrot.lane.b32.xlu1 %v6996_v6, %s6599_s7  ;;  %v7282_v60 = vpop.permute.xlu0 %502 }
 0x156   : > { %v567_v48 = vcombine.high %v7260_v35, %v7282_v60 }
 0x157   : > { %1922 = vrot.lane.b32.xlu0 %v6998_v7, %s6599_s7 }
 0x158   : > { %v581_v10 = vrot.slane %v567_v48, %v7018_v23 }
 0x159   : > { %1928 = vrot.lane.b32.xlu1 %v7016_v22, %s6599_s7  ;;  %v7280_v59 = vpop.permute.xlu1 %504 }
 0x15b   : > { %1926 = vrot.lane.b32.xlu0 %v7006_v13, %s6599_s7 }
 0x15d   : > { %1932 = vrot.lane.b32.xlu1 %v7038_v33, %s6599_s7  ;;  %v507_v63 = vpop.permute.xlu0 %506  ;;  %v7290_v3 = vpop.permute.xlu1 %508 }
 0x15e   : > { %v786_v33 = vcombine.low %v7274_v56, %v7290_v3  ;;  %v583_v44 = vcombine.high %v7270_v53, %v507_v63 }
 0x15f   : > { %1930 = vrot.lane.b32.xlu0 %v7040_v34, %s6599_s7  ;;  %v582_v34 = vcombine.low %v7270_v53, %v507_v63 }
 0x160   : > { %v597_v47 = vrot.slane %v583_v44, %v7018_v23 }
 0x161   : > { %1936 = vrot.lane.b32.xlu1 %v7092_v1, %s6599_s7  ;;  %v511_v7 = vpop.permute.xlu0 %510  ;;  %v770_v1 = vcombine.low %v7264_v25, %v7280_v59 }
 0x163   : > { %1934 = vrot.lane.b32.xlu0 %v7076_v52, %s6599_s7  ;;  %v7332_v51 = vrot.slane %v770_v1, %v7018_v23 }
 0x165   : > { %1940 = vrot.lane.b32.xlu1 %v7108_v11, %s6599_s7  ;;  %v7296_v6 = vpop.permute.xlu1 %512 }
 0x167   : > { %1938 = vrot.lane.b32.xlu0 %v7110_v12, %s6599_s7  ;;  %v566_v12 = vcombine.low %v7260_v35, %v7282_v60  ;;  %v646_v35 = vcombine.low %v581_v10, %v597_v47 }
 0x169   : > { %1944 = vrot.lane.b32.xlu1 %v7126_v18, %s6599_s7  ;;  %v515_v13 = vpop.permute.xlu0 %514  ;;  %v7304_v22 = vpop.permute.xlu1 %516  ;;  %v574_v37 = vrot.slane %v566_v12, %v7018_v23 }
 0x16b   : > { %1942 = vrot.lane.b32.xlu0 %v7118_v16, %s6599_s7  ;;  %v7322_v16 = vrot.slane %v786_v33, %v7018_v23 }
 0x16d   : > { %1948 = vrot.lane.b32.xlu1 %v7143_v30, %s6599_s7  ;;  %v519_v11 = vpop.permute.xlu0 %518  ;;  %v590_v30 = vrot.slane %v582_v34, %v7018_v23 }
 0x16e   : > { %v599_v41 = vcombine.high %v511_v7, %v519_v11 }
 0x16f   : > { %1946 = vrot.lane.b32.xlu0 %v7145_v31, %s6599_s7  ;;  %v598_v31 = vcombine.low %v511_v7, %v519_v11  ;;  %v630_v20 = vcombine.low %v574_v37, %v590_v30  ;;  %v631_v12 = vcombine.high %v574_v37, %v590_v30  ;;  %v787_v37 = vcombine.high %v7274_v56, %v7290_v3 }
 0x170   : > { %v613_v53 = vrot.slane %v599_v41, %v7018_v23 }
 0x171   : > { %v7313_v52 = vpop.permute.xlu1 %520  ;;  %2668 = vrot.lane.b32.xlu1 %v6942_v45, %s6600_s20  ;;  %v606_v40 = vrot.slane %v598_v31, %v7018_v23  ;;  %v7360_v5 = vrot.slane %v630_v20, %v7058_v39  ;;  %v647_v20 = vcombine.high %v581_v10, %v597_v47 }
 0x172   : > { %v802_v18 = vcombine.low %v7296_v6, %v7313_v52  ;;  %v803_v47 = vcombine.high %v7296_v6, %v7313_v52 }
 0x173   : > { %2666 = vrot.lane.b32.xlu0 %v6944_v46, %s6600_s20  ;;  %v834_v46 = vcombine.low %v7332_v51, %v7322_v16 }
 0x174   : > { %v7342_v8 = vrot.slane %v802_v18, %v7018_v23 }
 0x175   : > { %v7329_v32 = vpop.permute.xlu1 %524  ;;  %v523_v15 = vpop.permute.xlu0 %522  ;;  %2672 = vrot.lane.b32.xlu1 %v6952_v49, %s6600_s20  ;;  %v7354_v29 = vrot.slane %v834_v46, %v7058_v39  ;;  %v645_v46 = vrot.slane %v631_v12, %v7058_v39 }
 0x176   : > { %v818_v45 = vcombine.low %v7304_v22, %v7329_v32  ;;  %v614_v54 = vcombine.low %v515_v13, %v523_v15  ;;  %v615_v28 = vcombine.high %v515_v13, %v523_v15 }
 0x177   : > { %2670 = vrot.lane.b32.xlu0 %v6954_v50, %s6600_s20 }
 0x178   : > { %v7345_v17 = vrot.slane %v818_v45, %v7018_v23  ;;  %v622_v49 = vrot.slane %v614_v54, %v7018_v23  ;;  %v629_v38 = vrot.slane %v615_v28, %v7018_v23 }
 0x179   : > { %v527_v21 = vpop.permute.xlu0 %526 }
 0x17a   : > { %v866_v9 = vcombine.low %v7342_v8, %v7345_v17  ;;  %v662_v4 = vcombine.low %v606_v40, %v622_v49  ;;  %v663_v27 = vcombine.high %v606_v40, %v622_v49  ;;  %v678_v11 = vcombine.low %v613_v53, %v629_v38 }
 0x17b   : > { %v7392_v49 = vrot.slane %v646_v35, %v7058_v39  ;;  %v679_v44 = vcombine.high %v613_v53, %v629_v38 }
 0x17c   : > { %v7357_v19 = vrot.slane %v866_v9, %v7058_v39  ;;  %v7363_v50 = vrot.slane %v662_v4, %v7058_v39  ;;  %v677_v7 = vrot.slane %v663_v27, %v7058_v39  ;;  %v7397_v28 = vrot.slane %v678_v11, %v7058_v39 }
 0x17d   : > { %v7369_v14 = vpop.permute.xlu1 %528  ;;  %v7418_v52 = vrot.slane %v679_v44, %v7058_v39 }
 0x17e   : > { %v898_v61 = vcombine.low %v7354_v29, %v7357_v19  ;;  %v694_v62 = vcombine.low %v7360_v5, %v7363_v50  ;;  %v696_v41 = vcombine.low %v645_v46, %v677_v7  ;;  %v698_v53 = vcombine.low %v7392_v49, %v7397_v28 }
 0x17f   : > { %v699_v44 = vcombine.high %v7392_v49, %v7397_v28 }
 0x181   : > { %v531_v24 = vpop.permute.xlu0 %530  ;;  %v533_v36 = vpop.permute.xlu1 %532 }
 0x185   : > { %v535_v42 = vpop.permute.xlu0 %534 }
 0x186   : > { %v702_v33 = vcombine.low %v527_v21, %v535_v42  ;;  %v703_v34 = vcombine.high %v527_v21, %v535_v42 }
 0x188   : > { %v710_v45 = vrot.slane %v702_v33, %v7018_v23  ;;  %v717_v15 = vrot.slane %v703_v34, %v7018_v23  ;;  %v771_v34 = vcombine.high %v7264_v25, %v7280_v59  ;;  %v661_v25 = vrot.slane %v647_v20, %v7058_v39 }
 0x189   : > { %v7374_v55 = vpop.permute.xlu1 %536  ;;  %v817_v59 = vrot.slane %v803_v47, %v7018_v23 }
 0x18a   : > { %v906_v31 = vcombine.low %v7369_v14, %v7374_v55  ;;  %v907_v27 = vcombine.high %v7369_v14, %v7374_v55  ;;  %v700_v20 = vcombine.low %v661_v25, %v7418_v52 }
 0x18c   : > { %v914_v56 = vrot.slane %v906_v31, %v7018_v23 }
 0x18d   : > { %v541_v1 = vpop.permute.xlu1 %540  ;;  %v539_v13 = vpop.permute.xlu0 %538 }
 0x18e   : > { %v922_v63 = vcombine.low %v533_v36, %v541_v1  ;;  %v718_v60 = vcombine.low %v531_v24, %v539_v13  ;;  %v719_v18 = vcombine.high %v531_v24, %v539_v13  ;;  %v819_v24 = vcombine.high %v7304_v22, %v7329_v32 }
 0x18f   : > { %v923_v3 = vcombine.high %v533_v36, %v541_v1  ;;  %v695_v32 = vcombine.high %v7360_v5, %v7363_v50  ;;  %v801_v1 = vrot.slane %v787_v37, %v7018_v23 }
 0x190   : > { %v726_v54 = vrot.slane %v718_v60, %v7018_v23  ;;  %v733_v30 = vrot.slane %v719_v18, %v7018_v23  ;;  %v930_v40 = vrot.slane %v922_v63, %v7018_v23  ;;  %v833_v6 = vrot.slane %v819_v24, %v7018_v23 }
 0x191   : > { %v937_v55 = vrot.slane %v923_v3, %v7018_v23  ;;  %v697_v60 = vcombine.high %v645_v46, %v677_v7  ;;  %v921_v18 = vrot.slane %v907_v27, %v7018_v23 }
 0x192   : > { %v734_v9 = vcombine.low %v710_v45, %v726_v54  ;;  %v735_v4 = vcombine.high %v710_v45, %v726_v54  ;;  %v750_v21 = vcombine.low %v717_v15, %v733_v30  ;;  %v938_v22 = vcombine.low %v914_v56, %v930_v40 }
 0x193   : > { %v751_v38 = vcombine.high %v717_v15, %v733_v30  ;;  %v939_v13 = vcombine.high %v914_v56, %v930_v40  ;;  %v785_v15 = vrot.slane %v771_v34, %v7018_v23  ;;  %v867_v54 = vcombine.high %v7342_v8, %v7345_v17 }
 0x194   : > { %v7401_v48 = vrot.slane %v734_v9, %v7058_v39  ;;  %v749_v42 = vrot.slane %v735_v4, %v7058_v39  ;;  %v758_v33 = vrot.slane %v750_v21, %v7058_v39  ;;  %v7433_v11 = vrot.slane %v938_v22, %v7058_v39 }
 0x195   : > { %v765_v45 = vrot.slane %v751_v38, %v7058_v39  ;;  %v882_v30 = vcombine.low %v817_v59, %v833_v6  ;;  %v954_v7 = vcombine.low %v921_v18, %v937_v55  ;;  %v835_v9 = vcombine.high %v7332_v51, %v7322_v16 }
 0x196   : > { %v6038_v10 = vpack.i.bf16 %v749_v42, %v696_v41  ;;  %v766_v36 = vcombine.high %v7401_v48, %v6587_v0  ;;  %v767_v63 = vcombine.high %v749_v42, %v6587_v0  ;;  %v6048_v31 = vpack.i.bf16 %v758_v33, %v698_v53 }
 0x197   : > { %v7420_v14 = vpop.permute.xlu1 %5969  ;;  %v768_v40 = vcombine.high %v758_v33, %v6587_v0  ;;  %v850_v4 = vcombine.low %v785_v15, %v801_v1  ;;  %v883_v21 = vcombine.high %v817_v59, %v833_v6  ;;  %v953_v24 = vrot.slane %v939_v13, %v7058_v39 }
 0x198   : > { %6039 = vrot.lane.b32.xlu1 %v6038_v10, %s6592_s4  ;;  %v6033_v12 = vpack.i.bf16 %v766_v36, %v695_v32  ;;  %v6043_v46 = vpack.i.bf16 %v767_v63, %v697_v60  ;;  %v6058_v17 = vpack.i.bf16 %v765_v45, %v700_v20  ;;  %v970_v56 = vcombine.high %v7433_v11, %v6587_v0 }
 0x199   : > { %v7429_v35 = vpop.permute.xlu0 %5964  ;;  %v851_v3 = vcombine.high %v785_v15, %v801_v1  ;;  %v881_v41 = vrot.slane %v867_v54, %v7058_v39  ;;  %v890_v16 = vrot.slane %v882_v30, %v7058_v39  ;;  %v899_v42 = vcombine.high %v7354_v29, %v7357_v19  ;;  %v9138_v54 = vld [vmem:[#allocation12_spill] sm:$0xff] }
 0x19a   : > { %6034 = vrot.lane.b32.xlu0 %v6033_v12, %s6593_s5  ;;  %v955_v47 = vcombine.high %v921_v18, %v937_v55  ;;  %v962_v27 = vrot.slane %v954_v7, %v7058_v39  ;;  %v6053_v49 = vpack.i.bf16 %v768_v40, %v699_v44  ;;  %v769_v28 = vcombine.high %v765_v45, %v6587_v0 }
 0x19b   : > { %v7440_v37 = vpop.permute.xlu1 %5979  ;;  %v849_v22 = vrot.slane %v835_v9, %v7058_v39  ;;  %v858_v32 = vrot.slane %v850_v4, %v7058_v39  ;;  %v897_v38 = vrot.slane %v883_v21, %v7058_v39  ;;  %v971_v36 = vcombine.high %v953_v24, %v6587_v0 }
 0x19c   : > { %6049 = vrot.lane.b32.xlu1 %v6048_v31, %s6594_s25  ;;  %v5967_v33 = vunpack.i.h.bf16 %v7429_v35  ;;  %v5966_v34 = vunpack.i.l.bf16 %v7429_v35  ;;  %v6068_v1 = vpack.i.bf16 %v970_v56, %v899_v42  ;;  %v701_v6 = vcombine.high %v661_v25, %v7418_v52 }
 0x19d   : > { %v7448_v8 = vpop.permute.xlu0 %5974  ;;  %v865_v55 = vrot.slane %v851_v3, %v7058_v39  ;;  %v901_v53 = vcombine.high %v849_v22, %v881_v41  ;;  %v900_v63 = vcombine.low %v849_v22, %v881_v41  ;;  %v969_v59 = vrot.slane %v955_v47, %v7058_v39 }
 0x19e   : > { %6044 = vrot.lane.b32.xlu0 %v6043_v46, %s6595_s22  ;;  %v6063_v13 = vpack.i.bf16 %v769_v28, %v701_v6  ;;  %v903_v60 = vcombine.high %v858_v32, %v890_v16  ;;  %v972_v35 = vcombine.high %v962_v27, %v6587_v0  ;;  %v902_v45 = vcombine.low %v858_v32, %v890_v16 }
 0x19f   : > { %v7457_v51 = vpop.permute.xlu1 %5989  ;;  %v6078_v31 = vpack.i.bf16 %v971_v36, %v901_v53  ;;  %v905_v52 = vcombine.high %v865_v55, %v897_v38  ;;  %v904_v25 = vcombine.low %v865_v55, %v897_v38  ;;  %v1644_v15 = vsel %vm1086_vm5, %v7174_v26, %v5967_v33 }
 0x1a0   : > { %6059 = vrot.lane.b32.xlu1 %v6058_v17, %s6596_s27  ;;  %v9139_v30 = vcombine.low %v7095_v2, %v9138_v54  ;;  %v5977_v46 = vunpack.i.h.bf16 %v7448_v8  ;;  %v5976_v20 = vunpack.i.l.bf16 %v7448_v8  ;;  %v5972_v40 = vunpack.i.h.bf16 %v7420_v14 }
 0x1a1   : > { %v7467_v10 = vpop.permute.xlu0 %5984  ;;  %v5971_v9 = vunpack.i.l.bf16 %v7420_v14  ;;  %v6073_v26 = vpack.i.bf16 %v953_v24, %v900_v63  ;;  %v6088_v2 = vpack.i.bf16 %v972_v35, %v903_v60  ;;  %v6083_v44 = vpack.i.bf16 %v962_v27, %v902_v45 }
 0x1a2   : > { %6054 = vrot.lane.b32.xlu0 %v6053_v49, %s6597_s28  ;;  %v1643_v7 = vsel %vm1086_vm5, %v9139_v30, %v5966_v34  ;;  %v973_v56 = vcombine.high %v969_v59, %v6587_v0  ;;  %v5982_v3 = vunpack.i.h.bf16 %v7440_v37  ;;  %v1646_v41 = vsel %vm1089_vm6, %v1644_v15, %v5972_v40 }
 0x1a3   : > { %v6000_v12 = vpop.permute.xlu1 %5999  ;;  %v1645_v8 = vsel %vm1089_vm6, %v1643_v7, %v5971_v9  ;;  %v6093_v42 = vpack.i.bf16 %v969_v59, %v904_v25  ;;  %v1648_v47 = vsel %vm1092_vm7, %v1646_v41, %v5977_v46  ;;  %v5987_v24 = vunpack.i.h.bf16 %v7467_v10 }
 0x1a4   : > { %6069 = vrot.lane.b32.xlu1 %v6068_v1, %s6593_s5  ;;  %v6002_v4 = vunpack.i.h.bf16 %v6000_v12  ;;  %v6001_v21 = vunpack.i.l.bf16 %v6000_v12  ;;  %v1647_v14 = vsel %vm1092_vm7, %v1645_v8, %v5976_v20  ;;  %v5986_v27 = vunpack.i.l.bf16 %v7467_v10 }
 0x1a5   : > { %v7478_v18 = vpop.permute.xlu0 %5994  ;;  %v9140_v32 = vcombine.low %v7087_v57, %v7090_v58  ;;  %v5981_v33 = vunpack.i.l.bf16 %v7440_v37  ;;  %v6098_v6 = vpack.i.bf16 %v973_v56, %v905_v52  ;;  %v5992_v10 = vunpack.i.h.bf16 %v7457_v51 }
 0x1a6   : > { %6064 = vrot.lane.b32.xlu0 %v6063_v13, %s6598_s6  ;;  %v1658_v22 = vsel %vm1086_vm5, %v7201_v43, %v6002_v4  ;;  %v5991_v55 = vunpack.i.l.bf16 %v7457_v51  ;;  %v1650_v58 = vsel %vm1095_vm8, %v1648_v47, %v5982_v3  ;;  %v5996_v45 = vunpack.i.l.bf16 %v7478_v18 }
 0x1a7   : > { %v6010_v17 = vpop.permute.xlu1 %6009  ;;  %v1657_v38 = vsel %vm1086_vm5, %v9140_v32, %v6001_v21  ;;  %v1649_v57 = vsel %vm1095_vm8, %v1647_v14, %v5981_v33  ;;  %v1652_v13 = vsel %vm1098_vm9, %v1650_v58, %v5987_v24 }
 0x1a8   : > { %6079 = vrot.lane.b32.xlu1 %v6078_v31, %s6595_s22  ;;  %v6012_v43 = vunpack.i.h.bf16 %v6010_v17  ;;  %v6011_v12 = vunpack.i.l.bf16 %v6010_v17  ;;  %v1651_v59 = vsel %vm1098_vm9, %v1649_v57, %v5986_v27  ;;  %v5997_v31 = vunpack.i.h.bf16 %v7478_v18 }
 0x1a9   : > { %v6005_v16 = vpop.permute.xlu0 %6004  ;;  %v1653_v20 = vsel %vm1101_vm10, %v1651_v59, %v5991_v55  ;;  %v1654_v40 = vsel %vm1101_vm10, %v1652_v13, %v5992_v10 }
 0x1aa   : > { %v6007_v49 = vunpack.i.h.bf16 %v6005_v16  ;;  %v6006_v28 = vunpack.i.l.bf16 %v6005_v16  ;;  %6074 = vrot.lane.b32.xlu0 %v6073_v26, %s6592_s4  ;;  %v1656_v56 = vsel %vm1104_vm11, %v1654_v40, %v5997_v31 }
 0x1ab   : > { %v6020_v36 = vpop.permute.xlu1 %6019 }
 0x1ac   : > { %v1660_v34 = vsel %vm1089_vm6, %v1658_v22, %v6007_v49  ;;  %v1659_v1 = vsel %vm1089_vm6, %v1657_v38, %v6006_v28  ;;  %6089 = vrot.lane.b32.xlu1 %v6088_v2, %s6597_s28  ;;  %v6022_v15 = vunpack.i.h.bf16 %v6020_v36  ;;  %v6021_v54 = vunpack.i.l.bf16 %v6020_v36  ;;  %v1672_v28 = vld [vmem:[#allocation6 + $0x10] sm:$0xff] }
 0x1ad   : > { %v6015_v53 = vpop.permute.xlu0 %6014  ;;  %v1661_v60 = vsel %vm1092_vm7, %v1659_v1, %v6011_v12  ;;  %v1662_v35 = vsel %vm1092_vm7, %v1660_v34, %v6012_v43 }
 0x1ae   : > { %v6017_v63 = vunpack.i.h.bf16 %v6015_v53  ;;  %v6016_v37 = vunpack.i.l.bf16 %v6015_v53  ;;  %6084 = vrot.lane.b32.xlu0 %v6083_v44, %s6594_s25  ;;  %v1655_v44 = vsel %vm1104_vm11, %v1653_v20, %v5996_v45 }
 0x1af   : > { %v6030_v51 = vpop.permute.xlu1 %6029  ;;  %v5820_v47 = vpack.c.bf16 %v1656_v56, %v1655_v44 }
 0x1b0   : > { %v1663_v52 = vsel %vm1095_vm8, %v1661_v60, %v6016_v37  ;;  %v1664_v25 = vsel %vm1095_vm8, %v1662_v35, %v6017_v63  ;;  %6099 = vrot.lane.b32.xlu1 %v6098_v6, %s6598_s6  ;;  %v6032_v9 = vunpack.i.h.bf16 %v6030_v51  ;;  %v6031_v18 = vunpack.i.l.bf16 %v6030_v51 }
 0x1b1   : > { %v6025_v30 = vpop.permute.xlu0 %6024  ;;  %v1665_v21 = vsel %vm1098_vm9, %v1663_v52, %v6021_v54  ;;  %v1666_v17 = vsel %vm1098_vm9, %v1664_v25, %v6022_v15 }
 0x1b2   : > { %v6027_v7 = vunpack.i.h.bf16 %v6025_v30  ;;  %v6026_v46 = vunpack.i.l.bf16 %v6025_v30  ;;  %6094 = vrot.lane.b32.xlu0 %v6093_v42, %s6596_s27 }
 0x1b3   : > { %v7528_v4 = vpop.permute.xlu1 %1904 }
 0x1b4   : > { %v1667_v26 = vsel %vm1101_vm10, %v1665_v21, %v6026_v46  ;;  %v1668_v2 = vsel %vm1101_vm10, %v1666_v17, %v6027_v7 }
 0x1b5   : > { %v7536_v3 = vpop.permute.xlu0 %1902  ;;  %v1669_v8 = vsel %vm1104_vm11, %v1667_v26, %v6031_v18  ;;  %v1670_v41 = vsel %vm1104_vm11, %v1668_v2, %v6032_v9 }
 0x1b6   : > { %v5817_v42 = vpack.c.bf16 %v1670_v41, %v1669_v8 }
 0x1b7   : > { %v7545_v14 = vpop.permute.xlu1 %1908 }
 0x1b8   : > { %5819 = vmatprep.subr.msk.bf16.mxu1 %vm7541_vm14, %v5817_v42 }
 0x1b9   : > { %v1907_v49 = vpop.permute.xlu0 %1906  ;;  %5822 = vmatpush1.bf16.msk.msra.mxu1 %vm7541_vm14, %v5820_v47 }
 0x1bb   : > { %v7551_v24 = vpop.permute.xlu1 %1912 }
 0x1bc   : > { %5785 = vmatmul.mubr.msk.f32.vlgmr.msra.gmra.mrb[0].mxu1 %vm1674_vm15, %v1672_v28  ;;  %v2178_v10 = vcombine.low %v7528_v4, %v7551_v24 }
 0x1bd   : > { %v1911_v27 = vpop.permute.xlu0 %1910  ;;  %1758 = vmatprep.mubr.f32.mxu1 %v6587_v0 }
 0x1be   : > { %v1974_v57 = vcombine.low %v7536_v3, %v1911_v27  ;;  %v7576_v63 = vrot.slane %v2178_v10, %v7018_v23 }
 0x1bf   : > { %v7555_v22 = vpop.permute.xlu1 %1916 }
 0x1c0   : > { %v2194_v1 = vcombine.low %v7545_v14, %v7555_v22  ;;  %v1982_v52 = vrot.slane %v1974_v57, %v7018_v23 }
 0x1c1   : > { %v1915_v32 = vpop.permute.xlu0 %1914 }
 0x1c2   : > { %v1990_v55 = vcombine.low %v1907_v49, %v1915_v32  ;;  %v7568_v12 = vrot.slane %v2194_v1, %v7018_v23  ;;  %v1991_v41 = vcombine.high %v1907_v49, %v1915_v32  ;;  %v1975_v1 = vcombine.high %v7536_v3, %v1911_v27 }
 0x1c3   : > { %v7557_v38 = vpop.permute.xlu1 %1920 }
 0x1c4   : > { %v1998_v59 = vrot.slane %v1990_v55, %v7018_v23  ;;  %v2242_v35 = vcombine.low %v7576_v63, %v7568_v12  ;;  %v1989_v32 = vrot.slane %v1975_v1, %v7018_v23 }
 0x1c5   : > { %v1919_v36 = vpop.permute.xlu0 %1918 }
 0x1c6   : > { %v2038_v54 = vcombine.low %v1982_v52, %v1998_v59  ;;  %v7597_v20 = vrot.slane %v2242_v35, %v7058_v39  ;;  %v2039_v49 = vcombine.high %v1982_v52, %v1998_v59 }
 0x1c7   : > { %v7559_v33 = vpop.permute.xlu1 %1924 }
 0x1c8   : > { %v7607_v17 = vrot.slane %v2038_v54, %v7058_v39  ;;  %v2053_v59 = vrot.slane %v2039_v49, %v7058_v39  ;;  %v2195_v49 = vcombine.high %v7545_v14, %v7555_v22 }
 0x1c9   : > { %v1923_v34 = vpop.permute.xlu0 %1922 }
 0x1cb   : > { %v7563_v6 = vpop.permute.xlu1 %1928 }
 0x1cc   : > { %v2210_v53 = vcombine.low %v7557_v38, %v7563_v6 }
 0x1cd   : > { %v1927_v43 = vpop.permute.xlu0 %1926 }
 0x1ce   : > { %v2006_v13 = vcombine.low %v1919_v36, %v1927_v43  ;;  %v7584_v51 = vrot.slane %v2210_v53, %v7018_v23  ;;  %v2007_v47 = vcombine.high %v1919_v36, %v1927_v43  ;;  %v2005_v53 = vrot.slane %v1991_v41, %v7018_v23 }
 0x1cf   : > { %v7573_v58 = vpop.permute.xlu1 %1932 }
 0x1d0   : > { %v2226_v37 = vcombine.low %v7559_v33, %v7573_v58  ;;  %v2014_v30 = vrot.slane %v2006_v13, %v7018_v23  ;;  %v2021_v35 = vrot.slane %v2007_v47, %v7018_v23 }
 0x1d1   : > { %v1931_v60 = vpop.permute.xlu0 %1930 }
 0x1d2   : > { %v7587_v31 = vrot.slane %v2226_v37, %v7018_v23  ;;  %v2022_v45 = vcombine.low %v1923_v34, %v1931_v60  ;;  %v2023_v8 = vcombine.high %v1923_v34, %v1931_v60 }
 0x1d3   : > { %v7590_v25 = vpop.permute.xlu1 %1936 }
 0x1d4   : > { %v2274_v15 = vcombine.low %v7584_v51, %v7587_v31  ;;  %v2030_v7 = vrot.slane %v2022_v45, %v7018_v23  ;;  %v2037_v10 = vrot.slane %v2023_v8, %v7018_v23  ;;  %v2055_v8 = vcombine.high %v1989_v32, %v2005_v53 }
 0x1d5   : > { %v1935_v46 = vpop.permute.xlu0 %1934 }
 0x1d6   : > { %v7600_v40 = vrot.slane %v2274_v15, %v7058_v39  ;;  %v2070_v9 = vcombine.low %v2014_v30, %v2030_v7  ;;  %v2071_v55 = vcombine.high %v2014_v30, %v2030_v7  ;;  %v2086_v3 = vcombine.low %v2021_v35, %v2037_v10 }
 0x1d7   : > { %v7602_v18 = vpop.permute.xlu1 %1940  ;;  %v2054_v7 = vcombine.low %v1989_v32, %v2005_v53  ;;  %v2087_v41 = vcombine.high %v2021_v35, %v2037_v10  ;;  %v2227_v32 = vcombine.high %v7559_v33, %v7573_v58 }
 0x1d8   : > { %v2306_v21 = vcombine.low %v7597_v20, %v7600_v40  ;;  %v7610_v26 = vrot.slane %v2070_v9, %v7058_v39  ;;  %v2085_v36 = vrot.slane %v2071_v55, %v7058_v39  ;;  %v2094_v47 = vrot.slane %v2086_v3, %v7058_v39 }
 0x1d9   : > { %v1939_v2 = vpop.permute.xlu0 %1938  ;;  %v2101_v3 = vrot.slane %v2087_v41, %v7058_v39 }
 0x1da   : > { %v2102_v44 = vcombine.low %v7607_v17, %v7610_v26  ;;  %v2104_v55 = vcombine.low %v2053_v59, %v2085_v36  ;;  %v2105_v22 = vcombine.high %v2053_v59, %v2085_v36 }
 0x1db   : > { %v7614_v56 = vpop.permute.xlu1 %1944 }
 0x1dc   : > { %v2314_v27 = vcombine.low %v7590_v25, %v7614_v56 }
 0x1dd   : > { %v1943_v42 = vpop.permute.xlu0 %1942 }
 0x1de   : > { %v2110_v57 = vcombine.low %v1935_v46, %v1943_v42  ;;  %v2111_v37 = vcombine.high %v1935_v46, %v1943_v42  ;;  %v2322_v42 = vrot.slane %v2314_v27, %v7018_v23 }
 0x1df   : > { %v1949_v28 = vpop.permute.xlu1 %1948 }
 0x1e0   : > { %v2330_v45 = vcombine.low %v7602_v18, %v1949_v28  ;;  %v2118_v43 = vrot.slane %v2110_v57, %v7018_v23  ;;  %v2125_v60 = vrot.slane %v2111_v37, %v7018_v23  ;;  %v2062_v37 = vrot.slane %v2054_v7, %v7058_v39 }
 0x1e1   : > { %v1947_v13 = vpop.permute.xlu0 %1946  ;;  %v2241_v7 = vrot.slane %v2227_v32, %v7018_v23 }
 0x1e2   : > { %v2126_v15 = vcombine.low %v1939_v2, %v1947_v13  ;;  %v2127_v34 = vcombine.high %v1939_v2, %v1947_v13  ;;  %v2338_v46 = vrot.slane %v2330_v45, %v7018_v23  ;;  %v2331_v13 = vcombine.high %v7602_v18, %v1949_v28 }
 0x1e3   : > { %v2315_v18 = vcombine.high %v7590_v25, %v7614_v56  ;;  %v2106_v27 = vcombine.low %v2062_v37, %v2094_v47 }
 0x1e4   : > { %v2134_v54 = vrot.slane %v2126_v15, %v7018_v23  ;;  %v2141_v30 = vrot.slane %v2127_v34, %v7018_v23  ;;  %v2346_v45 = vcombine.low %v2322_v42, %v2338_v46  ;;  %v2103_v15 = vcombine.high %v7607_v17, %v7610_v26 }
 0x1e5   : > { %v2345_v14 = vrot.slane %v2331_v13, %v7018_v23  ;;  %v2347_v33 = vcombine.high %v2322_v42, %v2338_v46 }
 0x1e6   : > { %v2142_v52 = vcombine.low %v2118_v43, %v2134_v54  ;;  %v2143_v9 = vcombine.high %v2118_v43, %v2134_v54  ;;  %v2158_v2 = vcombine.low %v2125_v60, %v2141_v30  ;;  %v2159_v53 = vcombine.high %v2125_v60, %v2141_v30 }
 0x1e7   : > { %v2069_v60 = vrot.slane %v2055_v8, %v7058_v39  ;;  %v2211_v54 = vcombine.high %v7557_v38, %v7563_v6  ;;  %v7658_v58 = vrot.slane %v2346_v45, %v7058_v39  ;;  %v2179_v30 = vcombine.high %v7528_v4, %v7551_v24 }
 0x1e8   : > { %v7634_v1 = vrot.slane %v2142_v52, %v7058_v39  ;;  %v2157_v57 = vrot.slane %v2143_v9, %v7058_v39  ;;  %v2166_v34 = vrot.slane %v2158_v2, %v7058_v39  ;;  %v2173_v56 = vrot.slane %v2159_v53, %v7058_v39 }
 0x1e9   : > { %v2275_v38 = vcombine.high %v7584_v51, %v7587_v31  ;;  %v2329_v6 = vrot.slane %v2315_v18, %v7018_v23  ;;  %v2108_v46 = vcombine.low %v2069_v60, %v2101_v3  ;;  %v2209_v52 = vrot.slane %v2195_v49, %v7018_v23 }
 0x1ea   : > { %v6108_v10 = vpack.i.bf16 %v2157_v57, %v2104_v55  ;;  %v2174_v35 = vcombine.high %v7634_v1, %v6587_v0  ;;  %v2175_v43 = vcombine.high %v2157_v57, %v6587_v0  ;;  %v6118_v25 = vpack.i.bf16 %v2166_v34, %v2106_v27 }
 0x1eb   : > { %v2176_v59 = vcombine.high %v2166_v34, %v6587_v0  ;;  %v2243_v9 = vcombine.high %v7576_v63, %v7568_v12  ;;  %v2225_v4 = vrot.slane %v2211_v54, %v7018_v23  ;;  %v2107_v24 = vcombine.high %v2062_v37, %v2094_v47 }
 0x1ec   : > { %6109 = vrot.lane.b32.xlu1 %v6108_v10, %s6592_s4  ;;  %v6103_v28 = vpack.i.bf16 %v2174_v35, %v2103_v15  ;;  %v6113_v36 = vpack.i.bf16 %v2175_v43, %v2105_v22  ;;  %v2361_v2 = vrot.slane %v2347_v33, %v7058_v39  ;;  %v2362_v8 = vcombine.low %v2329_v6, %v2345_v14 }
 0x1ed   : > { %v6128_v51 = vpack.i.bf16 %v2173_v56, %v2108_v46  ;;  %v2378_v31 = vcombine.high %v7658_v58, %v6587_v0  ;;  %v2193_v41 = vrot.slane %v2179_v30, %v7018_v23  ;;  %v2290_v42 = vcombine.low %v2225_v4, %v2241_v7  ;;  %v7703_v46 = vpop.permute.xlu0 %2666 }
 0x1ee   : > { %6104 = vrot.lane.b32.xlu0 %v6103_v28, %s6593_s5  ;;  %v2289_v55 = vrot.slane %v2275_v38, %v7058_v39  ;;  %v6123_v12 = vpack.i.bf16 %v2176_v59, %v2107_v24  ;;  %v2307_v63 = vcombine.high %v7597_v20, %v7600_v40  ;;  %v2177_v47 = vcombine.high %v2173_v56, %v6587_v0  ;;  %v1673_v38 = vld [vmem:[#allocation6 + $0x18] sm:$0xf] }
 0x1ef   : > { %v2257_v57 = vrot.slane %v2243_v9, %v7058_v39  ;;  %v2258_v37 = vcombine.low %v2193_v41, %v2209_v52  ;;  %v2109_v13 = vcombine.high %v2069_v60, %v2101_v3  ;;  %v2363_v45 = vcombine.high %v2329_v6, %v2345_v14  ;;  %5786 = vmatmul.mubr.msk.f32.gmra.mrb[2].mxu1 %vm1674_vm15, %v1673_v38 }
 0x1f0   : > { %6119 = vrot.lane.b32.xlu1 %v6118_v25, %s6594_s25  ;;  %v2370_v15 = vrot.slane %v2362_v8, %v7058_v39  ;;  %v6138_v53 = vpack.i.bf16 %v2378_v31, %v2307_v63  ;;  %v2379_v10 = vcombine.high %v2361_v2, %v6587_v0  ;;  %v2291_v35 = vcombine.high %v2225_v4, %v2241_v7  ;;  %v7699_v7 = vpop.permute.xlu1 %2668  ;;  %v2625_v31 = vld [vmem:[#allocation2 + $0x55] sm:$0xff] }
 0x1f1   : > { %v2298_v34 = vrot.slane %v2290_v42, %v7058_v39  ;;  %v6133_v49 = vpack.i.bf16 %v2177_v47, %v2109_v13  ;;  %v2309_v32 = vcombine.high %v2257_v57, %v2289_v55  ;;  %v2259_v18 = vcombine.high %v2193_v41, %v2209_v52  ;;  %1841 = vmatprep.mubr.f32.mxu1 %v6587_v0  ;;  %v7711_v24 = vpop.permute.xlu0 %2670 }
 0x1f2   : > { %6114 = vrot.lane.b32.xlu0 %v6113_v36, %s6595_s22  ;;  %v2266_v28 = vrot.slane %v2258_v37, %v7058_v39  ;;  %v2377_v3 = vrot.slane %v2363_v45, %v7058_v39  ;;  %v2308_v43 = vcombine.low %v2257_v57, %v2289_v55  ;;  %v2380_v60 = vcombine.high %v2370_v15, %v6587_v0  ;;  %v2624_v55 = vld [vmem:[#allocation2 + $0x4d] sm:$0xff]  ;;  %v2626_v57 = vld [vmem:[#allocation2 + $0x65] sm:$0xff] }
 0x1f3   : > { %v6148_v27 = vpack.i.bf16 %v2379_v10, %v2309_v32  ;;  %v2305_v54 = vrot.slane %v2291_v35, %v7058_v39  ;;  %v2273_v33 = vrot.slane %v2259_v18, %v7058_v39  ;;  %v2629_v37 = vld [vmem:[#allocation2 + $0x85] sm:$0xff]  ;;  %v2628_v10 = vld [vmem:[#allocation2 + $0x7d] sm:$0xff] }
 0x1f4   : > { %6129 = vrot.lane.b32.xlu1 %v6128_v51, %s6596_s27  ;;  %v6143_v14 = vpack.i.bf16 %v2361_v2, %v2308_v43  ;;  %v2311_v22 = vcombine.high %v2266_v28, %v2298_v34  ;;  %v2310_v56 = vcombine.low %v2266_v28, %v2298_v34  ;;  %v2381_v30 = vcombine.high %v2377_v3, %v6587_v0  ;;  %v7708_v4 = vpop.permute.xlu1 %2672  ;;  %v2623_v2 = vld [vmem:[#allocation2 + $0x3d] sm:$0xff]  ;;  %v2622_v51 = vld [vmem:[#allocation2 + $0x35] sm:$0xff] }
 0x1f5   : > { %v2313_v36 = vcombine.high %v2273_v33, %v2305_v54  ;;  %v2312_v52 = vcombine.low %v2273_v33, %v2305_v54  ;;  %v2631_v35 = vld [vmem:[#allocation2 + $0x9d] sm:$0xff]  ;;  %v2633_v33 = vld [vmem:[#allocation2 + $0xb5] sm:$0xff] }
 0x1f6   : > { %6124 = vrot.lane.b32.xlu0 %v6123_v12, %s6597_s28  ;;  %v6158_v25 = vpack.i.bf16 %v2380_v60, %v2311_v22  ;;  %v6153_v6 = vpack.i.bf16 %v2370_v15, %v2310_v56  ;;  %v2627_v12 = vld [vmem:[#allocation2 + $0x6d] sm:$0xff] }
 0x1f7   : > { %v6168_v59 = vpack.i.bf16 %v2381_v30, %v2313_v36  ;;  %v6163_v9 = vpack.i.bf16 %v2377_v3, %v2312_v52  ;;  %v2632_v52 = vld [vmem:[#allocation2 + $0xad] sm:$0xff] }
 0x1f8   : > { %6139 = vrot.lane.b32.xlu1 %v6138_v53, %s6593_s5 }
 0x1fa   : > { %6134 = vrot.lane.b32.xlu0 %v6133_v49, %s6598_s6 }
 0x1fc   : > { %6149 = vrot.lane.b32.xlu1 %v6148_v27, %s6595_s22 }
 0x1fe   : > { %6144 = vrot.lane.b32.xlu0 %v6143_v14, %s6592_s4  ;;  %v2630_v14 = vld [vmem:[#allocation2 + $0x95] sm:$0xff] }
 0x200   : > { %6159 = vrot.lane.b32.xlu1 %v6158_v25, %s6597_s28 }
 0x202   : > { %6154 = vrot.lane.b32.xlu0 %v6153_v6, %s6594_s25 }
 0x204   : > { %6169 = vrot.lane.b32.xlu1 %v6168_v59, %s6598_s6 }
 0x206   : > { %6164 = vrot.lane.b32.xlu0 %v6163_v9, %s6596_s27 }
 0x208   : > { %2676 = vrot.lane.b32.xlu1 %v2623_v2, %s6600_s20 }
 0x20a   : > { %v6040_v8 = vpop.permute.xlu1 %6039  ;;  %2674 = vrot.lane.b32.xlu0 %v2622_v51, %s6600_s20 }
 0x20b   : > { %v6042_v3 = vunpack.i.h.bf16 %v6040_v8  ;;  %v6041_v27 = vunpack.i.l.bf16 %v6040_v8 }
 0x20c   : > { %v6035_v41 = vpop.permute.xlu0 %6034  ;;  %2680 = vrot.lane.b32.xlu1 %v2625_v31, %s6600_s20 }
 0x20d   : > { %v6037_v45 = vunpack.i.h.bf16 %v6035_v41  ;;  %v6036_v15 = vunpack.i.l.bf16 %v6035_v41 }
 0x20e   : > { %v6050_v42 = vpop.permute.xlu1 %6049  ;;  %2678 = vrot.lane.b32.xlu0 %v2624_v55, %s6600_s20 }
 0x20f   : > { %v1088_v49 = vsel %vm1086_vm5, %v7401_v48, %v6037_v45  ;;  %v1087_v32 = vsel %vm1086_vm5, %v694_v62, %v6036_v15  ;;  %v6052_v9 = vunpack.i.h.bf16 %v6050_v42  ;;  %v6051_v2 = vunpack.i.l.bf16 %v6050_v42  ;;  %v2634_v45 = vld [vmem:[#allocation2 + $0xc5] sm:$0xff] }
 0x210   : > { %v6045_v63 = vpop.permute.xlu0 %6044  ;;  %2684 = vrot.lane.b32.xlu1 %v2627_v12, %s6600_s20  ;;  %v1090_v22 = vsel %vm1089_vm6, %v1087_v32, %v6041_v27  ;;  %v1091_v48 = vsel %vm1089_vm6, %v1088_v49, %v6042_v3  ;;  %v2635_v12 = vld [vmem:[#allocation2 + $0xcd] sm:$0xff] }
 0x211   : > { %v6047_v18 = vunpack.i.h.bf16 %v6045_v63  ;;  %v6046_v28 = vunpack.i.l.bf16 %v6045_v63 }
 0x212   : > { %v7718_v47 = vpop.permute.xlu1 %6059  ;;  %2682 = vrot.lane.b32.xlu0 %v2626_v57, %s6600_s20 }
 0x213   : > { %v1093_v50 = vsel %vm1092_vm7, %v1090_v22, %v6046_v28  ;;  %v1094_v62 = vsel %vm1092_vm7, %v1091_v48, %v6047_v18  ;;  %v6062_v31 = vunpack.i.h.bf16 %v7718_v47  ;;  %v6061_v41 = vunpack.i.l.bf16 %v7718_v47  ;;  %v2639_v28 = vld [vmem:[#allocation2 + $0xfd] sm:$0xff] }
 0x214   : > { %v6055_v13 = vpop.permute.xlu0 %6054  ;;  %2688 = vrot.lane.b32.xlu1 %v2629_v37, %s6600_s20  ;;  %v1096_v19 = vsel %vm1095_vm8, %v1093_v50, %v6051_v2  ;;  %v2638_v2 = vld [vmem:[#allocation2 + $0xf5] sm:$0xff] }
 0x215   : > { %v6057_v30 = vunpack.i.h.bf16 %v6055_v13  ;;  %v6056_v38 = vunpack.i.l.bf16 %v6055_v13 }
 0x216   : > { %v6070_v53 = vpop.permute.xlu1 %6069  ;;  %2686 = vrot.lane.b32.xlu0 %v2628_v10, %s6600_s20 }
 0x217   : > { %v6072_v43 = vunpack.i.h.bf16 %v6070_v53  ;;  %v6071_v60 = vunpack.i.l.bf16 %v6070_v53  ;;  %v1099_v57 = vsel %vm1098_vm9, %v1096_v19, %v6056_v38  ;;  %v3401_v19 = vld [vmem:[#allocation2 + $0xe0] sm:$0xff] }
 0x218   : > { %v7723_v34 = vpop.permute.xlu0 %6064  ;;  %2692 = vrot.lane.b32.xlu1 %v2631_v35, %s6600_s20  ;;  %v1102_v27 = vsel %vm1101_vm10, %v1099_v57, %v6061_v41  ;;  %v3387_v41 = vld [vmem:[#allocation2 + $0x38] sm:$0xff] }
 0x219   : > { %v1108_v6 = vsel %vm1086_vm5, %v7433_v11, %v6072_v43  ;;  %v1107_v36 = vsel %vm1086_vm5, %v898_v61, %v6071_v60  ;;  %v1097_v61 = vsel %vm1095_vm8, %v1094_v62, %v6052_v9  ;;  %v6067_v15 = vunpack.i.h.bf16 %v7723_v34  ;;  %v1121_v9 = vld [vmem:[#allocation6] sm:$0xff]  ;;  %v3384_v57 = vld [vmem:[#allocation2 + $0x18] sm:$0xff] }
 0x21a   : > { %v6080_v54 = vpop.permute.xlu1 %6079  ;;  %2690 = vrot.lane.b32.xlu0 %v2630_v14, %s6600_s20  ;;  %v1100_v37 = vsel %vm1098_vm9, %v1097_v61, %v6057_v30  ;;  %v6066_v53 = vunpack.i.l.bf16 %v7723_v34  ;;  %v3399_v61 = vld [vmem:[#allocation2 + $0xc8] sm:$0xff] }
 0x21b   : > { %v6082_v11 = vunpack.i.h.bf16 %v6080_v54  ;;  %v6081_v55 = vunpack.i.l.bf16 %v6080_v54  ;;  %v1103_v43 = vsel %vm1101_vm10, %v1100_v37, %v6062_v31  ;;  %v3389_v31 = vld [vmem:[#allocation2 + $0x50] sm:$0xff]  ;;  %v3382_v37 = vld [vmem:[#allocation2] sm:$0xff] }
 0x21c   : > { %v6075_v5 = vpop.permute.xlu0 %6074  ;;  %2696 = vrot.lane.b32.xlu1 %v2633_v33, %s6600_s20  ;;  %v2637_v33 = vld [vmem:[#allocation2 + $0xe5] sm:$0xff]  ;;  %v1106_v50 = vsel %vm1104_vm11, %v1103_v43, %v6067_v15 }
 0x21d   : > { %v6077_v25 = vunpack.i.h.bf16 %v6075_v5  ;;  %v6076_v56 = vunpack.i.l.bf16 %v6075_v5  ;;  %v1105_v5 = vsel %vm1104_vm11, %v1102_v27, %v6066_v53  ;;  %v3390_v15 = vld [vmem:[#allocation2 + $0x60] sm:$0xff]  ;;  %v3396_v53 = vld [vmem:[#allocation2 + $0xa8] sm:$0xff] }
 0x21e   : > { %v6090_v59 = vpop.permute.xlu1 %6089  ;;  %2694 = vrot.lane.b32.xlu0 %v2632_v52, %s6600_s20  ;;  %v2640_v52 = vld [vmem:[#allocation2 + $0x10d] sm:$0xff] }
 0x21f   : > { %v1110_v8 = vsel %vm1089_vm6, %v1108_v6, %v6077_v25  ;;  %v1109_v51 = vsel %vm1089_vm6, %v1107_v36, %v6076_v56  ;;  %v6092_v32 = vunpack.i.h.bf16 %v6090_v59  ;;  %v6091_v18 = vunpack.i.l.bf16 %v6090_v59  ;;  %v2636_v56 = vld [vmem:[#allocation2 + $0xdd] sm:$0xff]  ;;  %v2641_v59 = vld [vmem:[#allocation2 + $0x115] sm:$0xff]  ;;  %v4147_v43 = vld [vmem:[#allocation2 + $0xb] sm:$0xff] }
 0x220   : > { %v6085_v29 = vpop.permute.xlu0 %6084  ;;  %2700 = vrot.lane.b32.xlu1 %v2635_v12, %s6600_s20  ;;  %v1111_v13 = vsel %vm1092_vm7, %v1109_v51, %v6081_v55  ;;  %v1112_v47 = vsel %vm1092_vm7, %v1110_v8, %v6082_v11  ;;  %v5826_v36 = vpack.c.bf16 %v1106_v50, %v1105_v5  ;;  %v3385_v8 = vld [vmem:[#allocation2 + $0x20] sm:$0xff]  ;;  %v3383_v51 = vld [vmem:[#allocation2 + $0x8] sm:$0xff]  ;;  %v3397_v12 = vld [vmem:[#allocation2 + $0xb0] sm:$0xff] }
 0x221   : > { %v6087_v42 = vunpack.i.h.bf16 %v6085_v29  ;;  %v6086_v63 = vunpack.i.l.bf16 %v6085_v29  ;;  %v3393_v11 = vld [vmem:[#allocation2 + $0x80] sm:$0xff]  ;;  %v3391_v55 = vld [vmem:[#allocation2 + $0x68] sm:$0xff]  ;;  %v3395_v29 = vld [vmem:[#allocation2 + $0x98] sm:$0xff] }
 0x222   : > { %v6100_v49 = vpop.permute.xlu1 %6099  ;;  %2698 = vrot.lane.b32.xlu0 %v2634_v45, %s6600_s20  ;;  %v3392_v45 = vld [vmem:[#allocation2 + $0x78] sm:$0xff] }
 0x223   : > { %v1113_v10 = vsel %vm1095_vm8, %v1111_v13, %v6086_v63  ;;  %v1114_v35 = vsel %vm1095_vm8, %v1112_v47, %v6087_v42  ;;  %v6102_v34 = vunpack.i.h.bf16 %v6100_v49  ;;  %v6101_v14 = vunpack.i.l.bf16 %v6100_v49  ;;  %v3405_v42 = vld [vmem:[#allocation2 + $0x110] sm:$0xff]  ;;  %v3403_v63 = vld [vmem:[#allocation2 + $0xf8] sm:$0xff]  ;;  %v3388_v13 = vld [vmem:[#allocation2 + $0x48] sm:$0xff] }
 0x224   : > { %v6095_v3 = vpop.permute.xlu0 %6094  ;;  %2708 = vrot.lane.b32.xlu1 %v2639_v28, %s6600_s20  ;;  %v1115_v22 = vsel %vm1098_vm9, %v1113_v10, %v6091_v18  ;;  %v1116_v48 = vsel %vm1098_vm9, %v1114_v35, %v6092_v32  ;;  %v3386_v47 = vld [vmem:[#allocation2 + $0x30] sm:$0xff]  ;;  %v3400_v35 = vld [vmem:[#allocation2 + $0xd8] sm:$0xff]  ;;  %v3398_v49 = vld [vmem:[#allocation2 + $0xc0] sm:$0xff] }
 0x225   : > { %v6097_v60 = vunpack.i.h.bf16 %v6095_v3  ;;  %v6096_v54 = vunpack.i.l.bf16 %v6095_v3  ;;  %v3394_v10 = vld [vmem:[#allocation2 + $0x90] sm:$0xff]  ;;  %v3404_v32 = vld [vmem:[#allocation2 + $0x108] sm:$0xff] }
 0x226   : > { %2704 = vrot.lane.b32.xlu0 %v2637_v33, %s6600_s20  ;;  %v3402_v18 = vld [vmem:[#allocation2 + $0xf0] sm:$0xff]  ;;  %v4149_v3 = vld [vmem:[#allocation2 + $0x23] sm:$0xff] }
 0x227   : > { %v1117_v62 = vsel %vm1101_vm10, %v1115_v22, %v6096_v54  ;;  %v1118_v25 = vsel %vm1101_vm10, %v1116_v48, %v6097_v60  ;;  %v4153_v54 = vld [vmem:[#allocation2 + $0x53] sm:$0xff]  ;;  %v4157_v48 = vld [vmem:[#allocation2 + $0x83] sm:$0xff] }
 0x228   : > { %v1119_v30 = vsel %vm1104_vm11, %v1117_v62, %v6101_v14  ;;  %v1120_v38 = vsel %vm1104_vm11, %v1118_v25, %v6102_v34  ;;  %2702 = vrot.lane.b32.xlu1 %v2636_v56, %s6600_s20  ;;  %v4151_v14 = vld [vmem:[#allocation2 + $0x3b] sm:$0xff]  ;;  %v4155_v62 = vld [vmem:[#allocation2 + $0x6b] sm:$0xff]  ;;  %v4161_v56 = vld [vmem:[#allocation2 + $0xb3] sm:$0xff] }
 0x229   : > { %v5823_v6 = vpack.c.bf16 %v1120_v38, %v1119_v30 }
 0x22a   : > { %2712 = vrot.lane.b32.xlu0 %v2641_v59, %s6600_s20 }
 0x22b   : > { %5825 = vmatprep.subr.msk.bf16.mxu1 %vm7541_vm14, %v5823_v6 }
 0x22c   : > { %5828 = vmatpush1.bf16.msk.msra.mxu1 %vm7541_vm14, %v5826_v36  ;;  %2710 = vrot.lane.b32.xlu1 %v2640_v52, %s6600_s20  ;;  %v4159_v36 = vld [vmem:[#allocation2 + $0x9b] sm:$0xff] }
 0x22e   : > { %2706 = vrot.lane.b32.xlu0 %v2638_v2, %s6600_s20 }
 0x22f   : > { %5789 = vmatmul.mubr.msk.f32.vlgmr.msra.gmra.mrb[0].mxu1 %vm1674_vm15, %v1121_v9 }
 0x230   : > { %1847 = vmatprep.mubr.f32.mxu1 %v6587_v0  ;;  %3436 = vrot.lane.b32.xlu1 %v3385_v8, %s6589_s17 }
 0x232   : > { %3432 = vrot.lane.b32.xlu0 %v3383_v51, %s6589_s17 }
 0x234   : > { %3444 = vrot.lane.b32.xlu1 %v3389_v31, %s6589_s17 }
 0x236   : > { %3440 = vrot.lane.b32.xlu0 %v3387_v41, %s6589_s17  ;;  %v4165_v41 = vld [vmem:[#allocation2 + $0xe3] sm:$0xff] }
 0x238   : > { %3452 = vrot.lane.b32.xlu1 %v3393_v11, %s6589_s17 }
 0x23a   : > { %3448 = vrot.lane.b32.xlu0 %v3391_v55, %s6589_s17  ;;  %v4163_v55 = vld [vmem:[#allocation2 + $0xcb] sm:$0xff] }
 0x23c   : > { %3460 = vrot.lane.b32.xlu1 %v3397_v12, %s6589_s17 }
 0x23e   : > { %3456 = vrot.lane.b32.xlu0 %v3395_v29, %s6589_s17 }
 0x240   : > { %3468 = vrot.lane.b32.xlu1 %v3401_v19, %s6589_s17 }
 0x242   : > { %3464 = vrot.lane.b32.xlu0 %v3399_v61, %s6589_s17 }
 0x244   : > { %3476 = vrot.lane.b32.xlu1 %v3405_v42, %s6589_s17 }
 0x246   : > { %3472 = vrot.lane.b32.xlu0 %v3403_v63, %s6589_s17 }
 0x248   : > { %3434 = vrot.lane.b32.xlu1 %v3384_v57, %s6589_s17 }
 0x24a   : > { %3430 = vrot.lane.b32.xlu0 %v3382_v37, %s6589_s17 }
 0x24c   : > { %3442 = vrot.lane.b32.xlu1 %v3388_v13, %s6589_s17 }
 0x24e   : > { %3438 = vrot.lane.b32.xlu0 %v3386_v47, %s6589_s17  ;;  %v4169_v47 = vld [vmem:[#allocation2 + $0x113] sm:$0xff] }
 0x250   : > { %3450 = vrot.lane.b32.xlu1 %v3392_v45, %s6589_s17 }
 0x252   : > { %3446 = vrot.lane.b32.xlu0 %v3390_v15, %s6589_s17 }
 0x254   : > { %3458 = vrot.lane.b32.xlu1 %v3396_v53, %s6589_s17 }
 0x256   : > { %3454 = vrot.lane.b32.xlu0 %v3394_v10, %s6589_s17 }
 0x258   : > { %3466 = vrot.lane.b32.xlu1 %v3400_v35, %s6589_s17 }
 0x25a   : > { %3462 = vrot.lane.b32.xlu0 %v3398_v49, %s6589_s17 }
 0x25c   : > { %3474 = vrot.lane.b32.xlu1 %v3404_v32, %s6589_s17 }
 0x25e   : > { %v6110_v28 = vpop.permute.xlu1 %6109  ;;  %3470 = vrot.lane.b32.xlu0 %v3402_v18, %s6589_s17 }
 0x25f   : > { %v6112_v51 = vunpack.i.h.bf16 %v6110_v28  ;;  %v6111_v31 = vunpack.i.l.bf16 %v6110_v28 }
 0x260   : > { %v6105_v27 = vpop.permute.xlu0 %6104  ;;  %4200 = vrot.lane.b32.xlu1 %v4149_v3, %s6589_s17 }
 0x261   : > { %v6107_v5 = vunpack.i.h.bf16 %v6105_v27  ;;  %v6106_v50 = vunpack.i.l.bf16 %v6105_v27 }
 0x262   : > { %v6120_v60 = vpop.permute.xlu1 %6119  ;;  %4196 = vrot.lane.b32.xlu0 %v4147_v43, %s6589_s17 }
 0x263   : > { %v2495_v38 = vsel %vm1086_vm5, %v7634_v1, %v6107_v5  ;;  %v2494_v6 = vsel %vm1086_vm5, %v2102_v44, %v6106_v50  ;;  %v6122_v45 = vunpack.i.h.bf16 %v6120_v60  ;;  %v6121_v15 = vunpack.i.l.bf16 %v6120_v60 }
 0x264   : > { %v6115_v34 = vpop.permute.xlu0 %6114  ;;  %4208 = vrot.lane.b32.xlu1 %v4153_v54, %s6589_s17  ;;  %v2496_v1 = vsel %vm1089_vm6, %v2494_v6, %v6111_v31  ;;  %v2497_v17 = vsel %vm1089_vm6, %v2495_v38, %v6112_v51  ;;  %v4148_v54 = vld [vmem:[#allocation2 + $0x1b] sm:$0xff]  ;;  %v4146_v38 = vld [vmem:[#allocation2 + $0x3] sm:$0xff]  ;;  %v4152_v51 = vld [vmem:[#allocation2 + $0x4b] sm:$0xff] }
 0x265   : > { %v6117_v59 = vunpack.i.h.bf16 %v6115_v34  ;;  %v6116_v52 = vunpack.i.l.bf16 %v6115_v34 }
 0x266   : > { %v7810_v22 = vpop.permute.xlu1 %6129  ;;  %4204 = vrot.lane.b32.xlu0 %v4151_v14, %s6589_s17 }
 0x267   : > { %v2498_v12 = vsel %vm1092_vm7, %v2496_v1, %v6116_v52  ;;  %v2499_v29 = vsel %vm1092_vm7, %v2497_v17, %v6117_v59  ;;  %v6132_v50 = vunpack.i.h.bf16 %v7810_v22 }
 0x268   : > { %v6125_v33 = vpop.permute.xlu0 %6124  ;;  %4216 = vrot.lane.b32.xlu1 %v4157_v48, %s6589_s17  ;;  %v2500_v35 = vsel %vm1095_vm8, %v2498_v12, %v6121_v15  ;;  %v2501_v49 = vsel %vm1095_vm8, %v2499_v29, %v6122_v45  ;;  %v4156_v29 = vld [vmem:[#allocation2 + $0x7b] sm:$0xff]  ;;  %v4162_v15 = vld [vmem:[#allocation2 + $0xc3] sm:$0xff] }
 0x269   : > { %v6127_v63 = vunpack.i.h.bf16 %v6125_v33  ;;  %v6126_v57 = vunpack.i.l.bf16 %v6125_v33 }
 0x26a   : > { %v6140_v25 = vpop.permute.xlu1 %6139  ;;  %4212 = vrot.lane.b32.xlu0 %v4155_v62, %s6589_s17  ;;  %v6131_v62 = vunpack.i.l.bf16 %v7810_v22 }
 0x26b   : > { %v6142_v9 = vunpack.i.h.bf16 %v6140_v25  ;;  %v6141_v2 = vunpack.i.l.bf16 %v6140_v25  ;;  %v2502_v3 = vsel %vm1098_vm9, %v2500_v35, %v6126_v57  ;;  %v2503_v27 = vsel %vm1098_vm9, %v2501_v49, %v6127_v63  ;;  %v4160_v63 = vld [vmem:[#allocation2 + $0xab] sm:$0xff] }
 0x26c   : > { %v7815_v30 = vpop.permute.xlu0 %6134  ;;  %4224 = vrot.lane.b32.xlu1 %v4161_v56, %s6589_s17 }
 0x26d   : > { %v2509_v19 = vsel %vm1086_vm5, %v7658_v58, %v6142_v9  ;;  %v2508_v61 = vsel %vm1086_vm5, %v2306_v21, %v6141_v2  ;;  %v4167_v21 = vld [vmem:[#allocation2 + $0xfb] sm:$0xff]  ;;  %v6137_v34 = vunpack.i.h.bf16 %v7815_v30  ;;  %v6136_v14 = vunpack.i.l.bf16 %v7815_v30 }
 0x26e   : > { %v6150_v8 = vpop.permute.xlu1 %6149  ;;  %4220 = vrot.lane.b32.xlu0 %v4159_v36, %s6589_s17  ;;  %v2504_v30 = vsel %vm1101_vm10, %v2502_v3, %v6131_v62  ;;  %v2505_v2 = vsel %vm1101_vm10, %v2503_v27, %v6132_v50  ;;  %v4917_v62 = vld [vmem:[#allocation2 + $0x56] sm:$0xff] }
 0x26f   : > { %v6152_v53 = vunpack.i.h.bf16 %v6150_v8  ;;  %v6151_v10 = vunpack.i.l.bf16 %v6150_v8  ;;  %v2506_v31 = vsel %vm1104_vm11, %v2504_v30, %v6136_v14 }
 0x270   : > { %v6145_v11 = vpop.permute.xlu0 %6144  ;;  %4232 = vrot.lane.b32.xlu1 %v4165_v41, %s6589_s17  ;;  %v2507_v41 = vsel %vm1104_vm11, %v2505_v2, %v6137_v34  ;;  %v4911_v34 = vld [vmem:[#allocation2 + $0xe] sm:$0xff] }
 0x271   : > { %v6147_v26 = vunpack.i.h.bf16 %v6145_v11  ;;  %v6146_v44 = vunpack.i.l.bf16 %v6145_v11  ;;  %v5832_v12 = vpack.c.bf16 %v2507_v41, %v2506_v31 }
 0x272   : > { %v6160_v42 = vpop.permute.xlu1 %6159  ;;  %4228 = vrot.lane.b32.xlu0 %v4163_v55, %s6589_s17 }
 0x273   : > { %v2511_v37 = vsel %vm1089_vm6, %v2509_v19, %v6147_v26  ;;  %v2510_v13 = vsel %vm1089_vm6, %v2508_v61, %v6146_v44  ;;  %v6162_v48 = vunpack.i.h.bf16 %v6160_v42  ;;  %v6161_v33 = vunpack.i.l.bf16 %v6160_v42  ;;  %v4150_v26 = vld [vmem:[#allocation2 + $0x33] sm:$0xff]  ;;  %v4154_v61 = vld [vmem:[#allocation2 + $0x63] sm:$0xff] }
 0x274   : > { %v6155_v58 = vpop.permute.xlu0 %6154  ;;  %4240 = vrot.lane.b32.xlu1 %v4169_v47, %s6589_s17  ;;  %v2512_v32 = vsel %vm1092_vm7, %v2510_v13, %v6151_v10  ;;  %v2513_v18 = vsel %vm1092_vm7, %v2511_v37, %v6152_v53  ;;  %v4158_v37 = vld [vmem:[#allocation2 + $0x93] sm:$0xff]  ;;  %v4164_v47 = vld [vmem:[#allocation2 + $0xdb] sm:$0xff]  ;;  %v4168_v10 = vld [vmem:[#allocation2 + $0x10b] sm:$0xff] }
 0x275   : > { %v6157_v20 = vunpack.i.h.bf16 %v6155_v58  ;;  %v6156_v40 = vunpack.i.l.bf16 %v6155_v58 }
 0x276   : > { %v6170_v28 = vpop.permute.xlu1 %6169  ;;  %4236 = vrot.lane.b32.xlu0 %v4167_v21, %s6589_s17 }
 0x277   : > { %v2514_v43 = vsel %vm1095_vm8, %v2512_v32, %v6156_v40  ;;  %v2515_v60 = vsel %vm1095_vm8, %v2513_v18, %v6157_v20  ;;  %v6172_v6 = vunpack.i.h.bf16 %v6170_v28  ;;  %v6171_v36 = vunpack.i.l.bf16 %v6170_v28  ;;  %v4166_v20 = vld [vmem:[#allocation2 + $0xf3] sm:$0xff]  ;;  %v4913_v28 = vld [vmem:[#allocation2 + $0x26] sm:$0xff] }
 0x278   : > { %v6165_v5 = vpop.permute.xlu0 %6164  ;;  %4198 = vrot.lane.b32.xlu1 %v4148_v54, %s6589_s17  ;;  %v2516_v59 = vsel %vm1098_vm9, %v2514_v43, %v6161_v33  ;;  %v2517_v52 = vsel %vm1098_vm9, %v2515_v60, %v6162_v48 }
 0x279   : > { %v6167_v25 = vunpack.i.h.bf16 %v6165_v5  ;;  %v6166_v56 = vunpack.i.l.bf16 %v6165_v5 }
 0x27a   : > { %v7856_v9 = vpop.permute.xlu1 %2676  ;;  %4194 = vrot.lane.b32.xlu0 %v4146_v38, %s6589_s17 }
 0x27b   : > { %v2518_v8 = vsel %vm1101_vm10, %v2516_v59, %v6166_v56  ;;  %v2519_v22 = vsel %vm1101_vm10, %v2517_v52, %v6167_v25  ;;  %v2942_v32 = vcombine.low %v7699_v7, %v7856_v9  ;;  %v4915_v59 = vld [vmem:[#allocation2 + $0x3e] sm:$0xff] }
 0x27c   : > { %v7865_v11 = vpop.permute.xlu0 %2674  ;;  %4206 = vrot.lane.b32.xlu1 %v4152_v51, %s6589_s17  ;;  %v2520_v1 = vsel %vm1104_vm11, %v2518_v8, %v6171_v36  ;;  %v2521_v17 = vsel %vm1104_vm11, %v2519_v22, %v6172_v6  ;;  %v4921_v22 = vld [vmem:[#allocation2 + $0x86] sm:$0xff] }
 0x27d   : > { %v5829_v55 = vpack.c.bf16 %v2521_v17, %v2520_v1  ;;  %v2738_v3 = vcombine.low %v7703_v46, %v7865_v11  ;;  %v7936_v50 = vrot.slane %v2942_v32, %v7018_v23  ;;  %v4919_v1 = vld [vmem:[#allocation2 + $0x6e] sm:$0xff]  ;;  %v4931_v32 = vld [vmem:[#allocation2 + $0xfe] sm:$0xff] }
 0x27e   : > { %v7870_v44 = vpop.permute.xlu1 %2680  ;;  %4202 = vrot.lane.b32.xlu0 %v4150_v26, %s6589_s17 }
 0x27f   : > { %5831 = vmatprep.subr.msk.bf16.mxu1 %vm7541_vm14, %v5829_v55  ;;  %v2958_v40 = vcombine.low %v7708_v4, %v7870_v44  ;;  %v7939_v25 = vrot.slane %v2738_v3, %v7018_v23 }
 0x280   : > { %v7875_v19 = vpop.permute.xlu0 %2678  ;;  %4214 = vrot.lane.b32.xlu1 %v4156_v29, %s6589_s17  ;;  %5834 = vmatpush1.bf16.msk.msra.mxu1 %vm7541_vm14, %v5832_v12  ;;  %v4925_v12 = vld [vmem:[#allocation2 + $0xb6] sm:$0xff] }
 0x281   : > { %v2754_v21 = vcombine.low %v7711_v24, %v7875_v19  ;;  %v7924_v14 = vrot.slane %v2958_v40, %v7018_v23 }
 0x282   : > { %v7880_v42 = vpop.permute.xlu1 %2684  ;;  %4210 = vrot.lane.b32.xlu0 %v4154_v61, %s6589_s17 }
 0x283   : > { %v7927_v48 = vrot.slane %v2754_v21, %v7018_v23  ;;  %v3006_v52 = vcombine.low %v7936_v50, %v7924_v14  ;;  %v4933_v21 = vld [vmem:[#allocation2 + $0x116] sm:$0xff] }
 0x284   : > { %v7883_v57 = vpop.permute.xlu0 %2682  ;;  %4222 = vrot.lane.b32.xlu1 %v4160_v63, %s6589_s17 }
 0x285   : > { %v2802_v30 = vcombine.low %v7939_v25, %v7927_v48  ;;  %v7971_v17 = vrot.slane %v3006_v52, %v7058_v39 }
 0x286   : > { %v7886_v13 = vpop.permute.xlu1 %2688  ;;  %4218 = vrot.lane.b32.xlu0 %v4158_v37, %s6589_s17  ;;  %v4923_v37 = vld [vmem:[#allocation2 + $0x9e] sm:$0xff] }
 0x287   : > { %v7974_v26 = vrot.slane %v2802_v30, %v7058_v39 }
 0x288   : > { %v7889_v45 = vpop.permute.xlu0 %2686  ;;  %4230 = vrot.lane.b32.xlu1 %v4164_v47, %s6589_s17 }
 0x28a   : > { %v7892_v53 = vpop.permute.xlu1 %2692  ;;  %4226 = vrot.lane.b32.xlu0 %v4162_v15, %s6589_s17  ;;  %v4929_v15 = vld [vmem:[#allocation2 + $0xe6] sm:$0xff] }
 0x28b   : > { %v2974_v35 = vcombine.low %v7880_v42, %v7892_v53 }
 0x28c   : > { %v7895_v58 = vpop.permute.xlu0 %2690  ;;  %4238 = vrot.lane.b32.xlu1 %v4168_v10, %s6589_s17 }
 0x28d   : > { %v2770_v27 = vcombine.low %v7883_v57, %v7895_v58  ;;  %v7930_v33 = vrot.slane %v2974_v35, %v7018_v23 }
 0x28e   : > { %v7904_v49 = vpop.permute.xlu1 %2696  ;;  %4234 = vrot.lane.b32.xlu0 %v4166_v20, %s6589_s17  ;;  %v4927_v20 = vld [vmem:[#allocation2 + $0xce] sm:$0xff] }
 0x28f   : > { %v2990_v18 = vcombine.low %v7886_v13, %v7904_v49  ;;  %v7942_v56 = vrot.slane %v2770_v27, %v7018_v23  ;;  %v2959_v27 = vcombine.high %v7708_v4, %v7870_v44  ;;  %v4914_v44 = vld [vmem:[#allocation2 + $0x36] sm:$0xff] }
 0x290   : > { %v7915_v43 = vpop.permute.xlu0 %2694  ;;  %4964 = vrot.lane.b32.xlu1 %v4913_v28, %s6589_s17  ;;  %v4912_v28 = vld [vmem:[#allocation2 + $0x1e] sm:$0xff] }
 0x291   : > { %v7919_v60 = vrot.slane %v2990_v18, %v7018_v23  ;;  %v2786_v54 = vcombine.low %v7889_v45, %v7915_v43  ;;  %v2973_v4 = vrot.slane %v2959_v27, %v7018_v23 }
 0x292   : > { %v7932_v5 = vpop.permute.xlu1 %2700  ;;  %4960 = vrot.lane.b32.xlu0 %v4911_v34, %s6589_s17 }
 0x293   : > { %v3038_v38 = vcombine.low %v7930_v33, %v7919_v60  ;;  %v7947_v6 = vrot.slane %v2786_v54, %v7018_v23  ;;  %v4910_v54 = vld [vmem:[#allocation2 + $0x6] sm:$0xff] }
 0x294   : > { %v7949_v36 = vpop.permute.xlu0 %2698  ;;  %4972 = vrot.lane.b32.xlu1 %v4917_v62, %s6589_s17 }
 0x295   : > { %v2834_v2 = vcombine.low %v7942_v56, %v7947_v6  ;;  %v7962_v51 = vrot.slane %v3038_v38, %v7058_v39  ;;  %v2943_v38 = vcombine.high %v7699_v7, %v7856_v9 }
 0x296   : > { %v7958_v8 = vpop.permute.xlu1 %2708  ;;  %4968 = vrot.lane.b32.xlu0 %v4915_v59, %s6589_s17  ;;  %v4916_v59 = vld [vmem:[#allocation2 + $0x4e] sm:$0xff] }
 0x297   : > { %v7965_v31 = vrot.slane %v2834_v2, %v7058_v39  ;;  %v3071_v61 = vcombine.high %v7971_v17, %v7962_v51 }
 0x298   : > { %v7967_v41 = vpop.permute.xlu0 %2704  ;;  %4980 = vrot.lane.b32.xlu1 %v4921_v22, %s6589_s17  ;;  %v3078_v22 = vcombine.low %v7932_v5, %v7958_v8 }
 0x29a   : > { %v7976_v55 = vpop.permute.xlu1 %2702  ;;  %4976 = vrot.lane.b32.xlu0 %v4919_v1, %s6589_s17 }
 0x29c   : > { %v7979_v29 = vpop.permute.xlu0 %2712  ;;  %4988 = vrot.lane.b32.xlu1 %v4925_v12, %s6589_s17  ;;  %v2957_v12 = vrot.slane %v2943_v38, %v7018_v23 }
 0x29d   : > { %v3094_v52 = vcombine.low %v7967_v41, %v7979_v29 }
 0x29e   : > { %v7986_v47 = vpop.permute.xlu1 %2710  ;;  %4984 = vrot.lane.b32.xlu0 %v4923_v37, %s6589_s17  ;;  %v2739_v37 = vcombine.high %v7703_v46, %v7865_v11  ;;  %v3007_v46 = vcombine.high %v7936_v50, %v7924_v14  ;;  %v2991_v11 = vcombine.high %v7886_v13, %v7904_v49  ;;  %v3023_v38 = vcombine.high %v2957_v12, %v2973_v4 }
 0x29f   : > { %v2890_v30 = vcombine.low %v7976_v55, %v7986_v47  ;;  %v2975_v13 = vcombine.high %v7880_v42, %v7892_v53  ;;  %v2787_v49 = vcombine.high %v7889_v45, %v7915_v43  ;;  %v2771_v43 = vcombine.high %v7883_v57, %v7895_v58 }
 0x2a0   : > { %v7989_v10 = vpop.permute.xlu0 %2706  ;;  %4996 = vrot.lane.b32.xlu1 %v4929_v15, %s6589_s17  ;;  %v2755_v15 = vcombine.high %v7711_v24, %v7875_v19  ;;  %v3022_v24 = vcombine.low %v2957_v12, %v2973_v4  ;;  %v4924_v4 = vld [vmem:[#allocation2 + $0xae] sm:$0xff]  ;;  %v8090_v53 = vrot.slane %v2739_v37, %v7018_v23  ;;  %v8114_v58 = vrot.slane %v3023_v38, %v7058_v39 }
 0x2a1   : > { %v2874_v34 = vcombine.low %v7949_v36, %v7989_v10 }
 0x2a2   : > { %v7992_v40 = vpop.permute.xlu1 %3436  ;;  %4992 = vrot.lane.b32.xlu0 %v4927_v20, %s6589_s17  ;;  %v4920_v20 = vld [vmem:[#allocation2 + $0x7e] sm:$0xff] }
 0x2a3   : > { %v8024_v1 = vrot.slane %v2874_v34, %v7018_v23  ;;  %v4918_v34 = vld [vmem:[#allocation2 + $0x66] sm:$0xff] }
 0x2a4   : > { %v7995_v35 = vpop.permute.xlu0 %3432  ;;  %5004 = vrot.lane.b32.xlu1 %v4933_v21, %s6589_s17  ;;  %v8037_v21 = vrot.slane %v3094_v52, %v7018_v23 }
 0x2a6   : > { %v7998_v18 = vpop.permute.xlu1 %3444  ;;  %5000 = vrot.lane.b32.xlu0 %v4931_v32, %s6589_s17  ;;  %v8040_v32 = vrot.slane %v2890_v30, %v7018_v23 }
 0x2a8   : > { %v8001_v3 = vpop.permute.xlu0 %3440  ;;  %4962 = vrot.lane.b32.xlu1 %v4912_v28, %s6589_s17  ;;  %v3722_v28 = vcombine.low %v7992_v40, %v7998_v18  ;;  %v2906_v52 = vcombine.low %v8024_v1, %v8040_v32 }
 0x2a9   : > { %v3706_v7 = vcombine.low %v7995_v35, %v8001_v3 }
 0x2aa   : > { %v8008_v62 = vpop.permute.xlu1 %3452  ;;  %4958 = vrot.lane.b32.xlu0 %v4910_v54, %s6589_s17  ;;  %v8084_v42 = vrot.slane %v3722_v28, %v7018_v23  ;;  %v8103_v28 = vrot.slane %v3022_v24, %v7058_v39  ;;  %v2835_v24 = vcombine.high %v7942_v56, %v7947_v6  ;;  %v3039_v56 = vcombine.high %v7930_v33, %v7919_v60 }
 0x2ab   : > { %v8061_v30 = vrot.slane %v3706_v7, %v7018_v23  ;;  %v2803_v7 = vcombine.high %v7939_v25, %v7927_v48  ;;  %v4922_v25 = vld [vmem:[#allocation2 + $0x96] sm:$0xff] }
 0x2ac   : > { %v8017_v2 = vpop.permute.xlu0 %3448  ;;  %4970 = vrot.lane.b32.xlu1 %v4916_v59, %s6589_s17  ;;  %v8056_v59 = vrot.slane %v3078_v22, %v7018_v23  ;;  %v8077_v22 = vrot.slane %v2755_v15, %v7018_v23  ;;  %v8095_v15 = vrot.slane %v2991_v11, %v7018_v23  ;;  %v2989_v11 = vrot.slane %v2975_v13, %v7018_v23 }
 0x2ad   : > { %v3770_v37 = vcombine.low %v8061_v30, %v8084_v42  ;;  %v2785_v13 = vrot.slane %v2771_v43, %v7018_v23  ;;  %v2849_v33 = vrot.slane %v2835_v24, %v7058_v39 }
 0x2ae   : > { %v8028_v9 = vpop.permute.xlu1 %3460  ;;  %4966 = vrot.lane.b32.xlu0 %v4914_v44, %s6589_s17  ;;  %v3110_v12 = vcombine.low %v8056_v59, %v8037_v21  ;;  %v3054_v6 = vcombine.low %v2989_v11, %v8095_v15  ;;  %v3055_v24 = vcombine.high %v2989_v11, %v8095_v15  ;;  %v2819_v15 = vcombine.high %v8090_v53, %v8077_v22 }
 0x2af   : > { %v3754_v27 = vcombine.low %v8008_v62, %v8028_v9  ;;  %v8145_v63 = vrot.slane %v3770_v37, %v7058_v39 }
 0x2b0   : > { %v8046_v54 = vpop.permute.xlu0 %3456  ;;  %4978 = vrot.lane.b32.xlu1 %v4920_v20, %s6589_s17  ;;  %v8100_v20 = vrot.slane %v3007_v46, %v7058_v39  ;;  %v2801_v46 = vrot.slane %v2787_v49, %v7018_v23  ;;  %v3095_v49 = vcombine.high %v7967_v41, %v7979_v29  ;;  %v3079_v29 = vcombine.high %v7932_v5, %v7958_v8 }
 0x2b1   : > { %v3738_v19 = vcombine.low %v8017_v2, %v8046_v54  ;;  %v8071_v14 = vrot.slane %v3754_v27, %v7018_v23  ;;  %v8106_v27 = vrot.slane %v2906_v52, %v7058_v39  ;;  %v2818_v52 = vcombine.low %v8090_v53, %v8077_v22 }
 0x2b2   : > { %v8063_v44 = vpop.permute.xlu1 %3468  ;;  %4974 = vrot.lane.b32.xlu0 %v4918_v34, %s6589_s17  ;;  %v8121_v34 = vrot.slane %v2803_v7, %v7058_v39  ;;  %v4926_v7 = vld [vmem:[#allocation2 + $0xc6] sm:$0xff]  ;;  %v2850_v41 = vcombine.low %v2785_v13, %v2801_v46  ;;  %v3053_v8 = vrot.slane %v3039_v56, %v7058_v39  ;;  %v8183_v11 = vrot.slane %v3054_v6, %v7058_v39 }
 0x2b3   : > { %v8074_v50 = vrot.slane %v3738_v19, %v7018_v23  ;;  %v4928_v19 = vld [vmem:[#allocation2 + $0xde] sm:$0xff]  ;;  %v2938_v60 = vcombine.high %v8106_v27, %v6587_v0  ;;  %v8196_v22 = vrot.slane %v2818_v52, %v7058_v39  ;;  %v8199_v53 = vrot.slane %v3055_v24, %v7058_v39 }
 0x2b4   : > { %v8086_v45 = vpop.permute.xlu0 %3464  ;;  %4986 = vrot.lane.b32.xlu1 %v4924_v4, %s6589_s17  ;;  %v8126_v4 = vrot.slane %v3110_v12, %v7058_v39  ;;  %v2875_v12 = vcombine.high %v7949_v36, %v7989_v10  ;;  %v4932_v36 = vld [vmem:[#allocation2 + $0x10e] sm:$0xff]  ;;  %v2867_v10 = vcombine.high %v7974_v26, %v7965_v31  ;;  %v8211_v52 = vrot.slane %v2819_v15, %v7058_v39 }
 0x2b5   : > { %v3802_v48 = vcombine.low %v8074_v50, %v8071_v14  ;;  %v3073_v24 = vcombine.high %v8100_v20, %v3053_v8 }
 0x2b6   : > { %v8110_v57 = vpop.permute.xlu1 %3476  ;;  %4982 = vrot.lane.b32.xlu0 %v4922_v25, %s6589_s17  ;;  %v3142_v37 = vcombine.high %v8126_v4, %v6587_v0 }
 0x2b7   : > { %v8129_v38 = vrot.slane %v3802_v48, %v7058_v39  ;;  %v2907_v48 = vcombine.high %v8024_v1, %v8040_v32  ;;  %v3111_v1 = vcombine.high %v8056_v59, %v8037_v21  ;;  %v2891_v32 = vcombine.high %v7976_v55, %v7986_v47  ;;  %v4930_v59 = vld [vmem:[#allocation2 + $0xf6] sm:$0xff] }
 0x2b8   : > { %v8131_v25 = vpop.permute.xlu0 %3472  ;;  %4994 = vrot.lane.b32.xlu1 %v4928_v19, %s6589_s17  ;;  %v3109_v21 = vrot.slane %v3095_v49, %v7018_v23  ;;  %v8172_v55 = vrot.slane %v2875_v12, %v7018_v23  ;;  %v6173_v12 = vpack.i.bf16 %v3142_v37, %v3071_v61 }
 0x2b9   : > { %v2921_v5 = vrot.slane %v2907_v48, %v7058_v39  ;;  %v2905_v56 = vrot.slane %v2891_v32, %v7018_v23  ;;  %v2868_v48 = vcombine.low %v8121_v34, %v2849_v33  ;;  %v3072_v32 = vcombine.low %v8100_v20, %v3053_v8 }
 0x2ba   : > { %v8147_v19 = vpop.permute.xlu1 %3434  ;;  %4990 = vrot.lane.b32.xlu0 %v4926_v7, %s6589_s17  ;;  %v2851_v7 = vcombine.high %v2785_v13, %v2801_v46  ;;  %v8186_v46 = vrot.slane %v2850_v41, %v7058_v39  ;;  %v3093_v13 = vrot.slane %v3079_v29, %v7018_v23  ;;  %v3075_v8 = vcombine.high %v8103_v28, %v8183_v11 }
 0x2bb   : > { %v2922_v29 = vcombine.low %v8172_v55, %v2905_v56  ;;  %v6188_v61 = vpack.i.bf16 %v2921_v5, %v2868_v48 }
 0x2bc   : > { %5002 = vrot.lane.b32.xlu1 %v4932_v36, %s6589_s17  ;;  %v8162_v43 = vpop.permute.xlu0 %3430  ;;  %v6178_v36 = vpack.i.bf16 %v2938_v60, %v2867_v10  ;;  %v3125_v60 = vrot.slane %v3111_v1, %v7058_v39  ;;  %v8202_v6 = vrot.slane %v2851_v7, %v7058_v39  ;;  %v3126_v41 = vcombine.low %v3093_v13, %v3109_v21 }
 0x2bd   : > { %v2939_v1 = vcombine.high %v2921_v5, %v6587_v0  ;;  %v3127_v37 = vcombine.high %v3093_v13, %v3109_v21  ;;  %v3074_v7 = vcombine.low %v8103_v28, %v8183_v11  ;;  %v2870_v5 = vcombine.low %v8196_v22, %v8186_v46 }
 0x2be   : > { %v8174_v47 = vpop.permute.xlu1 %3442  ;;  %4998 = vrot.lane.b32.xlu0 %v4930_v59, %s6589_s17  ;;  %v3143_v48 = vcombine.high %v3125_v60, %v6587_v0  ;;  %v3134_v15 = vrot.slane %v3126_v41, %v7058_v39  ;;  %v2871_v20 = vcombine.high %v8196_v22, %v8186_v46  ;;  %v2872_v21 = vcombine.low %v8211_v52, %v8202_v6  ;;  %s6511_s17 = scalar_lea.vmem %s9069_s19, 512 }
 0x2bf   : > { %v3076_v41 = vcombine.low %v8114_v58, %v8199_v53  ;;  %v2923_v46 = vcombine.high %v8172_v55, %v2905_v56  ;;  %v3842_v28 = vcombine.low %v8086_v45, %v8131_v25  ;;  %v3141_v11 = vrot.slane %v3127_v37, %v7058_v39  ;;  %p6512_p4 = scmp.ne.s32.totalorder %s9069_s19, %s6511_s17 }
 0x2c0   : > { %6179 = vrot.lane.b32.xlu1 %v6178_v36, %s6593_s5  ;;  %v8191_v49 = vpop.permute.xlu0 %3438  ;;  %v6183_v36 = vpack.i.bf16 %v3125_v60, %v3072_v32  ;;  %v2930_v60 = vrot.slane %v2922_v29, %v7058_v39  ;;  %v2873_v22 = vcombine.high %v8211_v52, %v8202_v6  ;;  %v3518_v32 = vcombine.low %v8147_v19, %v8174_v47 }
 0x2c1   : > { %v3502_v13 = vcombine.low %v8162_v43, %v8191_v49  ;;  %v6193_v56 = vpack.i.bf16 %v3143_v48, %v3073_v24  ;;  %v3858_v6 = vcombine.low %v8063_v44, %v8110_v57  ;;  %v3739_v52 = vcombine.high %v8017_v2, %v8046_v54  ;;  %p6513_p6 = pnand %p6512_p4, %p6713_p12 }
 0x2c2   : > { %v8205_v10 = vpop.permute.xlu1 %3450  ;;  %6174 = vrot.lane.b32.xlu0 %v6173_v12, %s6593_s5  ;;  %v2869_v12 = vcombine.high %v8121_v34, %v2849_v33  ;;  %v6208_v24 = vpack.i.bf16 %v2930_v60, %v2870_v5  ;;  %v2937_v2 = vrot.slane %v2923_v46, %v7058_v39  ;;  %v3755_v54 = vcombine.high %v8008_v62, %v8028_v9 }
 0x2c3   : > { %v8263_v37 = vrot.slane %v3502_v13, %v7018_v23  ;;  %v8282_v13 = vrot.slane %v3518_v32, %v7018_v23  ;;  %v8296_v46 = vrot.slane %v3858_v6, %v7018_v23  ;;  %v3771_v9 = vcombine.high %v8061_v30, %v8084_v42  ;;  %p6514_p8 = pneg %p6513_p6 }
 0x2c4   : > { %6189 = vrot.lane.b32.xlu1 %v6188_v61, %s6592_s4  ;;  %v8217_v59 = vpop.permute.xlu0 %3446  ;;  %v6198_v33 = vpack.i.bf16 %v2939_v1, %v2869_v12  ;;  %v3723_v61 = vcombine.high %v7992_v40, %v7998_v18  ;;  %v3707_v1 = vcombine.high %v7995_v35, %v8001_v3  ;;  %v3144_v18 = vcombine.high %v3134_v15, %v6587_v0 }
 0x2c5   : > { %v2940_v35 = vcombine.high %v2930_v60, %v6587_v0  ;;  %v8270_v3 = vrot.slane %v3842_v28, %v7018_v23  ;;  %v3077_v60 = vcombine.high %v8114_v58, %v8199_v53  ;;  %v3566_v58 = vcombine.low %v8263_v37, %v8282_v13 }
 0x2c6   : > { %v8232_v34 = vpop.permute.xlu1 %3458  ;;  %6184 = vrot.lane.b32.xlu0 %v6183_v36, %s6592_s4  ;;  %v8290_v28 = vrot.slane %v3723_v61, %v7018_v23  ;;  %v1122_v61 = vld [vmem:[#allocation6 + $0x8] sm:$0xf]  ;;  %v3145_v30 = vcombine.high %v3141_v11, %v6587_v0  ;;  %v8316_v42 = vrot.slane %v3755_v54, %v7018_v23  ;;  %v3803_v54 = vcombine.high %v8074_v50, %v8071_v14 }
 0x2c7   : > { %v3550_v29 = vcombine.low %v8205_v10, %v8232_v34  ;;  %v3874_v32 = vcombine.low %v8270_v3, %v8296_v46  ;;  %5790 = vmatmul.mubr.msk.f32.gmra.mrb[2].mxu1 %vm1674_vm15, %v1122_v61  ;;  %v3859_v14 = vcombine.high %v8063_v44, %v8110_v57 }
 0x2c8   : > { %6199 = vrot.lane.b32.xlu1 %v6198_v33, %s6595_s22  ;;  %v8251_v55 = vpop.permute.xlu0 %3454  ;;  %v6203_v33 = vpack.i.bf16 %v3134_v15, %v3074_v7  ;;  %v8303_v7 = vrot.slane %v3739_v52, %v7018_v23  ;;  %v6218_v15 = vpack.i.bf16 %v2940_v35, %v2871_v20  ;;  %2601 = vmatprep.mubr.f32.mxu1 %v6587_v0 }
 0x2c9   : > { %v3534_v40 = vcombine.low %v8217_v59, %v8251_v55  ;;  %v8273_v12 = vrot.slane %v3550_v29, %v7018_v23  ;;  %v8293_v29 = vrot.slane %v3707_v1, %v7018_v23  ;;  %v2941_v1 = vcombine.high %v2937_v2, %v6587_v0 }
 0x2ca   : > { %v8265_v36 = vpop.permute.xlu1 %3466  ;;  %6194 = vrot.lane.b32.xlu0 %v6193_v56, %s6595_s22  ;;  %v6213_v56 = vpack.i.bf16 %v3144_v18, %v3075_v8  ;;  %v6228_v52 = vpack.i.bf16 %v2937_v2, %v2872_v21  ;;  %v8329_v35 = vrot.slane %v3771_v9, %v7058_v39  ;;  %v8342_v61 = vrot.slane %v3874_v32, %v7058_v39  ;;  %v2523_v2 = vld [vmem:[#allocation6 + $0x20] sm:$0xff] }
 0x2cb   : > { %v8276_v48 = vrot.slane %v3534_v40, %v7018_v23  ;;  %v3786_v8 = vcombine.low %v8293_v29, %v8290_v28  ;;  %v6233_v9 = vpack.i.bf16 %v3145_v30, %v3077_v60  ;;  %5793 = vmatmul.mubr.msk.f32.vlgmr.msra.gmra.mrb[0].mxu1 %vm1674_vm15, %v2523_v2  ;;  %v3843_v32 = vcombine.high %v8086_v45, %v8131_v25 }
 0x2cc   : > { %6209 = vrot.lane.b32.xlu1 %v6208_v24, %s6594_s25  ;;  %v8285_v5 = vpop.permute.xlu0 %3462  ;;  %v6223_v24 = vpack.i.bf16 %v3141_v11, %v3076_v41  ;;  %v6238_v11 = vpack.i.bf16 %v2941_v1, %v2873_v22  ;;  %v3875_v22 = vcombine.high %v8270_v3, %v8296_v46  ;;  %2607 = vmatprep.mubr.f32.mxu1 %v6587_v0 }
 0x2cd   : > { %v3598_v62 = vcombine.low %v8276_v48, %v8273_v12  ;;  %v8362_v57 = vrot.slane %v3803_v54, %v7058_v39  ;;  %v3599_v1 = vcombine.high %v8276_v48, %v8273_v12  ;;  %v3835_v45 = vcombine.high %v8145_v63, %v8129_v38 }
 0x2ce   : > { %v8307_v53 = vpop.permute.xlu1 %3474  ;;  %6204 = vrot.lane.b32.xlu0 %v6203_v33, %s6594_s25  ;;  %v3818_v33 = vcombine.low %v8303_v7, %v8316_v42  ;;  %v3503_v25 = vcombine.high %v8162_v43, %v8191_v49  ;;  %v3906_v3 = vcombine.high %v8342_v61, %v6587_v0  ;;  %v8384_v12 = vrot.slane %v3859_v14, %v7018_v23 }
 0x2cf   : > { %v8319_v6 = vrot.slane %v3598_v62, %v7058_v39  ;;  %v3654_v20 = vcombine.low %v8265_v36, %v8307_v53  ;;  %v8336_v62 = vrot.slane %v3566_v58, %v7058_v39  ;;  %v3551_v48 = vcombine.high %v8205_v10, %v8232_v34 }
 0x2d0   : > { %6219 = vrot.lane.b32.xlu1 %v6218_v15, %s6597_s28  ;;  %v3471_v40 = vpop.permute.xlu0 %3470  ;;  %v8365_v60 = vrot.slane %v3818_v33, %v7058_v39  ;;  %v8393_v49 = vrot.slane %v3843_v32, %v7018_v23  ;;  %v3613_v10 = vrot.slane %v3599_v1, %v7058_v39  ;;  %v3655_v34 = vcombine.high %v8265_v36, %v8307_v53 }
 0x2d1   : > { %v3638_v18 = vcombine.low %v8285_v5, %v3471_v40  ;;  %v3662_v21 = vrot.slane %v3654_v20, %v7018_v23  ;;  %v3630_v58 = vcombine.low %v8336_v62, %v8319_v6  ;;  %v3639_v46 = vcombine.high %v8285_v5, %v3471_v40 }
 0x2d2   : > { %v8338_v15 = vpop.permute.xlu1 %4200  ;;  %6214 = vrot.lane.b32.xlu0 %v6213_v56, %s6597_s28  ;;  %v3535_v56 = vcombine.high %v8217_v59, %v8251_v55  ;;  %v3567_v59 = vcombine.high %v8263_v37, %v8282_v13  ;;  %v3519_v37 = vcombine.high %v8147_v19, %v8174_v47  ;;  %v3631_v40 = vcombine.high %v8336_v62, %v8319_v6 }
 0x2d3   : > { %v3646_v41 = vrot.slane %v3638_v18, %v7018_v23  ;;  %v3889_v18 = vrot.slane %v3875_v22, %v7058_v39  ;;  %v8412_v47 = vrot.slane %v3503_v25, %v7018_v23  ;;  %v6243_v54 = vpack.i.bf16 %v3906_v3, %v3835_v45 }
 0x2d4   : > { %6229 = vrot.lane.b32.xlu1 %v6228_v52, %s6596_s27  ;;  %v8349_v50 = vpop.permute.xlu0 %4196  ;;  %v8398_v13 = vrot.slane %v3535_v56, %v7018_v23  ;;  %v3581_v52 = vrot.slane %v3567_v59, %v7058_v39  ;;  %v8418_v36 = vrot.slane %v3551_v48, %v7018_v23  ;;  %v8421_v53 = vrot.slane %v3639_v46, %v7018_v23 }
 0x2d5   : > { %v3670_v44 = vcombine.low %v3646_v41, %v3662_v21  ;;  %v3671_v20 = vcombine.high %v3646_v41, %v3662_v21  ;;  %v8429_v2 = vrot.slane %v3519_v37, %v7018_v23  ;;  %v8438_v22 = vrot.slane %v3655_v34, %v7018_v23 }
 0x2d6   : > { %v8369_v30 = vpop.permute.xlu1 %4208  ;;  %6224 = vrot.lane.b32.xlu0 %v6223_v24, %s6596_s27  ;;  %v3614_v32 = vcombine.low %v8398_v13, %v8418_v36  ;;  %v3907_v59 = vcombine.high %v3889_v18, %v6587_v0  ;;  %v3794_v34 = vrot.slane %v3786_v8, %v7058_v39 }
 0x2d7   : > { %v8379_v55 = vrot.slane %v3670_v44, %v7058_v39  ;;  %v3685_v41 = vrot.slane %v3671_v20, %v7058_v39  ;;  %v4486_v14 = vcombine.low %v8338_v15, %v8369_v30  ;;  %v3632_v44 = vcombine.low %v3581_v52, %v3613_v10 }
 0x2d8   : > { %6239 = vrot.lane.b32.xlu1 %v6238_v11, %s6598_s6  ;;  %v8390_v43 = vpop.permute.xlu0 %4204  ;;  %v3890_v11 = vcombine.low %v8393_v49, %v8384_v12  ;;  %v3582_v1 = vcombine.low %v8412_v47, %v8429_v2  ;;  %v3686_v3 = vcombine.low %v8421_v53, %v8438_v22 }
 0x2d9   : > { %v3702_v19 = vcombine.high %v8379_v55, %v6587_v0  ;;  %v4470_v24 = vcombine.low %v8349_v50, %v8390_v43  ;;  %v6258_v20 = vpack.i.bf16 %v3685_v41, %v3632_v44  ;;  %v3703_v37 = vcombine.high %v3685_v41, %v6587_v0 }
 0x2da   : > { %v8404_v5 = vpop.permute.xlu1 %4216  ;;  %6234 = vrot.lane.b32.xlu0 %v6233_v9, %s6598_s6  ;;  %v3836_v9 = vcombine.low %v8329_v35, %v8362_v57  ;;  %v3898_v8 = vrot.slane %v3890_v11, %v7058_v39  ;;  %v3819_v11 = vcombine.high %v8303_v7, %v8316_v42 }
 0x2db   : > { %v6248_v21 = vpack.i.bf16 %v3702_v19, %v3631_v40  ;;  %v8447_v45 = vrot.slane %v4470_v24, %v7018_v23  ;;  %v8462_v40 = vrot.slane %v4486_v14, %v7018_v23  ;;  %v3837_v19 = vcombine.high %v8329_v35, %v8362_v57 }
 0x2dc   : > { %v8423_v33 = vpop.permute.xlu0 %4212  ;;  %v6253_v25 = vpack.i.bf16 %v3889_v18, %v3836_v9  ;;  %v3622_v24 = vrot.slane %v3614_v32, %v7058_v39  ;;  %v3838_v35 = vcombine.low %v3794_v34, %v8365_v60  ;;  %v3590_v57 = vrot.slane %v3582_v1, %v7058_v39 }
 0x2dd   : > { %6249 = vrot.lane.b32.xlu1 %v6248_v21, %s6593_s5  ;;  %v3633_v21 = vcombine.high %v3581_v52, %v3613_v10  ;;  %v4534_v41 = vcombine.low %v8447_v45, %v8462_v40  ;;  %v3694_v10 = vrot.slane %v3686_v3, %v7058_v39  ;;  %v3787_v52 = vcombine.high %v8293_v29, %v8290_v28 }
 0x2de   : > { %v8441_v56 = vpop.permute.xlu1 %4224  ;;  %6244 = vrot.lane.b32.xlu0 %v6243_v54, %s6593_s5  ;;  %v3615_v1 = vcombine.high %v8398_v13, %v8418_v36  ;;  %v3634_v3 = vcombine.low %v3590_v57, %v3622_v24  ;;  %v6273_v28 = vpack.i.bf16 %v3898_v8, %v3838_v35  ;;  %v3583_v29 = vcombine.high %v8412_v47, %v8429_v2 }
 0x2df   : > { %v4518_v48 = vcombine.low %v8404_v5, %v8441_v56  ;;  %v6268_v44 = vpack.i.bf16 %v3703_v37, %v3633_v21  ;;  %v8504_v7 = vrot.slane %v4534_v41, %v7058_v39  ;;  %v3833_v47 = vrot.slane %v3819_v11, %v7058_v39 }
 0x2e0   : > { %v8454_v46 = vpop.permute.xlu0 %4220  ;;  %v6278_v37 = vpack.i.bf16 %v3694_v10, %v3634_v3  ;;  %v3839_v21 = vcombine.high %v3794_v34, %v8365_v60  ;;  %v3801_v35 = vrot.slane %v3787_v52, %v7058_v39 }
 0x2e1   : > { %v4502_v18 = vcombine.low %v8423_v33, %v8454_v46  ;;  %6259 = vrot.lane.b32.xlu1 %v6258_v20, %s6592_s4  ;;  %v8477_v14 = vrot.slane %v4518_v48, %v7018_v23  ;;  %v3891_v48 = vcombine.high %v8393_v49, %v8384_v12  ;;  %v3908_v12 = vcombine.high %v3898_v8, %v6587_v0 }
 0x2e2   : > { %v8470_v54 = vpop.permute.xlu1 %4232  ;;  %6254 = vrot.lane.b32.xlu0 %v6253_v25, %s6592_s4  ;;  %v6263_v25 = vpack.i.bf16 %v3907_v59, %v3837_v19  ;;  %v3687_v49 = vcombine.high %v8421_v53, %v8438_v22  ;;  %v3629_v53 = vrot.slane %v3615_v1, %v7058_v39  ;;  %v3635_v8 = vcombine.high %v3590_v57, %v3622_v24 }
 0x2e3   : > { %v8480_v9 = vrot.slane %v4502_v18, %v7018_v23  ;;  %v3704_v18 = vcombine.high %v3694_v10, %v6587_v0  ;;  %v3905_v41 = vrot.slane %v3891_v48, %v7058_v39  ;;  %v3597_v10 = vrot.slane %v3583_v29, %v7058_v39 }
 0x2e4   : > { %v8484_v32 = vpop.permute.xlu0 %4228  ;;  %v6283_v11 = vpack.i.bf16 %v3908_v12, %v3839_v21  ;;  %v3840_v52 = vcombine.low %v3801_v35, %v3833_v47  ;;  %v3841_v3 = vcombine.high %v3801_v35, %v3833_v47 }
 0x2e5   : > { %v4566_v20 = vcombine.low %v8480_v9, %v8477_v14  ;;  %6269 = vrot.lane.b32.xlu1 %v6268_v44, %s6595_s22  ;;  %v6288_v34 = vpack.i.bf16 %v3704_v18, %v3635_v8  ;;  %v3636_v57 = vcombine.low %v3597_v10, %v3629_v53  ;;  %v3909_v48 = vcombine.high %v3905_v41, %v6587_v0 }
 0x2e6   : > { %v8498_v59 = vpop.permute.xlu1 %4240  ;;  %6264 = vrot.lane.b32.xlu0 %v6263_v25, %s6595_s22  ;;  %v4567_v18 = vcombine.high %v8480_v9, %v8477_v14  ;;  %v3637_v47 = vcombine.high %v3597_v10, %v3629_v53  ;;  %v4471_v8 = vcombine.high %v8349_v50, %v8390_v43  ;;  %v4487_v50 = vcombine.high %v8338_v15, %v8369_v30 }
 0x2e7   : > { %v8507_v42 = vrot.slane %v4566_v20, %v7058_v39  ;;  %v4622_v13 = vcombine.low %v8470_v54, %v8498_v59  ;;  %v3701_v20 = vrot.slane %v3687_v49, %v7058_v39  ;;  %v6303_v21 = vpack.i.bf16 %v3909_v48, %v3841_v3 }
 0x2e8   : > { %v8514_v36 = vpop.permute.xlu0 %4236  ;;  %v4485_v15 = vrot.slane %v4471_v8, %v7018_v23 }
 0x2e9   : > { %v4606_v19 = vcombine.low %v8484_v32, %v8514_v36  ;;  %6279 = vrot.lane.b32.xlu1 %v6278_v37, %s6594_s25  ;;  %v4630_v44 = vrot.slane %v4622_v13, %v7018_v23  ;;  %v6298_v12 = vpack.i.bf16 %v3701_v20, %v3636_v57  ;;  %v6293_v13 = vpack.i.bf16 %v3905_v41, %v3840_v52 }
 0x2ea   : > { %v8525_v22 = vpop.permute.xlu1 %4198  ;;  %6274 = vrot.lane.b32.xlu0 %v6273_v28, %s6594_s25  ;;  %v3705_v49 = vcombine.high %v3701_v20, %v6587_v0  ;;  %v4503_v37 = vcombine.high %v8423_v33, %v8454_v46  ;;  %v4535_v41 = vcombine.high %v8447_v45, %v8462_v40  ;;  %v4519_v33 = vcombine.high %v8404_v5, %v8441_v56 }
 0x2eb   : > { %v4614_v25 = vrot.slane %v4606_v19, %v7018_v23  ;;  %v4607_v14 = vcombine.high %v8484_v32, %v8514_v36  ;;  %v4581_v56 = vrot.slane %v4567_v18, %v7058_v39  ;;  %v4623_v45 = vcombine.high %v8470_v54, %v8498_v59 }
 0x2ec   : > { %v8533_v60 = vpop.permute.xlu0 %4194  ;;  %v6308_v53 = vpack.i.bf16 %v3705_v49, %v3637_v47  ;;  %v4517_v43 = vrot.slane %v4503_v37, %v7018_v23  ;;  %v4599_v32 = vcombine.high %v8504_v7, %v8507_v42  ;;  %v4549_v30 = vrot.slane %v4535_v41, %v7058_v39 }
 0x2ed   : > { %v4638_v1 = vcombine.low %v4614_v25, %v4630_v44  ;;  %6289 = vrot.lane.b32.xlu1 %v6288_v34, %s6597_s28  ;;  %v4639_v9 = vcombine.high %v4614_v25, %v4630_v44  ;;  %v4533_v36 = vrot.slane %v4519_v33, %v7018_v23  ;;  %v4621_v54 = vrot.slane %v4607_v14, %v7018_v23 }
 0x2ee   : > { %v8537_v24 = vpop.permute.xlu1 %4206  ;;  %6284 = vrot.lane.b32.xlu0 %v6283_v11, %s6597_s28  ;;  %v4501_v57 = vrot.slane %v4487_v50, %v7018_v23  ;;  %v4637_v48 = vrot.slane %v4623_v45, %v7018_v23 }
 0x2ef   : > { %v8542_v28 = vrot.slane %v4638_v1, %v7058_v39  ;;  %v4282_v5 = vcombine.low %v8525_v22, %v8537_v24  ;;  %v4653_v59 = vrot.slane %v4639_v9, %v7058_v39  ;;  %v4582_v52 = vcombine.low %v4517_v43, %v4533_v36 }
 0x2f0   : > { %v8544_v29 = vpop.permute.xlu0 %4202  ;;  %v4550_v18 = vcombine.low %v4485_v15, %v4501_v57  ;;  %v4654_v47 = vcombine.low %v4621_v54, %v4637_v48  ;;  %v4601_v9 = vcombine.high %v4549_v30, %v4581_v56 }
 0x2f1   : > { %6299 = vrot.lane.b32.xlu1 %v6298_v12, %s6596_s27  ;;  %v4266_v46 = vcombine.low %v8533_v60, %v8544_v29  ;;  %v4670_v10 = vcombine.high %v8542_v28, %v6587_v0  ;;  %v8596_v20 = vrot.slane %v4282_v5, %v7018_v23  ;;  %v4600_v12 = vcombine.low %v4549_v30, %v4581_v56 }
 0x2f2   : > { %v8552_v19 = vpop.permute.xlu1 %4214  ;;  %6294 = vrot.lane.b32.xlu0 %v6293_v13, %s6596_s27  ;;  %v4671_v41 = vcombine.high %v4653_v59, %v6587_v0  ;;  %v4558_v50 = vrot.slane %v4550_v18, %v7058_v39  ;;  %v4662_v5 = vrot.slane %v4654_v47, %v7058_v39  ;;  %v4655_v18 = vcombine.high %v4621_v54, %v4637_v48 }
 0x2f3   : > { %v8587_v44 = vrot.slane %v4266_v46, %v7018_v23  ;;  %v6313_v11 = vpack.i.bf16 %v4670_v10, %v4599_v32  ;;  %v6323_v8 = vpack.i.bf16 %v4653_v59, %v4600_v12  ;;  %v4590_v46 = vrot.slane %v4582_v52, %v7058_v39 }
 0x2f4   : > { %v8565_v35 = vpop.permute.xlu0 %4210  ;;  %v6333_v59 = vpack.i.bf16 %v4671_v41, %v4601_v9  ;;  %v4551_v52 = vcombine.high %v4485_v15, %v4501_v57  ;;  %v4267_v15 = vcombine.high %v8533_v60, %v8544_v29  ;;  %v4669_v60 = vrot.slane %v4655_v18, %v7058_v39 }
 0x2f5   : > { %6309 = vrot.lane.b32.xlu1 %v6308_v53, %s6598_s6  ;;  %v4330_v13 = vcombine.low %v8587_v44, %v8596_v20  ;;  %v4602_v30 = vcombine.low %v4558_v50, %v4590_v46  ;;  %v4331_v57 = vcombine.high %v8587_v44, %v8596_v20  ;;  %v4603_v48 = vcombine.high %v4558_v50, %v4590_v46 }
 0x2f6   : > { %v8578_v40 = vpop.permute.xlu1 %4222  ;;  %6304 = vrot.lane.b32.xlu0 %v6303_v21, %s6598_s6  ;;  %v4283_v29 = vcombine.high %v8525_v22, %v8537_v24  ;;  %v8660_v46 = vrot.slane %v4267_v15, %v7018_v23  ;;  %v4673_v18 = vcombine.high %v4669_v60, %v6587_v0 }
 0x2f7   : > { %v4314_v25 = vcombine.low %v8552_v19, %v8578_v40  ;;  %v8613_v53 = vrot.slane %v4330_v13, %v7058_v39  ;;  %v4345_v22 = vrot.slane %v4331_v57, %v7058_v39 }
 0x2f8   : > { %v8593_v34 = vpop.permute.xlu0 %4218 }
 0x2f9   : > { %v4298_v1 = vcombine.low %v8565_v35, %v8593_v34  ;;  %v4322_v49 = vrot.slane %v4314_v25, %v7018_v23  ;;  %v4583_v25 = vcombine.high %v4517_v43, %v4533_v36  ;;  %v4672_v43 = vcombine.high %v4662_v5, %v6587_v0 }
 0x2fa   : > { %v8602_v3 = vpop.permute.xlu1 %4230  ;;  %6314 = vrot.lane.b32.xlu0 %v6313_v11, %s6593_s5  ;;  %v4299_v41 = vcombine.high %v8565_v35, %v8593_v34 }
 0x2fb   : > { %v4306_v37 = vrot.slane %v4298_v1, %v7018_v23  ;;  %v4597_v36 = vrot.slane %v4583_v25, %v7058_v39 }
 0x2fc   : > { %v4227_v21 = vpop.permute.xlu0 %4226 }
 0x2fd   : > { %v4362_v33 = vcombine.low %v4306_v37, %v4322_v49 }
 0x2fe   : > { %v4239_v14 = vpop.permute.xlu1 %4238  ;;  %6324 = vrot.lane.b32.xlu0 %v6323_v8, %s6592_s4  ;;  %v6343_v8 = vpack.i.bf16 %v4662_v5, %v4602_v30  ;;  %v4565_v5 = vrot.slane %v4551_v52, %v7058_v39  ;;  %v4297_v30 = vrot.slane %v4283_v29, %v7018_v23 }
 0x2ff   : > { %v8616_v10 = vrot.slane %v4362_v33, %v7058_v39  ;;  %v4418_v45 = vcombine.low %v8602_v3, %v4239_v14  ;;  %v4363_v33 = vcombine.high %v4306_v37, %v4322_v49  ;;  %v4419_v44 = vcombine.high %v8602_v3, %v4239_v14 }
 0x300   : > { %v4235_v32 = vpop.permute.xlu0 %4234  ;;  %v6353_v49 = vpack.i.bf16 %v4672_v43, %v4603_v48  ;;  %v4313_v37 = vrot.slane %v4299_v41, %v7018_v23  ;;  %v4604_v14 = vcombine.low %v4565_v5, %v4597_v36  ;;  %v4605_v57 = vcombine.high %v4565_v5, %v4597_v36 }
 0x301   : > { %v4402_v1 = vcombine.low %v4227_v21, %v4235_v32  ;;  %v4426_v12 = vrot.slane %v4418_v45, %v7018_v23  ;;  %v4403_v45 = vcombine.high %v4227_v21, %v4235_v32  ;;  %v4377_v21 = vrot.slane %v4363_v33, %v7058_v39 }
 0x302   : > { %v8623_v56 = vpop.permute.xlu1 %4964  ;;  %6334 = vrot.lane.b32.xlu0 %v6333_v59, %s6595_s22  ;;  %v4315_v59 = vcombine.high %v8552_v19, %v8578_v40  ;;  %v4395_v19 = vcombine.high %v8613_v53, %v8616_v10  ;;  %v4433_v52 = vrot.slane %v4419_v44, %v7018_v23  ;;  %v4346_v33 = vcombine.low %v8660_v46, %v4297_v30 }
 0x303   : > { %v4410_v13 = vrot.slane %v4402_v1, %v7018_v23  ;;  %v8664_v24 = vrot.slane %v4403_v45, %v7018_v23  ;;  %v4396_v41 = vcombine.low %v4345_v22, %v4377_v21  ;;  %v6373_v29 = vpack.i.bf16 %v4673_v18, %v4605_v57 }
 0x304   : > { %v8628_v47 = vpop.permute.xlu0 %4960  ;;  %v4329_v50 = vrot.slane %v4315_v59, %v7018_v23  ;;  %v4397_v36 = vcombine.high %v4345_v22, %v4377_v21  ;;  %v4354_v5 = vrot.slane %v4346_v33, %v7058_v39  ;;  %v4347_v22 = vcombine.high %v8660_v46, %v4297_v30 }
 0x305   : > { %v4434_v9 = vcombine.low %v4410_v13, %v4426_v12  ;;  %v4435_v35 = vcombine.high %v4410_v13, %v4426_v12  ;;  %v6363_v13 = vpack.i.bf16 %v4669_v60, %v4604_v14 }
 0x306   : > { %v8638_v54 = vpop.permute.xlu1 %4972  ;;  %6344 = vrot.lane.b32.xlu0 %v6343_v8, %s6594_s25  ;;  %v4378_v8 = vcombine.low %v4313_v37, %v4329_v50 }
 0x307   : > { %v8645_v34 = vrot.slane %v4434_v9, %v7058_v39  ;;  %v4449_v32 = vrot.slane %v4435_v35, %v7058_v39  ;;  %v5250_v43 = vcombine.low %v8623_v56, %v8638_v54  ;;  %v4450_v9 = vcombine.low %v8664_v24, %v4433_v52 }
 0x308   : > { %v8651_v20 = vpop.permute.xlu0 %4968  ;;  %v4386_v44 = vrot.slane %v4378_v8, %v7058_v39  ;;  %v4379_v8 = vcombine.high %v4313_v37, %v4329_v50 }
 0x309   : > { %v4466_v40 = vcombine.high %v8645_v34, %v6587_v0  ;;  %v5234_v25 = vcombine.low %v8628_v47, %v8651_v20  ;;  %v6328_v48 = vpack.i.bf16 %v4449_v32, %v4396_v41  ;;  %v4467_v59 = vcombine.high %v4449_v32, %v6587_v0 }
 0x30a   : > { %v8666_v3 = vpop.permute.xlu1 %4980  ;;  %6354 = vrot.lane.b32.xlu0 %v6353_v49, %s6597_s28  ;;  %v8694_v49 = vrot.slane %v5250_v43, %v7018_v23  ;;  %v4398_v21 = vcombine.low %v4354_v5, %v4386_v44  ;;  %v4451_v41 = vcombine.high %v8664_v24, %v4433_v52  ;;  %v4399_v24 = vcombine.high %v4354_v5, %v4386_v44 }
 0x30b   : > { %v6318_v1 = vpack.i.bf16 %v4466_v40, %v4395_v19  ;;  %v8687_v45 = vrot.slane %v5234_v25, %v7018_v23  ;;  %v4458_v40 = vrot.slane %v4450_v9, %v7058_v39  ;;  %v4361_v52 = vrot.slane %v4347_v22, %v7058_v39 }
 0x30c   : > { %v8675_v12 = vpop.permute.xlu0 %4976  ;;  %v5235_v22 = vcombine.high %v8628_v47, %v8651_v20 }
 0x30d   : > { %6319 = vrot.lane.b32.xlu1 %v6318_v1, %s6593_s5  ;;  %v5298_v32 = vcombine.low %v8687_v45, %v8694_v49 }
 0x30e   : > { %v8683_v15 = vpop.permute.xlu1 %4988  ;;  %6364 = vrot.lane.b32.xlu0 %v6363_v13, %s6596_s27  ;;  %v6338_v13 = vpack.i.bf16 %v4467_v59, %v4397_v36  ;;  %v4468_v59 = vcombine.high %v4458_v40, %v6587_v0 }
 0x30f   : > { %v5282_v35 = vcombine.low %v8666_v3, %v8683_v15  ;;  %v8711_v9 = vrot.slane %v5298_v32, %v7058_v39 }
 0x310   : > { %v4985_v60 = vpop.permute.xlu0 %4984  ;;  %v6358_v32 = vpack.i.bf16 %v4468_v59, %v4399_v24 }
 0x311   : > { %v5266_v19 = vcombine.low %v8675_v12, %v4985_v60  ;;  %6329 = vrot.lane.b32.xlu1 %v6328_v48, %s6592_s4  ;;  %v5290_v25 = vrot.slane %v5282_v35, %v7018_v23  ;;  %v6348_v48 = vpack.i.bf16 %v4458_v40, %v4398_v21  ;;  %v4393_v35 = vrot.slane %v4379_v8, %v7058_v39 }
 0x312   : > { %v8700_v14 = vpop.permute.xlu1 %4996  ;;  %6374 = vrot.lane.b32.xlu0 %v6373_v29, %s6598_s6  ;;  %v5267_v21 = vcombine.high %v8675_v12, %v4985_v60 }
 0x313   : > { %v5274_v1 = vrot.slane %v5266_v19, %v7018_v23  ;;  %v4465_v19 = vrot.slane %v4451_v41, %v7058_v39  ;;  %v4401_v47 = vcombine.high %v4361_v52, %v4393_v35 }
 0x314   : > { %v4993_v18 = vpop.permute.xlu0 %4992 }
 0x315   : > { %v5330_v43 = vcombine.low %v5274_v1, %v5290_v25  ;;  %6339 = vrot.lane.b32.xlu1 %v6338_v13, %s6595_s22  ;;  %v5331_v44 = vcombine.high %v5274_v1, %v5290_v25  ;;  %v4469_v59 = vcombine.high %v4465_v19, %v6587_v0  ;;  %v5251_v25 = vcombine.high %v8623_v56, %v8638_v54 }
 0x316   : > { %v5005_v33 = vpop.permute.xlu1 %5004 }
 0x317   : > { %v8714_v57 = vrot.slane %v5330_v43, %v7058_v39  ;;  %v5386_v37 = vcombine.low %v8700_v14, %v5005_v33  ;;  %v4400_v43 = vcombine.low %v4361_v52, %v4393_v35  ;;  %v6378_v54 = vpack.i.bf16 %v4469_v59, %v4401_v47 }
 0x318   : > { %v5001_v50 = vpop.permute.xlu0 %5000 }
 0x319   : > { %v5370_v30 = vcombine.low %v4993_v18, %v5001_v50  ;;  %6349 = vrot.lane.b32.xlu1 %v6348_v48, %s6594_s25  ;;  %v5394_v36 = vrot.slane %v5386_v37, %v7018_v23  ;;  %v6368_v48 = vpack.i.bf16 %v4465_v19, %v4400_v43  ;;  %v5299_v37 = vcombine.high %v8687_v45, %v8694_v49 }
 0x31a   : > { %v8723_v29 = vpop.permute.xlu1 %4962  ;;  %v5371_v24 = vcombine.high %v4993_v18, %v5001_v50  ;;  %v5363_v20 = vcombine.high %v8711_v9, %v8714_v57  ;;  %v5281_v45 = vrot.slane %v5267_v21, %v7018_v23  ;;  %v5249_v18 = vrot.slane %v5235_v22, %v7018_v23 }
 0x31b   : > { %v5378_v40 = vrot.slane %v5370_v30, %v7018_v23  ;;  %v5283_v30 = vcombine.high %v8666_v3, %v8683_v15  ;;  %v5345_v3 = vrot.slane %v5331_v44, %v7058_v39  ;;  %v5387_v15 = vcombine.high %v8700_v14, %v5005_v33 }
 0x31c   : > { %v8728_v13 = vpop.permute.xlu0 %4958  ;;  %v5313_v35 = vrot.slane %v5299_v37, %v7058_v39  ;;  %v5385_v19 = vrot.slane %v5371_v24, %v7018_v23  ;;  %v5265_v14 = vrot.slane %v5251_v25, %v7018_v23 }
 0x31d   : > { %v5402_v8 = vcombine.low %v5378_v40, %v5394_v36  ;;  %6359 = vrot.lane.b32.xlu1 %v6358_v32, %s6597_s28  ;;  %v5403_v12 = vcombine.high %v5378_v40, %v5394_v36  ;;  %v5297_v52 = vrot.slane %v5283_v30, %v7018_v23 }
 0x31e   : > { %v8732_v5 = vpop.permute.xlu1 %4970  ;;  %v5364_v21 = vcombine.low %v5313_v35, %v5345_v3  ;;  %v5314_v44 = vcombine.low %v5249_v18, %v5265_v14 }
 0x31f   : > { %v8737_v41 = vrot.slane %v5402_v8, %v7058_v39  ;;  %v5417_v36 = vrot.slane %v5403_v12, %v7058_v39  ;;  %v5046_v33 = vcombine.low %v8723_v29, %v8732_v5  ;;  %v5346_v32 = vcombine.low %v5281_v45, %v5297_v52 }
 0x320   : > { %v8744_v60 = vpop.permute.xlu0 %4966  ;;  %v5401_v8 = vrot.slane %v5387_v15, %v7018_v23  ;;  %v5347_v46 = vcombine.high %v5281_v45, %v5297_v52 }
 0x321   : > { %6369 = vrot.lane.b32.xlu1 %v6368_v48, %s6596_s27  ;;  %v5434_v1 = vcombine.high %v8737_v41, %v6587_v0  ;;  %v5030_v56 = vcombine.low %v8728_v13, %v8744_v60  ;;  %v6393_v30 = vpack.i.bf16 %v5417_v36, %v5364_v21  ;;  %v5435_v24 = vcombine.high %v5417_v36, %v6587_v0 }
 0x322   : > { %v8756_v49 = vpop.permute.xlu1 %4978  ;;  %v5418_v48 = vcombine.low %v5385_v19, %v5401_v8  ;;  %v8777_v12 = vrot.slane %v5046_v33, %v7018_v23  ;;  %v5354_v47 = vrot.slane %v5346_v32, %v7058_v39  ;;  %v5315_v32 = vcombine.high %v5249_v18, %v5265_v14 }
 0x323   : > { %v6383_v50 = vpack.i.bf16 %v5434_v1, %v5363_v20  ;;  %v8772_v22 = vrot.slane %v5030_v56, %v7018_v23  ;;  %v5365_v1 = vcombine.high %v5313_v35, %v5345_v3  ;;  %v5419_v2 = vcombine.high %v5385_v19, %v5401_v8 }
 0x324   : > { %v4975_v40 = vpop.permute.xlu0 %4974  ;;  %v5426_v36 = vrot.slane %v5418_v48, %v7058_v39  ;;  %v5361_v18 = vrot.slane %v5347_v46, %v7058_v39  ;;  %v5329_v8 = vrot.slane %v5315_v32, %v7058_v39 }
 0x325   : > { %6379 = vrot.lane.b32.xlu1 %v6378_v54, %s6598_s6  ;;  %6384 = vrot.lane.b32.xlu0 %v6383_v50, %s6593_s5  ;;  %v5094_v15 = vcombine.low %v8772_v22, %v8777_v12  ;;  %v5322_v50 = vrot.slane %v5314_v44, %v7058_v39  ;;  %v6403_v21 = vpack.i.bf16 %v5435_v24, %v5365_v1 }
 0x326   : > { %v4987_v43 = vpop.permute.xlu1 %4986  ;;  %v5031_v44 = vcombine.high %v8728_v13, %v8744_v60  ;;  %v5436_v45 = vcombine.high %v5426_v36, %v6587_v0  ;;  %v5047_v1 = vcombine.high %v8723_v29, %v8732_v5 }
 0x327   : > { %v5078_v59 = vcombine.low %v8756_v49, %v4987_v43  ;;  %v5366_v35 = vcombine.low %v5322_v50, %v5354_v47  ;;  %v5367_v60 = vcombine.high %v5322_v50, %v5354_v47 }
 0x328   : > { %v4983_v37 = vpop.permute.xlu0 %4982 }
 0x329   : > { %v5062_v25 = vcombine.low %v4975_v40, %v4983_v37  ;;  %6394 = vrot.lane.b32.xlu0 %v6393_v30, %s6592_s4  ;;  %v5086_v56 = vrot.slane %v5078_v59, %v7018_v23  ;;  %v8789_v30 = vrot.slane %v5094_v15, %v7058_v39  ;;  %v6413_v24 = vpack.i.bf16 %v5426_v36, %v5366_v35 }
 0x32a   : > { %v4995_v20 = vpop.permute.xlu1 %4994  ;;  %v5063_v52 = vcombine.high %v4975_v40, %v4983_v37  ;;  %v5079_v15 = vcombine.high %v8756_v49, %v4987_v43  ;;  %v5045_v36 = vrot.slane %v5031_v44, %v7018_v23  ;;  %v5368_v35 = vcombine.low %v5329_v8, %v5361_v18 }
 0x32b   : > { %v5070_v54 = vrot.slane %v5062_v25, %v7018_v23 }
 0x32c   : > { %v4991_v33 = vpop.permute.xlu0 %4990  ;;  %v5077_v32 = vrot.slane %v5063_v52, %v7018_v23  ;;  %v5093_v43 = vrot.slane %v5079_v15, %v7018_v23 }
 0x32d   : > { %v5126_v11 = vcombine.low %v5070_v54, %v5086_v56  ;;  %6404 = vrot.lane.b32.xlu0 %v6403_v21, %s6595_s22  ;;  %v5127_v47 = vcombine.high %v5070_v54, %v5086_v56 }
 0x32e   : > { %v5003_v3 = vpop.permute.xlu1 %5002 }
 0x32f   : > { %v8792_v59 = vrot.slane %v5126_v11, %v7058_v39  ;;  %v5182_v48 = vcombine.low %v4995_v20, %v5003_v3  ;;  %v5433_v11 = vrot.slane %v5419_v2, %v7058_v39  ;;  %v6423_v2 = vpack.i.bf16 %v5436_v45, %v5367_v60 }
 0x330   : > { %v4999_v25 = vpop.permute.xlu0 %4998  ;;  %v5183_v29 = vcombine.high %v4995_v20, %v5003_v3  ;;  %v5095_v20 = vcombine.high %v8772_v22, %v8777_v12  ;;  %v5142_v45 = vcombine.low %v5077_v32, %v5093_v43  ;;  %v5143_v60 = vcombine.high %v5077_v32, %v5093_v43 }
 0x331   : > { %v5158_v19 = vcombine.low %v8789_v30, %v8792_v59  ;;  %v5166_v14 = vcombine.low %v4991_v33, %v4999_v25  ;;  %6414 = vrot.lane.b32.xlu0 %v6413_v24, %s6594_s25  ;;  %v5190_v46 = vrot.slane %v5182_v48, %v7018_v23  ;;  %v5167_v40 = vcombine.high %v4991_v33, %v4999_v25 }
 0x332   : > { %v8805_v13 = vpop.permute.xlu1 %6179  ;;  %v5061_v24 = vrot.slane %v5047_v1, %v7018_v23  ;;  %v6433_v44 = vpack.i.bf16 %v5433_v11, %v5368_v35  ;;  %v5437_v56 = vcombine.high %v5433_v11, %v6587_v0  ;;  %v5197_v52 = vrot.slane %v5183_v29, %v7018_v23 }
 0x333   : > { %v5174_v37 = vrot.slane %v5166_v14, %v7018_v23  ;;  %v5181_v50 = vrot.slane %v5167_v40, %v7018_v23  ;;  %v5141_v1 = vrot.slane %v5127_v47, %v7058_v39  ;;  %v5369_v22 = vcombine.high %v5329_v8, %v5361_v18  ;;  %v2524_v40 = vld [vmem:[#allocation6 + $0x28] sm:$0xf] }
 0x334   : > { %v8811_v21 = vpop.permute.xlu0 %6174  ;;  %v5110_v3 = vcombine.low %v5045_v36, %v5061_v24  ;;  %v5111_v54 = vcombine.high %v5045_v36, %v5061_v24  ;;  %v5159_v12 = vcombine.high %v8789_v30, %v8792_v59  ;;  %v5109_v11 = vrot.slane %v5095_v20, %v7058_v39  ;;  %5794 = vmatmul.mubr.msk.f32.gmra.mrb[2].mxu1 %vm1674_vm15, %v2524_v40 }
 0x335   : > { %v5198_v5 = vcombine.low %v5174_v37, %v5190_v46  ;;  %6424 = vrot.lane.b32.xlu0 %v6423_v2, %s6597_s28  ;;  %v5199_v48 = vcombine.high %v5174_v37, %v5190_v46  ;;  %v5214_v46 = vcombine.low %v5181_v50, %v5197_v52  ;;  %v6443_v36 = vpack.i.bf16 %v5437_v56, %v5369_v22 }
 0x336   : > { %v8816_v49 = vpop.permute.xlu1 %6189  ;;  %v5118_v32 = vrot.slane %v5110_v3, %v7058_v39  ;;  %v8842_v29 = vrot.slane %v5111_v54, %v7058_v39  ;;  %v5150_v18 = vrot.slane %v5142_v45, %v7058_v39  ;;  %3371 = vmatprep.mubr.f32.mxu1 %v6587_v0  ;;  %v8847_v8 = vrot.slane %v5143_v60, %v7058_v39 }
 0x337   : > { %v8821_v33 = vrot.slane %v5198_v5, %v7058_v39  ;;  %v5213_v37 = vrot.slane %v5199_v48, %v7058_v39  ;;  %v5160_v35 = vcombine.low %v5109_v11, %v5141_v1  ;;  %v5161_v24 = vcombine.high %v5109_v11, %v5141_v1 }
 0x338   : > { %v8825_v25 = vpop.permute.xlu0 %6184  ;;  %v5215_v47 = vcombine.high %v5181_v50, %v5197_v52  ;;  %v5222_v43 = vrot.slane %v5214_v46, %v7058_v39  ;;  %v6181_v20 = vunpack.i.l.bf16 %v8805_v13  ;;  %v6177_v3 = vunpack.i.h.bf16 %v8811_v21 }
 0x339   : > { %v5230_v14 = vcombine.high %v8821_v33, %v6587_v0  ;;  %6434 = vrot.lane.b32.xlu0 %v6433_v44, %s6596_s27  ;;  %v6182_v44 = vunpack.i.h.bf16 %v8805_v13  ;;  %v6176_v48 = vunpack.i.l.bf16 %v8811_v21  ;;  %v6398_v54 = vpack.i.bf16 %v5213_v37, %v5160_v35 }
 0x33a   : > { %v6200_v15 = vpop.permute.xlu1 %6199  ;;  %v5231_v45 = vcombine.high %v5213_v37, %v6587_v0  ;;  %v6191_v60 = vunpack.i.l.bf16 %v8816_v49  ;;  %v5162_v1 = vcombine.low %v5118_v32, %v5150_v18  ;;  %v5163_v50 = vcombine.high %v5118_v32, %v5150_v18 }
 0x33b   : > { %v6388_v2 = vpack.i.bf16 %v5230_v14, %v5159_v12  ;;  %v6192_v14 = vunpack.i.h.bf16 %v8816_v49  ;;  %v6187_v52 = vunpack.i.h.bf16 %v8825_v25  ;;  %v6186_v22 = vunpack.i.l.bf16 %v8825_v25 }
 0x33c   : > { %v8837_v23 = vpop.permute.xlu0 %6194  ;;  %v6201_v12 = vunpack.i.l.bf16 %v6200_v15  ;;  %v5164_v21 = vcombine.low %v8842_v29, %v8847_v8  ;;  %v3259_v46 = vsel %vm1086_vm5, %v8106_v27, %v6182_v44  ;;  %v9143_v40 = vcombine.low %v7974_v26, %v7965_v31 }
 0x33d   : > { %6444 = vrot.lane.b32.xlu0 %v6443_v36, %s6598_s6  ;;  %6389 = vrot.lane.b32.xlu1 %v6388_v2, %s6593_s5  ;;  %v6202_v11 = vunpack.i.h.bf16 %v6200_v15  ;;  %v5232_v37 = vcombine.high %v5222_v43, %v6587_v0  ;;  %v5229_v25 = vrot.slane %v5215_v47, %v7058_v39  ;;  %v3273_v36 = vsel %vm1086_vm5, %v8126_v4, %v6177_v3 }
 0x33e   : > { %v8851_v5 = vpop.permute.xlu1 %6209  ;;  %v3258_v49 = vsel %vm1086_vm5, %v9143_v40, %v6181_v20  ;;  %v9144_v2 = vcombine.low %v7971_v17, %v7962_v51  ;;  %v6408_v27 = vpack.i.bf16 %v5231_v45, %v5161_v24  ;;  %v3261_v31 = vsel %vm1089_vm6, %v3259_v46, %v6192_v14 }
 0x33f   : > { %v3260_v35 = vsel %vm1089_vm6, %v3258_v49, %v6191_v60  ;;  %v6197_v26 = vunpack.i.h.bf16 %v8837_v23  ;;  %v6196_v15 = vunpack.i.l.bf16 %v8837_v23  ;;  %v3275_v47 = vsel %vm1089_vm6, %v3273_v36, %v6187_v52 }
 0x340   : > { %v6205_v56 = vpop.permute.xlu0 %6204  ;;  %v3272_v32 = vsel %vm1086_vm5, %v9144_v2, %v6176_v48  ;;  %v3262_v4 = vsel %vm1092_vm7, %v3260_v35, %v6201_v12  ;;  %v6418_v17 = vpack.i.bf16 %v5222_v43, %v5162_v1  ;;  %v3263_v24 = vsel %vm1092_vm7, %v3261_v31, %v6202_v11 }
 0x341   : > { %6399 = vrot.lane.b32.xlu1 %v6398_v54, %s6592_s4  ;;  %v3274_v39 = vsel %vm1089_vm6, %v3272_v32, %v6186_v22  ;;  %v6212_v44 = vunpack.i.h.bf16 %v8851_v5  ;;  %v6211_v20 = vunpack.i.l.bf16 %v8851_v5  ;;  %v6428_v3 = vpack.i.bf16 %v5232_v37, %v5163_v50  ;;  %s6515_s4 = sshll.u32 %s6602_s13, 4  ;;  %s6516_s4 = int_to_ptr.vmem [resolvable:$false] %s6515_s4 }
 0x342   : > { %v6220_v13 = vpop.permute.xlu1 %6219  ;;  %v6207_v48 = vunpack.i.h.bf16 %v6205_v56  ;;  %v6206_v54 = vunpack.i.l.bf16 %v6205_v56  ;;  %v3276_v60 = vsel %vm1092_vm7, %v3274_v39, %v6196_v15  ;;  %v3277_v52 = vsel %vm1092_vm7, %v3275_v47, %v6197_v26  ;;  %p6518_p10 = scmp.lt.s32.totalorder %s9069_s19, %s6516_s4 }
 0x343   : > { %v6222_v23 = vunpack.i.h.bf16 %v6220_v13  ;;  %v6221_v45 = vunpack.i.l.bf16 %v6220_v13  ;;  %v3264_v5 = vsel %vm1095_vm8, %v3262_v4, %v6211_v20  ;;  %v3265_v56 = vsel %vm1095_vm8, %v3263_v24, %v6212_v44 }
 0x344   : > { %v6215_v18 = vpop.permute.xlu0 %6214  ;;  %v3278_v11 = vsel %vm1095_vm8, %v3276_v60, %v6206_v54  ;;  %v3279_v37 = vsel %vm1095_vm8, %v3277_v52, %v6207_v48  ;;  %v6438_v48 = vpack.i.bf16 %v5229_v25, %v5164_v21  ;;  %v3287_v60 = vld [vmem:[#allocation6 + $0x30] sm:$0xff]  ;;  %v3288_v52 = vld [vmem:[#allocation6 + $0x38] sm:$0xf] }
 0x345   : > { %6409 = vrot.lane.b32.xlu1 %v6408_v27, %s6595_s22  ;;  %v6217_v22 = vunpack.i.h.bf16 %v6215_v18  ;;  %v6216_v12 = vunpack.i.l.bf16 %v6215_v18  ;;  %v3266_v36 = vsel %vm1098_vm9, %v3264_v5, %v6221_v45  ;;  %v3267_v2 = vsel %vm1098_vm9, %v3265_v56, %v6222_v23 }
 0x346   : > { %v6230_v51 = vpop.permute.xlu1 %6229  ;;  %v5165_v45 = vcombine.high %v8842_v29, %v8847_v8 }
 0x347   : > { %v6232_v46 = vunpack.i.h.bf16 %v6230_v51  ;;  %v6231_v43 = vunpack.i.l.bf16 %v6230_v51  ;;  %v3280_v18 = vsel %vm1098_vm9, %v3278_v11, %v6216_v12  ;;  %v3281_v27 = vsel %vm1098_vm9, %v3279_v37, %v6217_v22 }
 0x348   : > { %v6225_v14 = vpop.permute.xlu0 %6224 }
 0x349   : > { %v6227_v1 = vunpack.i.h.bf16 %v6225_v14  ;;  %v6226_v40 = vunpack.i.l.bf16 %v6225_v14  ;;  %6419 = vrot.lane.b32.xlu1 %v6418_v17, %s6594_s25  ;;  %v3268_v26 = vsel %vm1101_vm10, %v3266_v36, %v6231_v43  ;;  %v3269_v15 = vsel %vm1101_vm10, %v3267_v2, %v6232_v46  ;;  %s6517_s25 = scalar_lea.vmem %s6516_s4, 1024 }
 0x34a   : > { %v6240_v49 = vpop.permute.xlu1 %6239  ;;  %v9145_v36 = vcombine.low %v8145_v63, %v8129_v38  ;;  %p6519_p11 = scmp.lt.s32.totalorder %s6517_s25, %s6511_s17 }
 0x34b   : > { %v6242_v50 = vunpack.i.h.bf16 %v6240_v49  ;;  %v6241_v13 = vunpack.i.l.bf16 %v6240_v49  ;;  %v3282_v39 = vsel %vm1101_vm10, %v3280_v18, %v6226_v40  ;;  %v3283_v47 = vsel %vm1101_vm10, %v3281_v27, %v6227_v1 }
 0x34c   : > { %v6235_v32 = vpop.permute.xlu0 %6234  ;;  %p6520_p3 = por %p6519_p11, %p6518_p10 }
 0x34d   : > { %v6237_v35 = vunpack.i.h.bf16 %v6235_v32  ;;  %v6236_v31 = vunpack.i.l.bf16 %v6235_v32  ;;  %6429 = vrot.lane.b32.xlu1 %v6428_v3, %s6597_s28  ;;  %v3270_v17 = vsel %vm1104_vm11, %v3268_v26, %v6241_v13  ;;  %v3271_v24 = vsel %vm1104_vm11, %v3269_v15, %v6242_v50 }
 0x34e   : > { %v5233_v3 = vcombine.high %v5229_v25, %v6587_v0  ;;  %v5838_v23 = vpack.c.bf16 %v3271_v24, %v3270_v17  ;;  %p6521_p7 = pnand %p6520_p3, %p6514_p8 }
 0x34f   : > { %v3284_v4 = vsel %vm1104_vm11, %v3282_v39, %v6236_v31  ;;  %v3285_v51 = vsel %vm1104_vm11, %v3283_v47, %v6237_v35  ;;  %v6250_v44 = vpop.permute.xlu1 %6249 }
 0x350   : > { %v6245_v20 = vpop.permute.xlu0 %6244  ;;  %v5835_v54 = vpack.c.bf16 %v3285_v51, %v3284_v4  ;;  %v6448_v25 = vpack.i.bf16 %v5233_v3, %v5165_v45  ;;  %v6252_v8 = vunpack.i.h.bf16 %v6250_v44  ;;  %v6251_v12 = vunpack.i.l.bf16 %v6250_v44 }
 0x351   : > { %6439 = vrot.lane.b32.xlu1 %v6438_v48, %s6596_s27  ;;  %v6247_v46 = vunpack.i.h.bf16 %v6245_v20  ;;  %v6246_v43 = vunpack.i.l.bf16 %v6245_v20 }
 0x352   : > { %5837 = vmatprep.subr.msk.bf16.mxu0 %vm7541_vm14, %v5835_v54  ;;  %5859 = vmatprep.subr.msk.bf16.mxu1 %vm7541_vm14, %v5835_v54  ;;  %v4023_v13 = vsel %vm1086_vm5, %v8379_v55, %v6252_v8  ;;  %v4022_v11 = vsel %vm1086_vm5, %v3630_v58, %v6251_v12 }
 0x353   : > { %v6260_v14 = vpop.permute.xlu1 %6259  ;;  %5840 = vmatpush1.bf16.msk.msra.mxu0 %vm7541_vm14, %v5838_v23  ;;  %5860 = vmatpush1.bf16.msk.msra.mxu1 %vm7541_vm14, %v5838_v23  ;;  %v4037_v37 = vsel %vm1086_vm5, %v8342_v61, %v6247_v46  ;;  %v4036_v2 = vsel %vm1086_vm5, %v9145_v36, %v6246_v43 }
 0x354   : > { %v6255_v21 = vpop.permute.xlu0 %6254  ;;  %v6262_v49 = vunpack.i.h.bf16 %v6260_v14  ;;  %v6261_v5 = vunpack.i.l.bf16 %v6260_v14 }
 0x355   : > { %6449 = vrot.lane.b32.xlu1 %v6448_v25, %s6598_s6  ;;  %v6257_v56 = vunpack.i.h.bf16 %v6255_v21  ;;  %v6256_v50 = vunpack.i.l.bf16 %v6255_v21 }
 0x356   : > { %5797 = vmatmul.mubr.msk.f32.vlgmr.msra.gmra.mrb[0].mxu0 %vm1674_vm15, %v3287_v60  ;;  %5798 = vmatmul.mubr.msk.f32.vlgmr.msra.gmra.mrb[2].mxu1 %vm1674_vm15, %v3288_v52  ;;  %v4024_v55 = vsel %vm1089_vm6, %v4022_v11, %v6261_v5  ;;  %v4025_v6 = vsel %vm1089_vm6, %v4023_v13, %v6262_v49 }
 0x357   : > { %v6270_v22 = vpop.permute.xlu1 %6269  ;;  %4129 = vmatprep.mubr.f32.mxu0 %v6587_v0  ;;  %v4038_v62 = vsel %vm1089_vm6, %v4036_v2, %v6256_v50  ;;  %v4039_v58 = vsel %vm1089_vm6, %v4037_v37, %v6257_v56 }
 0x358   : > { %v6265_v29 = vpop.permute.xlu0 %6264  ;;  %v6272_v27 = vunpack.i.h.bf16 %v6270_v22  ;;  %v6271_v35 = vunpack.i.l.bf16 %v6270_v22 }
 0x359   : > { %v6267_v31 = vunpack.i.h.bf16 %v6265_v29  ;;  %v6266_v26 = vunpack.i.l.bf16 %v6265_v29 }
 0x35a   : > { %v4026_v44 = vsel %vm1092_vm7, %v4024_v55, %v6271_v35  ;;  %v4027_v20 = vsel %vm1092_vm7, %v4025_v6, %v6272_v27  ;;  %v4052_v55 = vld [vmem:[#allocation6 + $0x48] sm:$0xf] }
 0x35b   : > { %v6280_v1 = vpop.permute.xlu1 %6279  ;;  %v4040_v48 = vsel %vm1092_vm7, %v4038_v62, %v6266_v26  ;;  %v4041_v54 = vsel %vm1092_vm7, %v4039_v58, %v6267_v31  ;;  %v4051_v31 = vld [vmem:[#allocation6 + $0x40] sm:$0xff] }
 0x35c   : > { %v6275_v40 = vpop.permute.xlu0 %6274  ;;  %v6282_v61 = vunpack.i.h.bf16 %v6280_v1  ;;  %v6281_v15 = vunpack.i.l.bf16 %v6280_v1 }
 0x35d   : > { %v6277_v39 = vunpack.i.h.bf16 %v6275_v40  ;;  %v6276_v63 = vunpack.i.l.bf16 %v6275_v40 }
 0x35e   : > { %v4028_v21 = vsel %vm1095_vm8, %v4026_v44, %v6281_v15  ;;  %v4029_v25 = vsel %vm1095_vm8, %v4027_v20, %v6282_v61  ;;  %v9146_v20 = vcombine.low %v8504_v7, %v8507_v42 }
 0x35f   : > { %v6290_v32 = vpop.permute.xlu1 %6289  ;;  %v4042_v60 = vsel %vm1095_vm8, %v4040_v48, %v6276_v63  ;;  %v4043_v52 = vsel %vm1095_vm8, %v4041_v54, %v6277_v39 }
 0x360   : > { %v6285_v18 = vpop.permute.xlu0 %6284  ;;  %v6292_v38 = vunpack.i.h.bf16 %v6290_v32  ;;  %v6291_v47 = vunpack.i.l.bf16 %v6290_v32 }
 0x361   : > { %v6287_v4 = vunpack.i.h.bf16 %v6285_v18  ;;  %v6286_v51 = vunpack.i.l.bf16 %v6285_v18 }
 0x362   : > { %v4030_v22 = vsel %vm1098_vm9, %v4028_v21, %v6291_v47  ;;  %v4031_v29 = vsel %vm1098_vm9, %v4029_v25, %v6292_v38 }
 0x363   : > { %v6300_v17 = vpop.permute.xlu1 %6299  ;;  %v4044_v8 = vsel %vm1098_vm9, %v4042_v60, %v6286_v51  ;;  %v4045_v12 = vsel %vm1098_vm9, %v4043_v52, %v6287_v4 }
 0x364   : > { %v6295_v24 = vpop.permute.xlu0 %6294  ;;  %v6302_v3 = vunpack.i.h.bf16 %v6300_v17  ;;  %v6301_v23 = vunpack.i.l.bf16 %v6300_v17 }
 0x365   : > { %v6297_v45 = vunpack.i.h.bf16 %v6295_v24  ;;  %v6296_v14 = vunpack.i.l.bf16 %v6295_v24 }
 0x366   : > { %v4032_v56 = vsel %vm1101_vm10, %v4030_v22, %v6301_v23  ;;  %v4033_v50 = vsel %vm1101_vm10, %v4031_v29, %v6302_v3 }
 0x367   : > { %v6310_v46 = vpop.permute.xlu1 %6309  ;;  %v4046_v13 = vsel %vm1101_vm10, %v4044_v8, %v6296_v14  ;;  %v4047_v11 = vsel %vm1101_vm10, %v4045_v12, %v6297_v45 }
 0x368   : > { %v6305_v43 = vpop.permute.xlu0 %6304  ;;  %v6312_v1 = vunpack.i.h.bf16 %v6310_v46  ;;  %v6311_v40 = vunpack.i.l.bf16 %v6310_v46 }
 0x369   : > { %v6307_v49 = vunpack.i.h.bf16 %v6305_v43  ;;  %v6306_v5 = vunpack.i.l.bf16 %v6305_v43 }
 0x36a   : > { %v4034_v37 = vsel %vm1104_vm11, %v4032_v56, %v6311_v40  ;;  %v4035_v36 = vsel %vm1104_vm11, %v4033_v50, %v6312_v1 }
 0x36b   : > { %v4048_v2 = vsel %vm1104_vm11, %v4046_v13, %v6306_v5  ;;  %v4049_v32 = vsel %vm1104_vm11, %v4047_v11, %v6307_v49  ;;  %v5844_v35 = vpack.c.bf16 %v4035_v36, %v4034_v37 }
 0x36c   : > { %v5841_v18 = vpack.c.bf16 %v4049_v32, %v4048_v2  ;;  %v6315_v27 = vpop.permute.xlu0 %6314 }
 0x36d   : > { %v6317_v61 = vunpack.i.h.bf16 %v6315_v27  ;;  %v6316_v15 = vunpack.i.l.bf16 %v6315_v27 }
 0x36e   : > { %5843 = vmatprep.subr.msk.bf16.mxu0 %vm7541_vm14, %v5841_v18 }
 0x36f   : > { %5846 = vmatpush1.bf16.msk.msra.mxu0 %vm7541_vm14, %v5844_v35  ;;  %v4801_v44 = vsel %vm1086_vm5, %v8542_v28, %v6317_v61  ;;  %v4800_v48 = vsel %vm1086_vm5, %v9146_v20, %v6316_v15 }
 0x370   : > { %v6325_v26 = vpop.permute.xlu0 %6324 }
 0x371   : > { %v6327_v39 = vunpack.i.h.bf16 %v6325_v26  ;;  %v6326_v63 = vunpack.i.l.bf16 %v6325_v26  ;;  %v9147_v26 = vcombine.low %v8613_v53, %v8616_v10 }
 0x372   : > { %5801 = vmatmul.mubr.msk.f32.vlgmr.msra.gmra.mrb[0].mxu0 %vm1674_vm15, %v4051_v31 }
 0x373   : > { %4135 = vmatprep.mubr.f32.mxu0 %v6587_v0  ;;  %v4802_v23 = vsel %vm1089_vm6, %v4800_v48, %v6326_v63  ;;  %v4803_v45 = vsel %vm1089_vm6, %v4801_v44, %v6327_v39 }
 0x374   : > { %v6335_v6 = vpop.permute.xlu0 %6334 }
 0x375   : > { %v6337_v38 = vunpack.i.h.bf16 %v6335_v6  ;;  %v6336_v47 = vunpack.i.l.bf16 %v6335_v6 }
 0x376   : > { %5802 = vmatmul.mubr.msk.f32.gmra.mrb[2].mxu0 %vm1674_vm15, %v4052_v55 }
 0x377   : > { %4893 = vmatprep.mubr.f32.mxu0 %v6587_v0  ;;  %v4804_v25 = vsel %vm1092_vm7, %v4802_v23, %v6336_v47  ;;  %v4805_v60 = vsel %vm1092_vm7, %v4803_v45, %v6337_v38  ;;  %v4815_v45 = vld [vmem:[#allocation6 + $0x50] sm:$0xff] }
 0x378   : > { %v6345_v62 = vpop.permute.xlu0 %6344 }
 0x379   : > { %v6347_v51 = vunpack.i.h.bf16 %v6345_v62  ;;  %v6346_v17 = vunpack.i.l.bf16 %v6345_v62 }
 0x37b   : > { %v4806_v28 = vsel %vm1095_vm8, %v4804_v25, %v6346_v17  ;;  %v4807_v22 = vsel %vm1095_vm8, %v4805_v60, %v6347_v51 }
 0x37c   : > { %v6355_v58 = vpop.permute.xlu0 %6354 }
 0x37d   : > { %v6357_v54 = vunpack.i.h.bf16 %v6355_v58  ;;  %v6356_v3 = vunpack.i.l.bf16 %v6355_v58 }
 0x37f   : > { %v6320_v4 = vpop.permute.xlu1 %6319  ;;  %v4808_v42 = vsel %vm1098_vm9, %v4806_v28, %v6356_v3  ;;  %v4809_v29 = vsel %vm1098_vm9, %v4807_v22, %v6357_v54 }
 0x380   : > { %v6365_v24 = vpop.permute.xlu0 %6364  ;;  %v6322_v13 = vunpack.i.h.bf16 %v6320_v4  ;;  %v6321_v11 = vunpack.i.l.bf16 %v6320_v4 }
 0x381   : > { %v6367_v14 = vunpack.i.h.bf16 %v6365_v24  ;;  %v6366_v21 = vunpack.i.l.bf16 %v6365_v24 }
 0x382   : > { %v4787_v31 = vsel %vm1086_vm5, %v8645_v34, %v6322_v13  ;;  %v4786_v55 = vsel %vm1086_vm5, %v9147_v26, %v6321_v11 }
 0x383   : > { %v6330_v52 = vpop.permute.xlu1 %6329  ;;  %v4810_v46 = vsel %vm1101_vm10, %v4808_v42, %v6366_v21  ;;  %v4811_v43 = vsel %vm1101_vm10, %v4809_v29, %v6367_v14  ;;  %v4816_v21 = vld [vmem:[#allocation6 + $0x58] sm:$0xf] }
 0x384   : > { %v6375_v7 = vpop.permute.xlu0 %6374  ;;  %v6332_v37 = vunpack.i.h.bf16 %v6330_v52  ;;  %v6331_v36 = vunpack.i.l.bf16 %v6330_v52 }
 0x385   : > { %v6377_v8 = vunpack.i.h.bf16 %v6375_v7  ;;  %v6376_v12 = vunpack.i.l.bf16 %v6375_v7 }
 0x386   : > { %v4788_v58 = vsel %vm1089_vm6, %v4786_v55, %v6331_v36  ;;  %v4789_v61 = vsel %vm1089_vm6, %v4787_v31, %v6332_v37 }
 0x387   : > { %v4812_v1 = vsel %vm1104_vm11, %v4810_v46, %v6376_v12  ;;  %v4813_v40 = vsel %vm1104_vm11, %v4811_v43, %v6377_v8  ;;  %v6340_v49 = vpop.permute.xlu1 %6339 }
 0x388   : > { %v5847_v5 = vpack.c.bf16 %v4813_v40, %v4812_v1  ;;  %v6342_v2 = vunpack.i.h.bf16 %v6340_v49  ;;  %v6341_v32 = vunpack.i.l.bf16 %v6340_v49  ;;  %v9148_v49 = vcombine.low %v8711_v9, %v8714_v57 }
 0x38a   : > { %5849 = vmatprep.subr.msk.bf16.mxu0 %vm7541_vm14, %v5847_v5  ;;  %v4790_v63 = vsel %vm1092_vm7, %v4788_v58, %v6341_v32  ;;  %v4791_v38 = vsel %vm1092_vm7, %v4789_v61, %v6342_v2 }
 0x38b   : > { %v6350_v56 = vpop.permute.xlu1 %6349 }
 0x38c   : > { %v6352_v18 = vunpack.i.h.bf16 %v6350_v56  ;;  %v6351_v27 = vunpack.i.l.bf16 %v6350_v56 }
 0x38e   : > { %v4792_v47 = vsel %vm1095_vm8, %v4790_v63, %v6351_v27  ;;  %v4793_v34 = vsel %vm1095_vm8, %v4791_v38, %v6352_v18 }
 0x38f   : > { %v6360_v50 = vpop.permute.xlu1 %6359 }
 0x390   : > { %v6362_v6 = vunpack.i.h.bf16 %v6360_v50  ;;  %v6361_v62 = vunpack.i.l.bf16 %v6360_v50 }
 0x392   : > { %v4794_v53 = vsel %vm1098_vm9, %v4792_v47, %v6361_v62  ;;  %v4795_v10 = vsel %vm1098_vm9, %v4793_v34, %v6362_v6 }
 0x393   : > { %v6370_v35 = vpop.permute.xlu1 %6369 }
 0x394   : > { %v6372_v15 = vunpack.i.h.bf16 %v6370_v35  ;;  %v6371_v39 = vunpack.i.l.bf16 %v6370_v35 }
 0x396   : > { %v4796_v44 = vsel %vm1101_vm10, %v4794_v53, %v6371_v39  ;;  %v4797_v20 = vsel %vm1101_vm10, %v4795_v10, %v6372_v15 }
 0x397   : > { %v6380_v4 = vpop.permute.xlu1 %6379  ;;  %v6385_v24 = vpop.permute.xlu0 %6384 }
 0x398   : > { %v6382_v51 = vunpack.i.h.bf16 %v6380_v4  ;;  %v6381_v17 = vunpack.i.l.bf16 %v6380_v4  ;;  %v6387_v22 = vunpack.i.h.bf16 %v6385_v24  ;;  %v6386_v7 = vunpack.i.l.bf16 %v6385_v24 }
 0x39a   : > { %v4798_v48 = vsel %vm1104_vm11, %v4796_v44, %v6381_v17  ;;  %v4799_v54 = vsel %vm1104_vm11, %v4797_v20, %v6382_v51  ;;  %v5565_v40 = vsel %vm1086_vm5, %v8737_v41, %v6387_v22  ;;  %v5564_v5 = vsel %vm1086_vm5, %v9148_v49, %v6386_v7 }
 0x39b   : > { %v5850_v3 = vpack.c.bf16 %v4799_v54, %v4798_v48  ;;  %v6395_v23 = vpop.permute.xlu0 %6394 }
 0x39c   : > { %v6397_v42 = vunpack.i.h.bf16 %v6395_v23  ;;  %v6396_v29 = vunpack.i.l.bf16 %v6395_v23 }
 0x39d   : > { %5852 = vmatpush1.bf16.msk.msra.mxu0 %vm7541_vm14, %v5850_v3 }
 0x39e   : > { %v9018_v60 = vpop.f32.mrb[0].mxu1  ;;  %v5566_v13 = vsel %vm1089_vm6, %v5564_v5, %v6396_v29  ;;  %v5567_v11 = vsel %vm1089_vm6, %v5565_v40, %v6397_v42  ;;  %v5580_v40 = vld [vmem:[#allocation6 + $0x68] sm:$0xf] }
 0x39f   : > { %v6405_v14 = vpop.permute.xlu0 %6404  ;;  %v9020_v28 = vpop.f32.mrb[1].mxu1 }
 0x3a0   : > { %5805 = vmatmul.mubr.msk.f32.vlgmr.msra.gmra.mrb[0].mxu0 %vm1674_vm15, %v4815_v45  ;;  %v6407_v8 = vunpack.i.h.bf16 %v6405_v14  ;;  %v6406_v12 = vunpack.i.l.bf16 %v6405_v14 }
 0x3a1   : > { %4899 = vmatprep.mubr.f32.mxu0 %v6587_v0 }
 0x3a2   : > { %v5568_v2 = vsel %vm1092_vm7, %v5566_v13, %v6406_v12  ;;  %v5569_v32 = vsel %vm1092_vm7, %v5567_v11, %v6407_v8 }
 0x3a3   : > { %v6415_v25 = vpop.permute.xlu0 %6414 }
 0x3a4   : > { %5806 = vmatmul.mubr.msk.f32.gmra.mrb[2].mxu0 %vm1674_vm15, %v4816_v21  ;;  %v6417_v46 = vunpack.i.h.bf16 %v6415_v25  ;;  %v6416_v43 = vunpack.i.l.bf16 %v6415_v25 }
 0x3a5   : > { %5657 = vmatprep.mubr.f32.mxu0 %v6587_v0 }
 0x3a6   : > { %v5570_v18 = vsel %vm1095_vm8, %v5568_v2, %v6416_v43  ;;  %v5571_v41 = vsel %vm1095_vm8, %v5569_v32, %v6417_v46 }
 0x3a7   : > { %v6425_v52 = vpop.permute.xlu0 %6424 }
 0x3a8   : > { %v6427_v56 = vunpack.i.h.bf16 %v6425_v52  ;;  %v6426_v50 = vunpack.i.l.bf16 %v6425_v52 }
 0x3aa   : > { %v5572_v57 = vsel %vm1098_vm9, %v5570_v18, %v6426_v50  ;;  %v5573_v35 = vsel %vm1098_vm9, %v5571_v41, %v6427_v56 }
 0x3ab   : > { %v6435_v1 = vpop.permute.xlu0 %6434 }
 0x3ac   : > { %v6437_v37 = vunpack.i.h.bf16 %v6435_v1  ;;  %v6436_v36 = vunpack.i.l.bf16 %v6435_v1  ;;  %v5579_v1 = vld [vmem:[#allocation6 + $0x60] sm:$0xff] }
 0x3ae   : > { %v5574_v55 = vsel %vm1101_vm10, %v5572_v57, %v6436_v36  ;;  %v5575_v6 = vsel %vm1101_vm10, %v5573_v35, %v6437_v37 }
 0x3af   : > { %v6390_v27 = vpop.permute.xlu1 %6389  ;;  %v6445_v9 = vpop.permute.xlu0 %6444 }
 0x3b0   : > { %v6447_v31 = vunpack.i.h.bf16 %v6445_v9  ;;  %v6446_v26 = vunpack.i.l.bf16 %v6445_v9  ;;  %v6392_v47 = vunpack.i.h.bf16 %v6390_v27  ;;  %v6391_v34 = vunpack.i.l.bf16 %v6390_v27 }
 0x3b2   : > { %v5576_v62 = vsel %vm1104_vm11, %v5574_v55, %v6446_v26  ;;  %v5577_v58 = vsel %vm1104_vm11, %v5575_v6, %v6447_v31  ;;  %v5551_v20 = vsel %vm1086_vm5, %v8821_v33, %v6392_v47  ;;  %v5550_v48 = vsel %vm1086_vm5, %v5158_v19, %v6391_v34 }
 0x3b3   : > { %v5853_v61 = vpack.c.bf16 %v5577_v58, %v5576_v62  ;;  %v6400_v15 = vpop.permute.xlu1 %6399 }
 0x3b4   : > { %v6402_v4 = vunpack.i.h.bf16 %v6400_v15  ;;  %v6401_v53 = vunpack.i.l.bf16 %v6400_v15 }
 0x3b5   : > { %5855 = vmatprep.subr.msk.bf16.mxu0 %vm7541_vm14, %v5853_v61 }
 0x3b6   : > { %v5552_v23 = vsel %vm1089_vm6, %v5550_v48, %v6401_v53  ;;  %v5553_v45 = vsel %vm1089_vm6, %v5551_v20, %v6402_v4 }
 0x3b7   : > { %v6410_v39 = vpop.permute.xlu1 %6409 }
 0x3b8   : > { %v6412_v10 = vunpack.i.h.bf16 %v6410_v39  ;;  %v6411_v51 = vunpack.i.l.bf16 %v6410_v39 }
 0x3ba   : > { %v5554_v25 = vsel %vm1092_vm7, %v5552_v23, %v6411_v51  ;;  %v5555_v52 = vsel %vm1092_vm7, %v5553_v45, %v6412_v10 }
 0x3bb   : > { %v6420_v63 = vpop.permute.xlu1 %6419 }
 0x3bc   : > { %v6422_v17 = vunpack.i.h.bf16 %v6420_v63  ;;  %v6421_v24 = vunpack.i.l.bf16 %v6420_v63 }
 0x3be   : > { %v5556_v22 = vsel %vm1095_vm8, %v5554_v25, %v6421_v24  ;;  %v5557_v33 = vsel %vm1095_vm8, %v5555_v52, %v6422_v17 }
 0x3bf   : > { %v6430_v38 = vpop.permute.xlu1 %6429 }
 0x3c0   : > { %v6432_v54 = vunpack.i.h.bf16 %v6430_v38  ;;  %v6431_v3 = vunpack.i.l.bf16 %v6430_v38 }
 0x3c2   : > { %v5558_v30 = vsel %vm1098_vm9, %v5556_v22, %v6431_v3  ;;  %v5559_v59 = vsel %vm1098_vm9, %v5557_v33, %v6432_v54 }
 0x3c3   : > { %v6440_v44 = vpop.permute.xlu1 %6439 }
 0x3c4   : > { %v6442_v14 = vunpack.i.h.bf16 %v6440_v44  ;;  %v6441_v21 = vunpack.i.l.bf16 %v6440_v44 }
 0x3c6   : > { %v5560_v29 = vsel %vm1101_vm10, %v5558_v30, %v6441_v21  ;;  %v5561_v8 = vsel %vm1101_vm10, %v5559_v59, %v6442_v14 }
 0x3c7   : > { %v6450_v7 = vpop.permute.xlu1 %6449 }
 0x3c8   : > { %v6452_v19 = vunpack.i.h.bf16 %v6450_v7  ;;  %v6451_v42 = vunpack.i.l.bf16 %v6450_v7 }
 0x3ca   : > { %v5562_v12 = vsel %vm1104_vm11, %v5560_v29, %v6451_v42  ;;  %v5563_v46 = vsel %vm1104_vm11, %v5561_v8, %v6452_v19 }
 0x3cb   : > { %v5856_v43 = vpack.c.bf16 %v5563_v46, %v5562_v12 }
 0x3cd   : > { %5858 = vmatpush1.bf16.msk.msra.mxu0 %vm7541_vm14, %v5856_v43 }
 0x3d0   : > { %5809 = vmatmul.mubr.msk.f32.vlgmr.msra.gmra.mrb[0].mxu0 %vm1674_vm15, %v5579_v1 }
 0x3d1   : > { %5663 = vmatprep.mubr.f32.mxu0 %v6587_v0 }
 0x3d4   : > { %5810 = vmatmul.mubr.msk.f32.gmra.mrb[2].mxu0 %vm1674_vm15, %v5580_v40 }
 0x429   : > { %v3373_v49 = vpop.f32.mrb[2].mxu1 }
 0x42a   : > { %v3375_v5 = vpop.f32.mrb[3].mxu1 }
 0x4a3   : > { %v5659_v56 = vpop.f32.mrb[0].mxu0 }
 0x4a4   : > { %v5861_v50 = vadd.f32 %v5659_v56, %v9018_v60  ;;  %v5661_v13 = vpop.f32.mrb[1].mxu0 }
 0x4a5   : > { %v5862_v16 = vadd.f32 %v5661_v13, %v9020_v28 }
 0x4a6   : > { %5674 = vst [vmem:[%s176_s24] sm:$0xff] %v5861_v50 }
 0x4a7   : > { %5675 = vst [vmem:[%s176_s24 + $0x8] sm:$0xff] %v5862_v16  ;;  %v5665_v0 = vpop.f32.mrb[2].mxu0 }
 0x4a8   : > { %v5863_v11 = vadd.f32 %v5665_v0, %v3373_v49  ;;  %v5667_v37 = vpop.f32.mrb[3].mxu0 }
 0x4a9   : > { %v5864_v36 = vadd.f32 %v5667_v37, %v3375_v5 }
 0x4aa   : > { %5676 = vst [vmem:[%s176_s24 + $0x10] sm:$0xf] %v5863_v11 }
 0x4ab   : > { %5677 = vst [vmem:[%s176_s24 + $0x18] sm:$0xf] %v5864_v36 }
 0x4ac   : > { %6524 = shalt.err (!%p6521_p7)
}
 0x4ad   : > { %s6525_s22 = scalar_lea.hbm %s9074_s3, 512  ;;  %s6529_s6 = scalar_lea.hbm %s9121_s2, 1024 }
 0x4ae   : > { %p6526_p9 = scmp.ne.s32.totalorder %s9074_s3, %s6525_s22  ;;  %p6530_p5 = scmp.lt.u32.totalorder %s9074_s3, %s9121_s2 }
 0x4af   : > { %p6531_p13 = scmp.lt.u32.totalorder %s6529_s6, %s6525_s22  ;;  %p6533_p4 = scmp.lt.u32.totalorder %s6525_s22, %s9074_s3 }
 0x4b0   : > { %p6527_p1 = pnand %p6526_p9, %p6713_p12 }
 0x4b1   : > { %p6532_p2 = por %p6531_p13, %p6530_p5 }
 0x4b2   : > { %p6528_p0 = pneg %p6527_p1 }
 0x4b3   : > { %p6534_p6 = por %p6533_p4, %p6532_p2 }
 0x4b5   : > { %p6535_p8 = pnand %p6534_p6, %p6528_p0 }
 0x4b7   : > { %6538 = shalt.err (!%p6535_p8)
}
 0x4b8   : > { %s6603_s18 = smov 256  }
 0x4b9   : > { %5894 = dma.vmem_to_hbm [thread:$0]  (%p6713_p12), %s9069_s19, 512, %s9074_s3, %s5679_s15, %s6603_s18, %s6603_s18, %s6593_s5  }
 0x4ba PF: > { %s5707_s24 = sand.u32 1, %s6569_s9   ;;  %p9149_p10 = scmp.ne.s32.totalorder %s9127_s16, 0 }
 0x4bb   : > { %p9150_p11 = scmp.ge.s32.totalorder %s6581_s12, 2  ;;  %s5708_s23 = scalar_lea.sflag [#allocation5], %s5707_s24 }
 0x4bd   : > { %p5905_p3 = pnand %p9150_p11, %p9149_p10 }
 0x4bf   : > { %6564 = dma.done.wait (!%p5905_p3), %s5708_s23, 512  }
 0x4c0   : > { %6566 = vsyncadd (!%p5905_p3), %s5708_s23, 4294966784  ;;  %p16_p7 = scmp.ge.s32.totalorder %s6675_s21, 4   ;;  %s9151_s9 = smov %s6573_s10 }
 0x4c1   : > { %s9152_s10 = smov %s6577_s11  ;;  %s9153_s11 = smov %s6709_s8 }
 0x4c2   : > { %s9154_s12 = smov %s6675_s21  ;;  %18 = sbr.rel (!%p16_p7) target bundleno = 6 (0x6), region = 83 }
 0x4c9   :  { %5713 = vsyncpa [#allocation4], 1 }
 0x4ca   :  { %5715 = vsyncpa [#allocation4 + $0x1], 1 }
 0x4cb   :  { %5716 = vsyncpa [#allocation7], 1 }
 0x4cc   :  { %5717 = vsyncpa [#allocation5], 1 }
 0x4cd   :  { %5719 = vsyncpa [#allocation5 + $0x1], 1 }

</bundles_post_ra>
